<compile_context>
chip_gen: v7x
topology: tpu7x:2x2x1
jax: 0.10.0
libtpu: 0.0.40
codegen_flags: <defaults>
</compile_context>

<pallas_src>
import functools

import jax
import jax.numpy as jnp
from jax.experimental import pallas as pl
from jax.experimental.pallas import tpu as pltpu

_LANE = 128
_COFF = 8          # sublane-aligned column offset for padded-scratch interiors


def _basic_block_kernel(x_ref, w1_ref, s1_ref, b1_ref, w2_ref, s2_ref, b2_ref,
                        *rest, H, W, C, P, stride, TR, has_projection,
                        compute_dtype):
    """Fused conv3x3+bn+relu -> conv3x3+bn -> (+ shortcut) -> relu.

    grid = (batch, row tiles); per step: TR output rows, NHWC layout,
    channel counts padded to multiples of 128.
    """
    if has_projection:
        wsc_ref, ssc_ref, bsc_ref, out_ref, xpad_s, h1pad_s = rest
    else:
        wsc_ref = ssc_ref = bsc_ref = None
        out_ref, xpad_s, h1pad_s = rest

    s = stride
    Ho = (H - 1) // s + 1
    Wo = (W - 1) // s + 1
    EXTRA = s                      # extra zero rows so halo-row taps stay in bounds
    ROFF = EXTRA + 1               # scratch row holding image row 0
    HP = H + 2 + 2 * EXTRA
    WP = W + 2 * _COFF
    WOP = Wo + 2 * _COFF
    n1 = TR + 2                    # h1 rows computed per tile (1-row halo each side)

    r = pl.program_id(1)
    r_last = pl.num_programs(1) - 1

    # ---- per-sample: fill the padded-input scratch once (r == 0) -----------
    # Scratch persists across the (sequential) row-tile axis; halos stay zero,
    # only the interior needs rewriting per sample.
    @pl.when(r == 0)
    def _fill():
        xpad_s[0:ROFF, :, :] = jnp.zeros((ROFF, WP, C), compute_dtype)
        xpad_s[ROFF + H:HP, :, :] = jnp.zeros((HP - ROFF - H, WP, C),
                                              compute_dtype)
        xpad_s[ROFF:ROFF + H, 0:_COFF, :] = jnp.zeros((H, _COFF, C),
                                                      compute_dtype)
        xpad_s[ROFF:ROFF + H, _COFF + W:WP, :] = jnp.zeros(
            (H, WP - _COFF - W, C), compute_dtype)
        # sublane-aligned interior store (column offset 8, not 1)
        xpad_s[ROFF:ROFF + H, _COFF:_COFF + W, :] = x_ref[0]
        # W-halo columns of the h1 slab are never written elsewhere
        h1pad_s[:, 0:_COFF, :] = jnp.zeros((n1, _COFF, P), compute_dtype)
        h1pad_s[:, _COFF + Wo:WOP, :] = jnp.zeros((n1, WOP - _COFF - Wo, P),
                                                  compute_dtype)

    # ---- per-tile im2col taps (9 of them, concatenated along K) ------------
    def taps_of(src_ref, h0, n_rows, width, chans, st):
        taps = []
        for kh in range(3):
            for kw in range(3):
                if st == 1:
                    t = src_ref[pl.ds(h0 + kh, n_rows),
                                pl.ds(_COFF + kw - 1, width), :]
                else:
                    t = src_ref[pl.ds(h0 + kh, n_rows, st),
                                pl.ds(_COFF + kw - 1, width, st), :]
                taps.append(t.reshape(n_rows * width, chans))
        return taps

    # scratch row of (h1 row j, tap kh) is j*s + kh + EXTRA; the first slab
    # row is j0 = r*TR - 1, so the tap-0 start is r*TR*s (always >= 0).
    h_base = pl.multiple_of(r * (TR * s), TR * s)

    # ---- conv1 (3x3, stride) + bn1 + relu over TR + 2 rows ------------------
    taps1 = taps_of(xpad_s, h_base, n1, Wo, C, s)
    panel1 = jnp.concatenate(taps1, axis=-1)                  # (n1*Wo, 9C)
    acc1 = jnp.dot(panel1, w1_ref[...], preferred_element_type=jnp.float32)
    h1 = jnp.maximum(acc1 * s1_ref[...] + b1_ref[...], 0.0)   # f32

    # write the h1 slab interior, then zero the slab rows that fall outside
    # the image (they are conv2's zero padding).
    h1pad_s[:, _COFF:_COFF + Wo, :] = (
        h1.astype(compute_dtype).reshape(n1, Wo, P))

    @pl.when(r == 0)
    def _zero_top():
        h1pad_s[0:1, _COFF:_COFF + Wo, :] = jnp.zeros((1, Wo, P),
                                                      compute_dtype)

    @pl.when(r == r_last)
    def _zero_bot():
        h1pad_s[TR + 1:TR + 2, _COFF:_COFF + Wo, :] = jnp.zeros(
            (1, Wo, P), compute_dtype)

    # ---- conv2 (3x3, stride 1) + bn2 over the TR output rows ----------------
    panel2 = jnp.concatenate(taps_of(h1pad_s, 0, TR, Wo, P, 1), axis=-1)
    acc2 = jnp.dot(panel2, w2_ref[...], preferred_element_type=jnp.float32)
    out2 = acc2 * s2_ref[...] + b2_ref[...]                   # (TR*Wo, P) f32

    # ---- shortcut: reuse conv1's centre tap (== x sampled at output grid) ---
    ctr = taps1[4][Wo:(TR + 1) * Wo, :]                       # (TR*Wo, C) bf16
    if has_projection:                                        # 1x1 conv + bn
        sc = jnp.dot(ctr, wsc_ref[...], preferred_element_type=jnp.float32)
        sc = sc * ssc_ref[...] + bsc_ref[...]
    else:                                                     # identity, C == P
        sc = ctr.astype(jnp.float32)   # fused into the add below (no extra pass)

    out_ref[0] = (jnp.maximum(out2 + sc, 0.0)
                  .astype(out_ref.dtype).reshape(TR, Wo, P))


# ------------------------------ host-side helpers ----------------------------
def _round_up(n, m):
    return (n + m - 1) // m * m


def _pad_last(a, target):
    pad = target - a.shape[-1]
    if pad == 0:
        return a
    return jnp.pad(a, [(0, 0)] * (a.ndim - 1) + [(0, pad)])


def _fold_bn(gamma, beta, mean, var, eps=1e-5):
    gamma, beta, mean, var = (t.astype(jnp.float32)
                              for t in (gamma, beta, mean, var))
    scale = gamma / jnp.sqrt(var + eps)
    return scale, beta - mean * scale


def _pick_row_tile(Ho, target=16):
    if Ho <= target:
        return Ho
    for t in range(target, 3, -1):
        if Ho % t == 0:
            return t
    return Ho


def _physical_vmem_bytes(default=128 * 2**20):
    try:
        return int(getattr(pltpu.get_tpu_info(), "vmem_capacity_bytes", default))
    except Exception:
        return default


def basic_block_nhwc(x_nhwc, params, stride=1, *, row_tile=None,
                     compute_dtype=jnp.bfloat16):
    """Core entry point: NHWC activations in (channels may already be padded
    to a multiple of 128), NHWC out with 128-padded channels in
    `compute_dtype`.  Chain-friendly: feed the output straight into the next
    block; un-padding / NCHW transposes are done once at network boundaries.
    """
    N, H, W, _ = x_nhwc.shape
    Cin = params['w1'].shape[2]
    P = params['w1'].shape[-1]
    has_projection = params.get('wsc') is not None
    if not has_projection:
        assert stride == 1 and Cin == P, \
            "identity shortcut needs stride=1 and Cin == planes"

    Ho = (H - 1) // stride + 1
    Wo = (W - 1) // stride + 1
    Cp = _round_up(Cin, _LANE)
    Pp = _round_up(P, _LANE)
    assert x_nhwc.shape[-1] in (Cin, Cp), "input channels must be Cin or padded Cp"

    TR = row_tile if row_tile is not None else _pick_row_tile(Ho)
    assert Ho % TR == 0, "row_tile must divide the output height"
    R = Ho // TR

    x_p = _pad_last(x_nhwc, Cp).astype(compute_dtype)

    # NOTE: in a real network these weight pads / BN folds would be done once.
    w1 = jnp.pad(params['w1'], ((0, 0), (0, 0), (0, Cp - Cin), (0, Pp - P)))
    w1 = w1.reshape(9 * Cp, Pp).astype(compute_dtype)
    w2 = jnp.pad(params['w2'], ((0, 0), (0, 0), (0, Pp - P), (0, Pp - P)))
    w2 = w2.reshape(9 * Pp, Pp).astype(compute_dtype)
    s1, b1 = (_pad_last(t, Pp).reshape(1, Pp) for t in _fold_bn(*params['bn1']))
    s2, b2 = (_pad_last(t, Pp).reshape(1, Pp) for t in _fold_bn(*params['bn2']))

    args = [x_p, w1, s1, b1, w2, s2, b2]
    if has_projection:
        wsc = jnp.pad(params['wsc'],
                      ((0, Cp - Cin), (0, Pp - P))).astype(compute_dtype)
        ssc, bsc = (_pad_last(t, Pp).reshape(1, Pp)
                    for t in _fold_bn(*params['bnsc']))
        args += [wsc, ssc, bsc]

    kernel = functools.partial(
        _basic_block_kernel, H=H, W=W, C=Cp, P=Pp, stride=stride, TR=TR,
        has_projection=has_projection, compute_dtype=compute_dtype)

    vmem_whole = pl.BlockSpec(memory_space=pltpu.MemorySpace.VMEM)
    in_specs = ([pl.BlockSpec((1, H, W, Cp), lambda n, r: (n, 0, 0, 0))]
                + [vmem_whole] * (len(args) - 1))
    out_spec = pl.BlockSpec((1, TR, Wo, Pp), lambda n, r: (n, r, 0, 0))

    EXTRA = stride
    HP, WP, WOP = H + 2 + 2 * EXTRA, W + 2 * _COFF, Wo + 2 * _COFF
    scratch = [pltpu.VMEM((HP, WP, Cp), compute_dtype),
               pltpu.VMEM((TR + 2, WOP, Pp), compute_dtype)]

    # advisory cost estimate + per-generation scoped-VMEM sizing
    itm = jnp.dtype(compute_dtype).itemsize
    M1, M2 = (TR + 2) * Wo, TR * Wo
    flops = 2 * N * R * (M1 * 9 * Cp * Pp + M2 * 9 * Pp * Pp)
    if has_projection:
        flops += 2 * N * R * M2 * Cp * Pp
    bytes_accessed = (sum(int(a.size) * a.dtype.itemsize for a in args)
                      + N * Ho * Wo * Pp * itm)
    vmem_est = (2 * H * W * Cp * itm                   # input tile (double-buffered)
                + 2 * M2 * Pp * itm                    # output tile (double-buffered, bf16)
                + (9 * Cp + 9 * Pp + (Cp if has_projection else 0)) * Pp * itm
                + 6 * Pp * 4                           # folded BN scale / bias
                + (HP * WP * Cp + (TR + 2) * WOP * Pp) * itm   # padded scratch
                + (M1 * 9 * Cp + M2 * 9 * Pp) * itm    # per-tile im2col panels
                + 4 * M1 * Pp * 4)                     # f32 accumulators / temps
    cap = _physical_vmem_bytes() * 13 // 16            # ~81%: ~52 MiB v7x, ~104 MiB v5e/v6e
    vmem_limit = int(min(cap, max(32 * 2**20, 2 * vmem_est)))

    return pl.pallas_call(
        kernel,
        out_shape=jax.ShapeDtypeStruct((N, Ho, Wo, Pp), compute_dtype),
        grid=(N, R),
        in_specs=in_specs,
        out_specs=out_spec,
        scratch_shapes=scratch,
        compiler_params=pltpu.CompilerParams(
            # The row-tile axis must stay "arbitrary": the per-sample padded
            # input scratch is filled at r == 0 and reused by later row tiles.
            # TODO(synk): self-contained per-tile fill would let r be
            # "parallel" (keeps both v7x TensorCores busy at batch 1).
            dimension_semantics=("parallel", "arbitrary"),
            vmem_limit_bytes=vmem_limit),
        cost_estimate=pl.CostEstimate(flops=int(flops), transcendentals=0,
                                      bytes_accessed=int(bytes_accessed)),
    )(*args)


def basic_block_forward(x_nchw, params, stride=1, **kwargs):
    """PyTorch-convention boundary wrapper: NCHW f32 in -> NCHW f32 out.
    When chaining blocks, call `basic_block_nhwc` directly instead."""
    x = jnp.transpose(x_nchw, (0, 2, 3, 1))                 # NCHW -> NHWC
    y = basic_block_nhwc(x, params, stride, **kwargs)
    P = params['w1'].shape[-1]
    return jnp.transpose(y[..., :P].astype(jnp.float32), (0, 3, 1, 2))


# ---------------------------- pure-JAX reference ----------------------------
def ref_forward(x_nchw, params, stride=1, compute_dtype=jnp.bfloat16, eps=1e-5):
    """Reference with the same bf16 quantization points as the kernel
    (except the kernel's final bf16 output cast)."""
    x = jnp.transpose(x_nchw, (0, 2, 3, 1)).astype(compute_dtype)

    def conv(inp, w, s, pad):
        return jax.lax.conv_general_dilated(
            inp, w.astype(compute_dtype), (s, s), pad,
            dimension_numbers=('NHWC', 'HWIO', 'NHWC'),
            preferred_element_type=jnp.float32)

    def bn(inp, p):
        g, b, m, v = (t.astype(jnp.float32) for t in p)
        return (inp - m) / jnp.sqrt(v + eps) * g + b

    h1 = jax.nn.relu(bn(conv(x, params['w1'], stride, ((1, 1), (1, 1))),
                        params['bn1']))
    out = bn(conv(h1.astype(compute_dtype), params['w2'], 1, ((1, 1), (1, 1))),
             params['bn2'])
    if params.get('wsc') is not None:
        sc = bn(conv(x, params['wsc'][None, None], stride, 'VALID'),
                params['bnsc'])
    else:
        sc = x.astype(jnp.float32)
    out = jax.nn.relu(out + sc)
    return jnp.transpose(out, (0, 3, 1, 2))


if __name__ == "__main__":
    key = jax.random.PRNGKey(0)

    def bn_params(k, c):
        k1, k2, k3, k4 = jax.random.split(k, 4)
        return (1.0 + 0.1 * jax.random.normal(k1, (c,), jnp.float32),
                0.1 * jax.random.normal(k2, (c,), jnp.float32),
                0.1 * jax.random.normal(k3, (c,), jnp.float32),
                1.0 + 0.1 * jax.random.uniform(k4, (c,), jnp.float32))

    def make_params(k, in_planes, planes, stride):
        ks = jax.random.split(k, 6)
        p = {'w1': 0.1 * jax.random.normal(ks[0], (3, 3, in_planes, planes),
                                           jnp.float32),
             'bn1': bn_params(ks[1], planes),
             'w2': 0.1 * jax.random.normal(ks[2], (3, 3, planes, planes),
                                           jnp.float32),
             'bn2': bn_params(ks[3], planes),
             'wsc': None}
        if stride != 1 or in_planes != planes:
            p['wsc'] = 0.1 * jax.random.normal(ks[4], (in_planes, planes),
                                               jnp.float32)
            p['bnsc'] = bn_params(ks[5], planes)
        return p

    N = 2
    cases = [  # name, cin, planes, stride, H, W, row_tile
        ('identity',   8,  8, 1, 16, 16, 8),     # identity shortcut, 2 row tiles
        ('projection', 4,  8, 1, 16, 16, None),  # 1x1 projection, single tile
        ('downsample', 8, 16, 2, 16, 12, 4),     # stride-2 projection, rectangular
    ]

    keys = jax.random.split(key, 2 * len(cases))
    for i, (name, cin, planes, stride, H, W, rt) in enumerate(cases):
        x = jax.random.normal(keys[2 * i], (N, cin, H, W), jnp.float32)
        params = make_params(keys[2 * i + 1], cin, planes, stride)

        out = jax.block_until_ready(
            basic_block_forward(x, params, stride, row_tile=rt))
        ref = jax.block_until_ready(ref_forward(x, params, stride))

        Ho = (H - 1) // stride + 1
        Wo = (W - 1) // stride + 1
        assert out.shape == (N, planes, Ho, Wo), (name, out.shape)
        # kernel output is bf16 (reference tail stays f32) -> relative check
        err = float(jnp.max(jnp.abs(out - ref) / (1.0 + jnp.abs(ref))))
        assert err < 2e-2, f"{name}: max rel err = {err}"

    print("KERNEL_OK")
</pallas_src>

<mosaic_0001>
module attributes {stable_mosaic.version = 11 : i64} {
  func.func @_basic_block_kernel(%arg0: i32, %arg1: i32, %arg2: memref<1x16x16x128xbf16, #tpu.memory_space<vmem>>, %arg3: memref<1152x128xbf16, #tpu.memory_space<vmem>>, %arg4: memref<1x128xf32, #tpu.memory_space<vmem>>, %arg5: memref<1x128xf32, #tpu.memory_space<vmem>>, %arg6: memref<1152x128xbf16, #tpu.memory_space<vmem>>, %arg7: memref<1x128xf32, #tpu.memory_space<vmem>>, %arg8: memref<1x128xf32, #tpu.memory_space<vmem>>, %arg9: memref<1x8x16x128xbf16, #tpu.memory_space<vmem>>, %arg10: memref<20x32x128xbf16, #tpu.memory_space<vmem>>, %arg11: memref<10x32x128xbf16, #tpu.memory_space<vmem>>) attributes {dimension_semantics = [#tpu.dimension_semantics<parallel>, #tpu.dimension_semantics<arbitrary>], iteration_bounds = array<i64: 2, 2>, scalar_prefetch = 0 : i64, scratch_operands = 2 : i64, tpu.core_type = #tpu.core_type<tc>, window_params = [{transform_indices = @transform_0, window_bounds = array<i64: 1, 16, 16, 128>}, {pipeline_mode = #tpu.pipeline_mode<synchronous>, transform_indices = @transform_1, window_bounds = array<i64: 1152, 128>}, {pipeline_mode = #tpu.pipeline_mode<synchronous>, transform_indices = @transform_2, window_bounds = array<i64: 1, 128>}, {pipeline_mode = #tpu.pipeline_mode<synchronous>, transform_indices = @transform_3, window_bounds = array<i64: 1, 128>}, {pipeline_mode = #tpu.pipeline_mode<synchronous>, transform_indices = @transform_4, window_bounds = array<i64: 1152, 128>}, {pipeline_mode = #tpu.pipeline_mode<synchronous>, transform_indices = @transform_5, window_bounds = array<i64: 1, 128>}, {pipeline_mode = #tpu.pipeline_mode<synchronous>, transform_indices = @transform_6, window_bounds = array<i64: 1, 128>}, {transform_indices = @transform_7, window_bounds = array<i64: 1, 8, 16, 128>}]} {
    %c0_i32 = arith.constant 0 : i32
    %0 = arith.cmpi eq, %arg1, %c0_i32 : i32
    %1 = arith.extui %0 : i1 to i32
    %c0_i32_0 = arith.constant 0 : i32
    %2 = arith.cmpi ne, %1, %c0_i32_0 : i32
    scf.if %2 {
      %cst_73 = arith.constant 0.000000e+00 : bf16
      %98 = vector.broadcast %cst_73 : bf16 to vector<2x32x128xbf16>
      %c0_74 = arith.constant 0 : index
      %c0_75 = arith.constant 0 : index
      %c0_76 = arith.constant 0 : index
      %99 = vector.load %arg10[%c0_74, %c0_75, %c0_76] : memref<20x32x128xbf16, #tpu.memory_space<vmem>>, vector<2x32x128xbf16>
      tpu.vector_store %arg10[%c0_74, %c0_75, %c0_76], %98 {strides = array<i32>} : memref<20x32x128xbf16, #tpu.memory_space<vmem>>, vector<2x32x128xbf16>,
      %cst_77 = arith.constant 0.000000e+00 : bf16
      %100 = vector.broadcast %cst_77 : bf16 to vector<2x32x128xbf16>
      %c18 = arith.constant 18 : index
      %c0_78 = arith.constant 0 : index
      %c0_79 = arith.constant 0 : index
      %101 = vector.load %arg10[%c18, %c0_78, %c0_79] : memref<20x32x128xbf16, #tpu.memory_space<vmem>>, vector<2x32x128xbf16>
      tpu.vector_store %arg10[%c18, %c0_78, %c0_79], %100 {strides = array<i32>} : memref<20x32x128xbf16, #tpu.memory_space<vmem>>, vector<2x32x128xbf16>,
      %cst_80 = arith.constant 0.000000e+00 : bf16
      %102 = vector.broadcast %cst_80 : bf16 to vector<16x8x128xbf16>
      %c2_81 = arith.constant 2 : index
      %c0_82 = arith.constant 0 : index
      %c0_83 = arith.constant 0 : index
      %103 = vector.load %arg10[%c2_81, %c0_82, %c0_83] : memref<20x32x128xbf16, #tpu.memory_space<vmem>>, vector<16x8x128xbf16>
      tpu.vector_store %arg10[%c2_81, %c0_82, %c0_83], %102 {strides = array<i32>} : memref<20x32x128xbf16, #tpu.memory_space<vmem>>, vector<16x8x128xbf16>,
      %cst_84 = arith.constant 0.000000e+00 : bf16
      %104 = vector.broadcast %cst_84 : bf16 to vector<16x8x128xbf16>
      %c2_85 = arith.constant 2 : index
      %c24 = arith.constant 24 : index
      %c0_86 = arith.constant 0 : index
      %105 = vector.load %arg10[%c2_85, %c24, %c0_86] : memref<20x32x128xbf16, #tpu.memory_space<vmem>>, vector<16x8x128xbf16>
      tpu.vector_store %arg10[%c2_85, %c24, %c0_86], %104 {strides = array<i32>} : memref<20x32x128xbf16, #tpu.memory_space<vmem>>, vector<16x8x128xbf16>,
      %c0_87 = arith.constant 0 : index
      %c0_88 = arith.constant 0 : index
      %c0_89 = arith.constant 0 : index
      %c0_90 = arith.constant 0 : index
      %106 = vector.load %arg2[%c0_87, %c0_88, %c0_89, %c0_90] : memref<1x16x16x128xbf16, #tpu.memory_space<vmem>>, vector<1x16x16x128xbf16>
      %107 = vector.shape_cast %106 : vector<1x16x16x128xbf16> to vector<16x16x128xbf16>
      %c2_91 = arith.constant 2 : index
      %c8_92 = arith.constant 8 : index
      %c0_93 = arith.constant 0 : index
      %108 = vector.load %arg10[%c2_91, %c8_92, %c0_93] : memref<20x32x128xbf16, #tpu.memory_space<vmem>>, vector<16x16x128xbf16>
      tpu.vector_store %arg10[%c2_91, %c8_92, %c0_93], %107 {strides = array<i32>} : memref<20x32x128xbf16, #tpu.memory_space<vmem>>, vector<16x16x128xbf16>,
      %cst_94 = arith.constant 0.000000e+00 : bf16
      %109 = vector.broadcast %cst_94 : bf16 to vector<10x8x128xbf16>
      %c0_95 = arith.constant 0 : index
      %c0_96 = arith.constant 0 : index
      %c0_97 = arith.constant 0 : index
      %110 = vector.load %arg11[%c0_95, %c0_96, %c0_97] : memref<10x32x128xbf16, #tpu.memory_space<vmem>>, vector<10x8x128xbf16>
      tpu.vector_store %arg11[%c0_95, %c0_96, %c0_97], %109 {strides = array<i32>} : memref<10x32x128xbf16, #tpu.memory_space<vmem>>, vector<10x8x128xbf16>,
      %cst_98 = arith.constant 0.000000e+00 : bf16
      %111 = vector.broadcast %cst_98 : bf16 to vector<10x8x128xbf16>
      %c0_99 = arith.constant 0 : index
      %c24_100 = arith.constant 24 : index
      %c0_101 = arith.constant 0 : index
      %112 = vector.load %arg11[%c0_99, %c24_100, %c0_101] : memref<10x32x128xbf16, #tpu.memory_space<vmem>>, vector<10x8x128xbf16>
      tpu.vector_store %arg11[%c0_99, %c24_100, %c0_101], %111 {strides = array<i32>} : memref<10x32x128xbf16, #tpu.memory_space<vmem>>, vector<10x8x128xbf16>,
    } else {
    }
    %c8_i32 = arith.constant 8 : i32
    %3 = arith.muli %arg1, %c8_i32 : i32
    %4 = tpu.assume_multiple %3, 8 : i32
    %c0_i32_1 = arith.constant 0 : i32
    %5 = arith.addi %4, %c0_i32_1 : i32
    %6 = arith.index_cast %5 : i32 to index
    %c7 = arith.constant 7 : index
    %c0 = arith.constant 0 : index
    %7 = vector.load %arg10[%6, %c7, %c0] : memref<20x32x128xbf16, #tpu.memory_space<vmem>>, vector<10x16x128xbf16>
    %8 = vector.shape_cast %7 : vector<10x16x128xbf16> to vector<160x128xbf16>
    %c0_i32_2 = arith.constant 0 : i32
    %9 = arith.addi %4, %c0_i32_2 : i32
    %10 = arith.index_cast %9 : i32 to index
    %c8 = arith.constant 8 : index
    %c0_3 = arith.constant 0 : index
    %11 = vector.load %arg10[%10, %c8, %c0_3] : memref<20x32x128xbf16, #tpu.memory_space<vmem>>, vector<10x16x128xbf16>
    %12 = vector.shape_cast %11 : vector<10x16x128xbf16> to vector<160x128xbf16>
    %c0_i32_4 = arith.constant 0 : i32
    %13 = arith.addi %4, %c0_i32_4 : i32
    %14 = arith.index_cast %13 : i32 to index
    %c9 = arith.constant 9 : index
    %c0_5 = arith.constant 0 : index
    %15 = vector.load %arg10[%14, %c9, %c0_5] : memref<20x32x128xbf16, #tpu.memory_space<vmem>>, vector<10x16x128xbf16>
    %16 = vector.shape_cast %15 : vector<10x16x128xbf16> to vector<160x128xbf16>
    %c1_i32 = arith.constant 1 : i32
    %17 = arith.addi %4, %c1_i32 : i32
    %18 = arith.index_cast %17 : i32 to index
    %c7_6 = arith.constant 7 : index
    %c0_7 = arith.constant 0 : index
    %19 = vector.load %arg10[%18, %c7_6, %c0_7] : memref<20x32x128xbf16, #tpu.memory_space<vmem>>, vector<10x16x128xbf16>
    %20 = vector.shape_cast %19 : vector<10x16x128xbf16> to vector<160x128xbf16>
    %c1_i32_8 = arith.constant 1 : i32
    %21 = arith.addi %4, %c1_i32_8 : i32
    %22 = arith.index_cast %21 : i32 to index
    %c8_9 = arith.constant 8 : index
    %c0_10 = arith.constant 0 : index
    %23 = vector.load %arg10[%22, %c8_9, %c0_10] : memref<20x32x128xbf16, #tpu.memory_space<vmem>>, vector<10x16x128xbf16>
    %24 = vector.shape_cast %23 : vector<10x16x128xbf16> to vector<160x128xbf16>
    %c1_i32_11 = arith.constant 1 : i32
    %25 = arith.addi %4, %c1_i32_11 : i32
    %26 = arith.index_cast %25 : i32 to index
    %c9_12 = arith.constant 9 : index
    %c0_13 = arith.constant 0 : index
    %27 = vector.load %arg10[%26, %c9_12, %c0_13] : memref<20x32x128xbf16, #tpu.memory_space<vmem>>, vector<10x16x128xbf16>
    %28 = vector.shape_cast %27 : vector<10x16x128xbf16> to vector<160x128xbf16>
    %c2_i32 = arith.constant 2 : i32
    %29 = arith.addi %4, %c2_i32 : i32
    %30 = arith.index_cast %29 : i32 to index
    %c7_14 = arith.constant 7 : index
    %c0_15 = arith.constant 0 : index
    %31 = vector.load %arg10[%30, %c7_14, %c0_15] : memref<20x32x128xbf16, #tpu.memory_space<vmem>>, vector<10x16x128xbf16>
    %32 = vector.shape_cast %31 : vector<10x16x128xbf16> to vector<160x128xbf16>
    %c2_i32_16 = arith.constant 2 : i32
    %33 = arith.addi %4, %c2_i32_16 : i32
    %34 = arith.index_cast %33 : i32 to index
    %c8_17 = arith.constant 8 : index
    %c0_18 = arith.constant 0 : index
    %35 = vector.load %arg10[%34, %c8_17, %c0_18] : memref<20x32x128xbf16, #tpu.memory_space<vmem>>, vector<10x16x128xbf16>
    %36 = vector.shape_cast %35 : vector<10x16x128xbf16> to vector<160x128xbf16>
    %c2_i32_19 = arith.constant 2 : i32
    %37 = arith.addi %4, %c2_i32_19 : i32
    %38 = arith.index_cast %37 : i32 to index
    %c9_20 = arith.constant 9 : index
    %c0_21 = arith.constant 0 : index
    %39 = vector.load %arg10[%38, %c9_20, %c0_21] : memref<20x32x128xbf16, #tpu.memory_space<vmem>>, vector<10x16x128xbf16>
    %40 = vector.shape_cast %39 : vector<10x16x128xbf16> to vector<160x128xbf16>
    %41 = tpu.concatenate %8, %12, %16, %20, %24, %28, %32, %36, %40 in 1 : vector<160x128xbf16>, vector<160x128xbf16>, vector<160x128xbf16>, vector<160x128xbf16>, vector<160x128xbf16>, vector<160x128xbf16>, vector<160x128xbf16>, vector<160x128xbf16>, vector<160x128xbf16> -> vector<160x1152xbf16>
    %c0_22 = arith.constant 0 : index
    %c0_23 = arith.constant 0 : index
    %42 = vector.load %arg3[%c0_22, %c0_23] : memref<1152x128xbf16, #tpu.memory_space<vmem>>, vector<1152x128xbf16>
    %cst = arith.constant dense<0.000000e+00> : vector<160x128xf32>
    %43 = tpu.matmul %41, %42, %cst {dimension_numbers = #tpu.dot_dimension_numbers<[1], [0], [0], [1], [0, 0, 1, 1], [], []>} : vector<160x1152xbf16>, vector<1152x128xbf16>, vector<160x128xf32> -> vector<160x128xf32>
    %c0_24 = arith.constant 0 : index
    %c0_25 = arith.constant 0 : index
    %44 = vector.load %arg4[%c0_24, %c0_25] : memref<1x128xf32, #tpu.memory_space<vmem>>, vector<1x128xf32>
    %45 = vector.broadcast %44 : vector<1x128xf32> to vector<160x128xf32>
    %46 = arith.mulf %43, %45 : vector<160x128xf32>
    %c0_26 = arith.constant 0 : index
    %c0_27 = arith.constant 0 : index
    %47 = vector.load %arg5[%c0_26, %c0_27] : memref<1x128xf32, #tpu.memory_space<vmem>>, vector<1x128xf32>
    %48 = vector.broadcast %47 : vector<1x128xf32> to vector<160x128xf32>
    %49 = arith.addf %46, %48 : vector<160x128xf32>
    %cst_28 = arith.constant 0.000000e+00 : f32
    %50 = vector.broadcast %cst_28 : f32 to vector<160x128xf32>
    %51 = arith.maximumf %49, %50 : vector<160x128xf32>
    %52 = arith.truncf %51 : vector<160x128xf32> to vector<160x128xbf16>
    %53 = vector.shape_cast %52 : vector<160x128xbf16> to vector<10x16x128xbf16>
    %c0_29 = arith.constant 0 : index
    %c8_30 = arith.constant 8 : index
    %c0_31 = arith.constant 0 : index
    %54 = vector.load %arg11[%c0_29, %c8_30, %c0_31] : memref<10x32x128xbf16, #tpu.memory_space<vmem>>, vector<10x16x128xbf16>
    tpu.vector_store %arg11[%c0_29, %c8_30, %c0_31], %53 {strides = array<i32>} : memref<10x32x128xbf16, #tpu.memory_space<vmem>>, vector<10x16x128xbf16>,
    %c0_i32_32 = arith.constant 0 : i32
    %55 = arith.cmpi eq, %arg1, %c0_i32_32 : i32
    %56 = arith.extui %55 : i1 to i32
    %c0_i32_33 = arith.constant 0 : i32
    %57 = arith.cmpi ne, %56, %c0_i32_33 : i32
    scf.if %57 {
      %cst_73 = arith.constant 0.000000e+00 : bf16
      %98 = vector.broadcast %cst_73 : bf16 to vector<1x16x128xbf16>
      %c0_74 = arith.constant 0 : index
      %c8_75 = arith.constant 8 : index
      %c0_76 = arith.constant 0 : index
      %99 = vector.load %arg11[%c0_74, %c8_75, %c0_76] : memref<10x32x128xbf16, #tpu.memory_space<vmem>>, vector<1x16x128xbf16>
      tpu.vector_store %arg11[%c0_74, %c8_75, %c0_76], %98 {strides = array<i32>} : memref<10x32x128xbf16, #tpu.memory_space<vmem>>, vector<1x16x128xbf16>,
    } else {
    }
    %c1_i32_34 = arith.constant 1 : i32
    %58 = arith.cmpi eq, %arg1, %c1_i32_34 : i32
    %59 = arith.extui %58 : i1 to i32
    %c0_i32_35 = arith.constant 0 : i32
    %60 = arith.cmpi ne, %59, %c0_i32_35 : i32
    scf.if %60 {
      %cst_73 = arith.constant 0.000000e+00 : bf16
      %98 = vector.broadcast %cst_73 : bf16 to vector<1x16x128xbf16>
      %c9_74 = arith.constant 9 : index
      %c8_75 = arith.constant 8 : index
      %c0_76 = arith.constant 0 : index
      %99 = vector.load %arg11[%c9_74, %c8_75, %c0_76] : memref<10x32x128xbf16, #tpu.memory_space<vmem>>, vector<1x16x128xbf16>
      tpu.vector_store %arg11[%c9_74, %c8_75, %c0_76], %98 {strides = array<i32>} : memref<10x32x128xbf16, #tpu.memory_space<vmem>>, vector<1x16x128xbf16>,
    } else {
    }
    %c0_36 = arith.constant 0 : index
    %c7_37 = arith.constant 7 : index
    %c0_38 = arith.constant 0 : index
    %61 = vector.load %arg11[%c0_36, %c7_37, %c0_38] : memref<10x32x128xbf16, #tpu.memory_space<vmem>>, vector<8x16x128xbf16>
    %62 = vector.shape_cast %61 : vector<8x16x128xbf16> to vector<128x128xbf16>
    %c0_39 = arith.constant 0 : index
    %c8_40 = arith.constant 8 : index
    %c0_41 = arith.constant 0 : index
    %63 = vector.load %arg11[%c0_39, %c8_40, %c0_41] : memref<10x32x128xbf16, #tpu.memory_space<vmem>>, vector<8x16x128xbf16>
    %64 = vector.shape_cast %63 : vector<8x16x128xbf16> to vector<128x128xbf16>
    %c0_42 = arith.constant 0 : index
    %c9_43 = arith.constant 9 : index
    %c0_44 = arith.constant 0 : index
    %65 = vector.load %arg11[%c0_42, %c9_43, %c0_44] : memref<10x32x128xbf16, #tpu.memory_space<vmem>>, vector<8x16x128xbf16>
    %66 = vector.shape_cast %65 : vector<8x16x128xbf16> to vector<128x128xbf16>
    %c1 = arith.constant 1 : index
    %c7_45 = arith.constant 7 : index
    %c0_46 = arith.constant 0 : index
    %67 = vector.load %arg11[%c1, %c7_45, %c0_46] : memref<10x32x128xbf16, #tpu.memory_space<vmem>>, vector<8x16x128xbf16>
    %68 = vector.shape_cast %67 : vector<8x16x128xbf16> to vector<128x128xbf16>
    %c1_47 = arith.constant 1 : index
    %c8_48 = arith.constant 8 : index
    %c0_49 = arith.constant 0 : index
    %69 = vector.load %arg11[%c1_47, %c8_48, %c0_49] : memref<10x32x128xbf16, #tpu.memory_space<vmem>>, vector<8x16x128xbf16>
    %70 = vector.shape_cast %69 : vector<8x16x128xbf16> to vector<128x128xbf16>
    %c1_50 = arith.constant 1 : index
    %c9_51 = arith.constant 9 : index
    %c0_52 = arith.constant 0 : index
    %71 = vector.load %arg11[%c1_50, %c9_51, %c0_52] : memref<10x32x128xbf16, #tpu.memory_space<vmem>>, vector<8x16x128xbf16>
    %72 = vector.shape_cast %71 : vector<8x16x128xbf16> to vector<128x128xbf16>
    %c2 = arith.constant 2 : index
    %c7_53 = arith.constant 7 : index
    %c0_54 = arith.constant 0 : index
    %73 = vector.load %arg11[%c2, %c7_53, %c0_54] : memref<10x32x128xbf16, #tpu.memory_space<vmem>>, vector<8x16x128xbf16>
    %74 = vector.shape_cast %73 : vector<8x16x128xbf16> to vector<128x128xbf16>
    %c2_55 = arith.constant 2 : index
    %c8_56 = arith.constant 8 : index
    %c0_57 = arith.constant 0 : index
    %75 = vector.load %arg11[%c2_55, %c8_56, %c0_57] : memref<10x32x128xbf16, #tpu.memory_space<vmem>>, vector<8x16x128xbf16>
    %76 = vector.shape_cast %75 : vector<8x16x128xbf16> to vector<128x128xbf16>
    %c2_58 = arith.constant 2 : index
    %c9_59 = arith.constant 9 : index
    %c0_60 = arith.constant 0 : index
    %77 = vector.load %arg11[%c2_58, %c9_59, %c0_60] : memref<10x32x128xbf16, #tpu.memory_space<vmem>>, vector<8x16x128xbf16>
    %78 = vector.shape_cast %77 : vector<8x16x128xbf16> to vector<128x128xbf16>
    %79 = tpu.concatenate %62, %64, %66, %68, %70, %72, %74, %76, %78 in 1 : vector<128x128xbf16>, vector<128x128xbf16>, vector<128x128xbf16>, vector<128x128xbf16>, vector<128x128xbf16>, vector<128x128xbf16>, vector<128x128xbf16>, vector<128x128xbf16>, vector<128x128xbf16> -> vector<128x1152xbf16>
    %c0_61 = arith.constant 0 : index
    %c0_62 = arith.constant 0 : index
    %80 = vector.load %arg6[%c0_61, %c0_62] : memref<1152x128xbf16, #tpu.memory_space<vmem>>, vector<1152x128xbf16>
    %cst_63 = arith.constant dense<0.000000e+00> : vector<128x128xf32>
    %81 = tpu.matmul %79, %80, %cst_63 {dimension_numbers = #tpu.dot_dimension_numbers<[1], [0], [0], [1], [0, 0, 1, 1], [], []>} : vector<128x1152xbf16>, vector<1152x128xbf16>, vector<128x128xf32> -> vector<128x128xf32>
    %c0_64 = arith.constant 0 : index
    %c0_65 = arith.constant 0 : index
    %82 = vector.load %arg7[%c0_64, %c0_65] : memref<1x128xf32, #tpu.memory_space<vmem>>, vector<1x128xf32>
    %83 = vector.broadcast %82 : vector<1x128xf32> to vector<128x128xf32>
    %84 = arith.mulf %81, %83 : vector<128x128xf32>
    %c0_66 = arith.constant 0 : index
    %c0_67 = arith.constant 0 : index
    %85 = vector.load %arg8[%c0_66, %c0_67] : memref<1x128xf32, #tpu.memory_space<vmem>>, vector<1x128xf32>
    %86 = vector.broadcast %85 : vector<1x128xf32> to vector<128x128xf32>
    %87 = arith.addf %84, %86 : vector<128x128xf32>
    %88 = vector.extract_strided_slice %24 {offsets = [16, 0], sizes = [128, 128], strides = [1, 1]} : vector<160x128xbf16> to vector<128x128xbf16>
    %89 = arith.extf %88 : vector<128x128xbf16> to vector<128x128xf32>
    %90 = arith.addf %87, %89 : vector<128x128xf32>
    %cst_68 = arith.constant 0.000000e+00 : f32
    %91 = vector.broadcast %cst_68 : f32 to vector<128x128xf32>
    %92 = arith.maximumf %90, %91 : vector<128x128xf32>
    %93 = arith.truncf %92 : vector<128x128xf32> to vector<128x128xbf16>
    %94 = vector.shape_cast %93 : vector<128x128xbf16> to vector<8x16x128xbf16>
    %c0_69 = arith.constant 0 : index
    %c0_70 = arith.constant 0 : index
    %c0_71 = arith.constant 0 : index
    %c0_72 = arith.constant 0 : index
    %95 = vector.load %arg9[%c0_69, %c0_70, %c0_71, %c0_72] : memref<1x8x16x128xbf16, #tpu.memory_space<vmem>>, vector<1x8x16x128xbf16>
    %96 = vector.shape_cast %95 : vector<1x8x16x128xbf16> to vector<8x16x128xbf16>
    %97 = vector.shape_cast %94 : vector<8x16x128xbf16> to vector<1x8x16x128xbf16>
    tpu.vector_store %arg9[%c0_69, %c0_70, %c0_71, %c0_72], %97 {strides = array<i32>} : memref<1x8x16x128xbf16, #tpu.memory_space<vmem>>, vector<1x8x16x128xbf16>,
    return
  }
  func.func @transform_0(%arg0: i32, %arg1: i32) -> (i32, i32, i32, i32) {
    %c0_i32 = arith.constant 0 : i32
    %c0_i32_0 = arith.constant 0 : i32
    %c0_i32_1 = arith.constant 0 : i32
    %c0_i32_2 = arith.constant 0 : i32
    return %arg0, %c0_i32, %c0_i32_0, %c0_i32_1 : i32, i32, i32, i32
  }
  func.func @transform_1(%arg0: i32, %arg1: i32) -> (i32, i32) {
    %c0_i32 = arith.constant 0 : i32
    %c0_i32_0 = arith.constant 0 : i32
    %c0_i32_1 = arith.constant 0 : i32
    return %c0_i32, %c0_i32_0 : i32, i32
  }
  func.func @transform_2(%arg0: i32, %arg1: i32) -> (i32, i32) {
    %c0_i32 = arith.constant 0 : i32
    %c0_i32_0 = arith.constant 0 : i32
    %c0_i32_1 = arith.constant 0 : i32
    return %c0_i32, %c0_i32_0 : i32, i32
  }
  func.func @transform_3(%arg0: i32, %arg1: i32) -> (i32, i32) {
    %c0_i32 = arith.constant 0 : i32
    %c0_i32_0 = arith.constant 0 : i32
    %c0_i32_1 = arith.constant 0 : i32
    return %c0_i32, %c0_i32_0 : i32, i32
  }
  func.func @transform_4(%arg0: i32, %arg1: i32) -> (i32, i32) {
    %c0_i32 = arith.constant 0 : i32
    %c0_i32_0 = arith.constant 0 : i32
    %c0_i32_1 = arith.constant 0 : i32
    return %c0_i32, %c0_i32_0 : i32, i32
  }
  func.func @transform_5(%arg0: i32, %arg1: i32) -> (i32, i32) {
    %c0_i32 = arith.constant 0 : i32
    %c0_i32_0 = arith.constant 0 : i32
    %c0_i32_1 = arith.constant 0 : i32
    return %c0_i32, %c0_i32_0 : i32, i32
  }
  func.func @transform_6(%arg0: i32, %arg1: i32) -> (i32, i32) {
    %c0_i32 = arith.constant 0 : i32
    %c0_i32_0 = arith.constant 0 : i32
    %c0_i32_1 = arith.constant 0 : i32
    return %c0_i32, %c0_i32_0 : i32, i32
  }
  func.func @transform_7(%arg0: i32, %arg1: i32) -> (i32, i32, i32, i32) {
    %c0_i32 = arith.constant 0 : i32
    %c0_i32_0 = arith.constant 0 : i32
    %c0_i32_1 = arith.constant 0 : i32
    return %arg0, %arg1, %c0_i32, %c0_i32_0 : i32, i32, i32, i32
  }
}

</mosaic_0001>

<bundles_post_ra>
// kernel: tpu_custom_call.1
= control target key start
LH: loop header
LB: loop body
LE: loop exit
PB: predicated region body
PF: predicated region fallthrough
CT: control target
= control target key end

     0   :  { %s8615_s0 = inlined_call_operand.hbm [shape: bf16[2,16,16,128], index: 0, kind: input, shape index: {}]   ;;  %s8616_s1 = inlined_call_operand.hbm [shape: bf16[1152,128], index: 1, kind: input, shape index: {}]   ;;  %s8617_s2 = inlined_call_operand.vmem [shape: f32[1,128], index: 2, kind: input, shape index: {}]   ;;  %s8618_s3 = inlined_call_operand.vmem [shape: f32[1,128], index: 3, kind: input, shape index: {}]   ;;  %s8619_s4 = inlined_call_operand.hbm [shape: bf16[1152,128], index: 4, kind: input, shape index: {}]   ;;  %s8620_s5 = inlined_call_operand.vmem [shape: f32[1,128], index: 5, kind: input, shape index: {}]   ;;  %s8621_s6 = inlined_call_operand.vmem [shape: f32[1,128], index: 6, kind: input, shape index: {}]   ;;  %s8622_s7 = inlined_call_operand.hbm [shape: bf16[2,16,16,128], index: 7, kind: output, shape index: {}]  }
   0x1   :  { %8637 = sst [smem:[#allocation20_spill]] %s8616_s1 }
   0x2   :  { %8638 = sst [smem:[#allocation21_spill]] %s8619_s4 }
   0x3   :  { %8639 = sst [smem:[#allocation22_spill]] %s8621_s6 }
   0x4   :  { %8640 = sst [smem:[#allocation23_spill]] %s8622_s7 }
   0x5   :  { %12 = vsyncpa [#allocation5], 0 }
   0x6   :  { %14 = vsyncpa [#allocation5 + $0x1], 0 }
   0x7   :  { %15 = vsyncpa [#allocation8], 0 }
   0x8   :  { %16 = vsyncpa [#allocation6], 0 }
   0x9   :  { %18 = vsyncpa [#allocation6 + $0x1], 0  ;;  %s7374_s24 = smov 0   ;;  %s7376_s25 = smov 0  }
   0xa   :  { %s7378_s26 = smov 0   ;;  %s7380_s27 = smov 0  }
   0xb   :  { %s7382_s28 = smov 0   ;;  %s7384_s29 = smov 0  }
   0xc   :  { %s7386_s30 = smov 0   ;;  %s7388_s8 = smov 0  }
   0xd   :  { %s7390_s9 = smov 0   ;;  %s7392_s10 = smov 0  }
   0xe   :  { %s7394_s11 = smov 0  }
   0xf LB: > { %8641 = sst [smem:[#allocation14_spill]] %s7281_s24  ;;  %s5756_s12 = sadd.s32 4294967295, %s7321_s11   ;;  %s7321_s11 = sphi %s7394_s11, %s24_s11   ;;  %s7317_s10 = sphi %s7392_s10, %s8681_s10   ;;  %s7313_s9 = sphi %s7390_s9, %s8673_s9   ;;  %s7309_s8 = sphi %s7388_s8, %s8680_s8   ;;  %s7305_s30 = sphi %s7386_s30, %s8672_s30   ;;  %s7301_s29 = sphi %s7384_s29, %s8679_s29   ;;  %s7297_s28 = sphi %s7382_s28, %s8678_s28   ;;  %s7293_s27 = sphi %s7380_s27, %s8677_s27   ;;  %s7289_s26 = sphi %s7378_s26, %s8676_s26   ;;  %s7285_s25 = sphi %s7376_s25, %s8675_s25   ;;  %s7281_s24 = sphi %s7374_s24, %s8674_s24  }
  0x10   : > { %8642 = sst [smem:[#allocation15_spill]] %s7309_s8  ;;  %s5757_s13 = sadd.s32 4294967294, %s7321_s11  }
  0x11   : > { %8643 = sst [smem:[#allocation16_spill]] %s7313_s9  ;;  %p56_p0 = scmp.ne.s32.totalorder %s7297_s28, %s7293_s27 }
  0x12   : > { %p7430_p1 = scmp.eq.s32.totalorder %s5756_s12, 0  ;;  %p207_p2 = scmp.ne.s32.totalorder %s7289_s26, %s7285_s25 }
  0x13   : > { %p208_p4 = scmp.eq.s32.totalorder %s5756_s12, 3  ;;  %p213_p5 = scmp.ne.s32.totalorder %s7285_s25, %s7281_s24 }
  0x14   : > { %s8644_s14 = scalar_select %p7430_p1, 1, 0 }
  0x15   : > { %p7439_p3 = por %p7430_p1, %p56_p0  ;;  %p214_p6 = scmp.eq.s32.totalorder %s5757_s13, 3 }
  0x16   : > { %p7445_p7 = por %p208_p4, %p207_p2  ;;  %p5758_p8 = scmp.ge.s32.totalorder %s7321_s11, 1 }
  0x17   : > { %s8645_s16 = scalar_select %p7439_p3, 1, 0 }
  0x18   : > { %s8646_s17 = scalar_select %p7445_p7, 1, 0 }
  0x19   : > { %p7450_p9 = por %p214_p6, %p213_p5  ;;  %p221_p10 = scmp.lt.s32.totalorder %s7321_s11, 5 }
  0x1a   : > { %8647 = sst [smem:[#allocation17_spill]] %s8646_s17  ;;  %s7323_s20 = smov [#allocation7]  }
  0x1b   : > { %s8648_s18 = scalar_select %p7450_p9, 1, 0 }
  0x1c   : > { %p7455_p11 = pnand %p5758_p8, %p221_p10  ;;  %s233_s21 = sshll.u32 %s7323_s20, 4  ;;  %s234_s21 = int_to_ptr.vmem [resolvable:$true] %s233_s21 }
  0x1d   : > { %8649 = sst [smem:[#allocation18_spill]] %s8648_s18  ;;  %s7324_s23 = smov [#allocation9]  }
  0x1e   : > { %s8650_s19 = scalar_select %p7455_p11, 1, 0 }
  0x1f   : > { %p6806_p12 = pneg %p7455_p11  ;;  %s252_s27 = sshll.u32 %s7324_s23, 4  ;;  %s7467_s27 = int_to_ptr.vmem [resolvable:$true] %s252_s27 }
  0x20   : > { %s8652_s1 = sld [smem:[#allocation20_spill]] }
  0x21   : > { %p7463_p13 = pnand %p6806_p12, %p7430_p1 }
  0x23   : > { %p7111_p2 = pneg %p7463_p13 }
  0x26   : > { %s7109_s15 = scalar_lea.hbm %s8652_s1, 9216 }
  0x27   : > { %p7110_p0 = scmp.ne.s32.totalorder %s8652_s1, %s7109_s15  ;;  %p7116_p6 = scmp.lt.u32.totalorder %s7109_s15, %s8652_s1 }
  0x29   : > { %p7112_p4 = pnand %p7111_p2, %p7110_p0 }
  0x2b   : > { %p7113_p5 = pneg %p7112_p4 }
  0x2d   : > { %p7118_p8 = pnand %p7116_p6, %p7113_p5 }
  0x2f   : > { %7121 = shalt.err (!%p7118_p8)
}
  0x30   : > { %s7122_s23 = scalar_lea.vmem %s234_s21, 9216  ;;  %p7130_p7 = scmp.lt.s32.totalorder %s234_s21, %s234_s21 }
  0x31   : > { %p7123_p10 = scmp.ne.s32.totalorder %s234_s21, %s7122_s23  ;;  %p7131_p1 = scmp.lt.s32.totalorder %s7122_s23, %s7122_s23 }
  0x33   : > { %p7125_p12 = pnand %p7123_p10, %p7111_p2  ;;  %p7132_p3 = por %p7131_p1, %p7130_p7 }
  0x35   : > { %p7126_p9 = pneg %p7125_p12 }
  0x37   : > { %p7133_p11 = pnand %p7132_p3, %p7126_p9 }
  0x39   : > { %7136 = shalt.err (!%p7133_p11)
}
  0x3a   : > { %s8633_s18 = smov 64   ;;  %s8634_s12 = smov 4  }
  0x3b   : > { %6809 = dma.hbm_to_vmem [thread:$0]  (!%p7463_p13), %s8652_s1, 9216, %s234_s21, [#allocation8], %s8633_s18, %s8633_s18, %s8634_s12  }
  0x3c   : > { %s8653_s4 = sld [smem:[#allocation21_spill]] }
  0x42   : > { %s7137_s20 = scalar_lea.hbm %s8653_s4, 9216 }
  0x43   : > { %p7138_p1 = scmp.ne.s32.totalorder %s8653_s4, %s7137_s20  ;;  %p7144_p9 = scmp.lt.u32.totalorder %s7137_s20, %s8653_s4 }
  0x45   : > { %p7140_p3 = pnand %p7138_p1, %p7111_p2 }
  0x47   : > { %p7141_p7 = pneg %p7140_p3 }
  0x49   : > { %p7146_p11 = pnand %p7144_p9, %p7141_p7 }
  0x4b   : > { %7149 = shalt.err (!%p7146_p11)
}
  0x4c   : > { %s7150_s21 = scalar_lea.vmem %s7467_s27, 9216  ;;  %p7158_p6 = scmp.lt.s32.totalorder %s7467_s27, %s7467_s27 }
  0x4d   : > { %p7151_p0 = scmp.ne.s32.totalorder %s7467_s27, %s7150_s21  ;;  %p7159_p8 = scmp.lt.s32.totalorder %s7150_s21, %s7150_s21 }
  0x4f   : > { %p7153_p4 = pnand %p7151_p0, %p7111_p2  ;;  %p7160_p10 = por %p7159_p8, %p7158_p6 }
  0x51   : > { %p7154_p5 = pneg %p7153_p4 }
  0x53   : > { %p7161_p12 = pnand %p7160_p10, %p7154_p5 }
  0x55   : > { %7164 = shalt.err (!%p7161_p12)
}
  0x56   : > { %6812 = dma.hbm_to_vmem [thread:$0]  (!%p7463_p13), %s8653_s4, 9216, %s7467_s27, [#allocation8], %s8633_s18, %s8633_s18, %s8634_s12  }
  0x57   : > { %s33_s17 = sadd.s32 1, %s7313_s9  ;;  %s36_s22 = sadd.s32 1, %s7317_s10 }
  0x58   : > { %p34_p2 = scmp.ge.s32.totalorder %s33_s17, 2  ;;  %s43_s7 = sadd.s32 1, %s7301_s29 }
  0x59   : > { %p50_p1 = scmp.ne.s32.totalorder %s7301_s29, %s7297_s28  ;;  %p51_p3 = scmp.eq.s32.totalorder %s7321_s11, 0 }
  0x5a   : > { %s8683_s17 = smov (%p34_p2, %s33_s17), 0  ;;  %s8685_s22 = smov (!%p34_p2, %s36_s22), %s7317_s10 }
  0x5b   : > { %8654 = sst [smem:[#allocation19_spill]] %s8683_s17  ;;  %p7531_p7 = por %p51_p3, %p50_p1 }
  0x5c   : > { %s193_s15 = ssub.s32 %s7313_s9, %s8683_s17  ;;  %p38_p13 = scmp.ge.s32.totalorder %s8685_s22, 2 }
  0x5d   : > { %p6823_p9 = scmp.lt.s32.totalorder %s7321_s11, 4  ;;  %s272_s27 = sand.u32 1, %s7301_s29  }
  0x5e   : > { %s6063_s13 = sshll.u32 %s7317_s10, 11  ;;  %s8687_s22 = smov (%p38_p13, %s8685_s22), 0 }
  0x5f   : > { %s5762_s20 = sshll.u32 %s272_s27, 7  ;;  %s40_s23 = ssub.s32 %s7317_s10, %s8687_s22 }
  0x60   : > { %p41_p11 = scmp.eq.s32.totalorder %s40_s23, 0  ;;  %s194_s21 = sor.u32 %s193_s15, %s40_s23 }
  0x61   : > { %p195_p0 = scmp.eq.s32.totalorder %s194_s21, 0  ;;  %s7547_s18 = scalar_lea.hbm %s8615_s0, %s6063_s13 }
  0x62   : > { %s7550_s12 = scalar_select %p41_p11, %s7301_s29, %s43_s7  }
  0x63   : > { %s8656_s1 = sadd.s32 1, %s7289_s26  ;;  %s276_s17 = scalar_lea.vmem [#allocation4], %s5762_s20 }
  0x64   : > { %s7555_s4 = scalar_select %p195_p0, %s7289_s26, %s8656_s1  }
  0x65   : > { %s283_s9 = sshll.u32 %s276_s17, 4  ;;  %p7561_p4 = pnand %p6823_p9, %p7531_p7  ;;  %s7565_s9 = int_to_ptr.vmem [resolvable:$true] %s283_s9 }
  0x66   : > { %s7567_s13 = scalar_lea.sflag [#allocation5], %s272_s27  ;;  %s7165_s7 = scalar_lea.hbm %s7547_s18, 2048 }
  0x67   : > { %p7166_p5 = scmp.ne.s32.totalorder %s7547_s18, %s7165_s7  ;;  %p7167_p6 = pneg %p7561_p4 }
  0x68   : > { %s7170_s24 = scalar_lea.hbm %s8615_s0, 4096  ;;  %p7171_p12 = scmp.lt.u32.totalorder %s7547_s18, %s8615_s0 }
  0x69   : > { %p7168_p8 = pnand %p7167_p6, %p7166_p5  ;;  %p7172_p2 = scmp.lt.u32.totalorder %s7170_s24, %s7165_s7 }
  0x6a   : > { %p7174_p3 = scmp.lt.u32.totalorder %s7165_s7, %s7547_s18 }
  0x6b   : > { %p7169_p10 = pneg %p7168_p8  ;;  %p7173_p1 = por %p7172_p2, %p7171_p12 }
  0x6d   : > { %p7175_p7 = por %p7174_p3, %p7173_p1 }
  0x6f   : > { %p7176_p13 = pnand %p7175_p7, %p7169_p10 }
  0x71   : > { %7179 = shalt.err (!%p7176_p13)
}
  0x72   : > { %s7180_s27 = scalar_lea.vmem %s7565_s9, 2048  ;;  %s7327_s21 = smov [#allocation4]  }
  0x73   : > { %p7181_p9 = scmp.ne.s32.totalorder %s7565_s9, %s7180_s27  ;;  %s7185_s6 = sshll.u32 %s7327_s21, 4  ;;  %s7186_s6 = int_to_ptr.vmem [resolvable:$false] %s7185_s6 }
  0x74   : > { %s7187_s8 = scalar_lea.vmem %s7186_s6, 4096  ;;  %p7188_p5 = scmp.lt.s32.totalorder %s7565_s9, %s7186_s6 }
  0x75   : > { %p7183_p11 = pnand %p7181_p9, %p7167_p6  ;;  %p7189_p8 = scmp.lt.s32.totalorder %s7187_s8, %s7180_s27 }
  0x77   : > { %p7184_p0 = pneg %p7183_p11  ;;  %p7190_p12 = por %p7189_p8, %p7188_p5 }
  0x79   : > { %p7191_p2 = pnand %p7190_p12, %p7184_p0 }
  0x7b   : > { %7194 = shalt.err (!%p7191_p2)
}
  0x7c   : > { %s8658_s7 = smov 4   ;;  %s8659_s1 = smov 64  }
  0x7d   : > { %6816 = dma.hbm_to_vmem [thread:$0]  (!%p7561_p4), %s7547_s18, 2048, %s7565_s9, %s7567_s13, %s8659_s1, %s8659_s1, %s8658_s7  }
  0x7e   : > { %p8660_p6 = scmp.ne.s32.totalorder %s8650_s19, 0 }
  0x7f   : > { %s297_s17 = sand.u32 (!%p8660_p6), 1, %s7297_s28   ;;  %p8661_p10 = scmp.ne.s32.totalorder (!%p8660_p6), %s8645_s16, 0 }
  0x80   : > { %295 = sbr.rel (%p8660_p6) target bundleno = 1078 (0x436), region = 48  ;;  %s5766_s24 = sshll.u32 (!%p8660_p6), %s297_s17, 7 }
  0x81   : > { %s298_s20 = scalar_lea.sflag (!%p8660_p6), [#allocation5], %s297_s17  ;;  %s7601_s23 = scalar_lea.vmem (!%p8660_p6), [#allocation4], %s5766_s24 }
  0x87   : > { %7268 = dma.done.wait (%p8661_p10), %s298_s20, 2048  }
  0x88   : > { %7270 = vsyncadd (%p8661_p10), %s298_s20, 4294965248  ;;  %p8662_p1 = scmp.ne.s32.totalorder %s8644_s14, 0 }
  0x8a   : > { %7272 = dma.done.wait (%p8662_p1), [#allocation8], 18432  }
  0x8b   : > { %7274 = vsyncadd (%p8662_p1), [#allocation8], 4294948864  ;;  %s337_s9 = sand.u32 1, %s7285_s25   ;;  %p5770_p4 = scmp.ne.s32.totalorder %s7305_s30, 0 }
  0x8c   : > { %s5769_s19 = sshll.u32 %s337_s9, 6  ;;  %v6924_v0 = vld [vmem:[%s7601_s23] ss:$0 sps:$4 sm:$0xff] (!%p5770_p4)   ;;  %v7328_v1 = vmov (!%p5770_p4), 0   ;;  %v6925_v2 = vld [vmem:[%s7601_s23 + $0x4] ss:$0 sps:$4 sm:$0xff] (!%p5770_p4)  }
  0x8d   : > { %s7614_s18 = scalar_lea.vmem [#allocation10], %s5769_s19  ;;  %345 = sbr.rel (%p5770_p4) target bundleno = 187 (0xbb), region = 64  ;;  %346 = vst [vmem:[#allocation2] sm:$0xff] (!%p5770_p4), %v7328_v1  ;;  %347 = vst [vmem:[#allocation2 + $0x8] sm:$0xff] (!%p5770_p4), %v7328_v1  ;;  %v6926_v3 = vld [vmem:[%s7601_s23 + $0x8] ss:$0 sps:$4 sm:$0xff] (!%p5770_p4)  }
  0x8e   : > { %348 = vst [vmem:[#allocation2 + $0x10] sm:$0xff] (!%p5770_p4), %v7328_v1  ;;  %349 = vst [vmem:[#allocation2 + $0x18] sm:$0xff] (!%p5770_p4), %v7328_v1  ;;  %v6927_v4 = vld [vmem:[%s7601_s23 + $0xc] ss:$0 sps:$4 sm:$0xff] (!%p5770_p4)   ;;  %v6928_v5 = vld [vmem:[%s7601_s23 + $0x10] ss:$0 sps:$4 sm:$0xff] (!%p5770_p4)  }
  0x8f   : > { %351 = vst [vmem:[#allocation2 + $0x120] sm:$0xff] (!%p5770_p4), %v7328_v1  ;;  %352 = vst [vmem:[#allocation2 + $0x128] sm:$0xff] (!%p5770_p4), %v7328_v1  ;;  %v6929_v6 = vld [vmem:[%s7601_s23 + $0x14] ss:$0 sps:$4 sm:$0xff] (!%p5770_p4)   ;;  %v6930_v7 = vld [vmem:[%s7601_s23 + $0x18] ss:$0 sps:$4 sm:$0xff] (!%p5770_p4)  }
  0x90   : > { %353 = vst [vmem:[#allocation2 + $0x130] sm:$0xff] (!%p5770_p4), %v7328_v1  ;;  %354 = vst [vmem:[#allocation2 + $0x138] sm:$0xff] (!%p5770_p4), %v7328_v1  ;;  %v6931_v8 = vld [vmem:[%s7601_s23 + $0x1c] ss:$0 sps:$4 sm:$0xff] (!%p5770_p4)   ;;  %v6932_v9 = vld [vmem:[%s7601_s23 + $0x20] ss:$0 sps:$4 sm:$0xff] (!%p5770_p4)  }
  0x91   : > { %356 = vst [vmem:[#allocation2 + $0x20] sm:$0xf] (!%p5770_p4), %v7328_v1  ;;  %357 = vst [vmem:[#allocation2 + $0x30] sm:$0xf] (!%p5770_p4), %v7328_v1  ;;  %v6933_v10 = vld [vmem:[%s7601_s23 + $0x24] ss:$0 sps:$4 sm:$0xff] (!%p5770_p4)  }
  0x92   : > { %358 = vst [vmem:[#allocation2 + $0x40] sm:$0xf] (!%p5770_p4), %v7328_v1  ;;  %359 = vst [vmem:[#allocation2 + $0x50] sm:$0xf] (!%p5770_p4), %v7328_v1  ;;  %v6934_v11 = vld [vmem:[%s7601_s23 + $0x28] ss:$0 sps:$4 sm:$0xff] (!%p5770_p4)  }
  0x93   : > { %360 = vst [vmem:[#allocation2 + $0x60] sm:$0xf] (!%p5770_p4), %v7328_v1  ;;  %361 = vst [vmem:[#allocation2 + $0x70] sm:$0xf] (!%p5770_p4), %v7328_v1  ;;  %v6935_v12 = vld [vmem:[%s7601_s23 + $0x2c] ss:$0 sps:$4 sm:$0xff] (!%p5770_p4)  }
  0x94   : > { %362 = vst [vmem:[#allocation2 + $0x80] sm:$0xf] %v7328_v1  ;;  %363 = vst [vmem:[#allocation2 + $0x90] sm:$0xf] %v7328_v1  ;;  %v6936_v13 = vld [vmem:[%s7601_s23 + $0x30] ss:$0 sps:$4 sm:$0xff]  }
  0x95   : > { %364 = vst [vmem:[#allocation2 + $0xa0] sm:$0xf] %v7328_v1  ;;  %365 = vst [vmem:[#allocation2 + $0xb0] sm:$0xf] %v7328_v1  ;;  %v6937_v14 = vld [vmem:[%s7601_s23 + $0x34] ss:$0 sps:$4 sm:$0xff]  }
  0x96   : > { %366 = vst [vmem:[#allocation2 + $0xc0] sm:$0xf] %v7328_v1  ;;  %367 = vst [vmem:[#allocation2 + $0xd0] sm:$0xf] %v7328_v1  ;;  %v6938_v15 = vld [vmem:[%s7601_s23 + $0x38] ss:$0 sps:$4 sm:$0xff]  }
  0x97   : > { %368 = vst [vmem:[#allocation2 + $0xe0] sm:$0xf] %v7328_v1  ;;  %369 = vst [vmem:[#allocation2 + $0xf0] sm:$0xf] %v7328_v1  ;;  %v6939_v16 = vld [vmem:[%s7601_s23 + $0x3c] ss:$0 sps:$4 sm:$0xff]  }
  0x98   : > { %370 = vst [vmem:[#allocation2 + $0x100] sm:$0xf] %v7328_v1  ;;  %371 = vst [vmem:[#allocation2 + $0x110] sm:$0xf] %v7328_v1  ;;  %v6940_v17 = vld [vmem:[%s7601_s23 + $0x40] ss:$0 sps:$4 sm:$0xff]  }
  0x99   : > { %372 = vst [vmem:[#allocation2 + $0x28] sm:$0xf0] %v7328_v1  ;;  %373 = vst [vmem:[#allocation2 + $0x38] sm:$0xf0] %v7328_v1  ;;  %v6941_v18 = vld [vmem:[%s7601_s23 + $0x44] ss:$0 sps:$4 sm:$0xff]  }
  0x9a   : > { %374 = vst [vmem:[#allocation2 + $0x48] sm:$0xf0] %v7328_v1  ;;  %375 = vst [vmem:[#allocation2 + $0x58] sm:$0xf0] %v7328_v1  ;;  %v6942_v19 = vld [vmem:[%s7601_s23 + $0x48] ss:$0 sps:$4 sm:$0xff]  }
  0x9b   : > { %376 = vst [vmem:[#allocation2 + $0x68] sm:$0xf0] %v7328_v1  ;;  %377 = vst [vmem:[#allocation2 + $0x78] sm:$0xf0] %v7328_v1  ;;  %v6943_v20 = vld [vmem:[%s7601_s23 + $0x4c] ss:$0 sps:$4 sm:$0xff]  }
  0x9c   : > { %378 = vst [vmem:[#allocation2 + $0x88] sm:$0xf0] %v7328_v1  ;;  %379 = vst [vmem:[#allocation2 + $0x98] sm:$0xf0] %v7328_v1  ;;  %v6944_v21 = vld [vmem:[%s7601_s23 + $0x50] ss:$0 sps:$4 sm:$0xff]  }
  0x9d   : > { %380 = vst [vmem:[#allocation2 + $0xa8] sm:$0xf0] %v7328_v1  ;;  %381 = vst [vmem:[#allocation2 + $0xb8] sm:$0xf0] %v7328_v1  ;;  %v6945_v22 = vld [vmem:[%s7601_s23 + $0x54] ss:$0 sps:$4 sm:$0xff]  }
  0x9e   : > { %382 = vst [vmem:[#allocation2 + $0xc8] sm:$0xf0] %v7328_v1  ;;  %383 = vst [vmem:[#allocation2 + $0xd8] sm:$0xf0] %v7328_v1  ;;  %v6946_v23 = vld [vmem:[%s7601_s23 + $0x58] ss:$0 sps:$4 sm:$0xff]  }
  0x9f   : > { %384 = vst [vmem:[#allocation2 + $0xe8] sm:$0xf0] %v7328_v1  ;;  %385 = vst [vmem:[#allocation2 + $0xf8] sm:$0xf0] %v7328_v1  ;;  %v6947_v24 = vld [vmem:[%s7601_s23 + $0x5c] ss:$0 sps:$4 sm:$0xff]  }
  0xa0   : > { %386 = vst [vmem:[#allocation2 + $0x108] sm:$0xf0] %v7328_v1  ;;  %387 = vst [vmem:[#allocation2 + $0x118] sm:$0xf0] %v7328_v1  ;;  %v6948_v25 = vld [vmem:[%s7601_s23 + $0x60] ss:$0 sps:$4 sm:$0xff]  }
  0xa1   : > { %580 = vst [vmem:[#allocation3] sm:$0xf] %v7328_v1  ;;  %581 = vst [vmem:[#allocation3 + $0x10] sm:$0xf] %v7328_v1  ;;  %v6949_v26 = vld [vmem:[%s7601_s23 + $0x64] ss:$0 sps:$4 sm:$0xff]  }
  0xa2   : > { %582 = vst [vmem:[#allocation3 + $0x20] sm:$0xf] %v7328_v1  ;;  %583 = vst [vmem:[#allocation3 + $0x30] sm:$0xf] %v7328_v1  ;;  %v6950_v27 = vld [vmem:[%s7601_s23 + $0x68] ss:$0 sps:$4 sm:$0xff]  }
  0xa3   : > { %584 = vst [vmem:[#allocation3 + $0x40] sm:$0xf] %v7328_v1  ;;  %585 = vst [vmem:[#allocation3 + $0x50] sm:$0xf] %v7328_v1  ;;  %v6951_v28 = vld [vmem:[%s7601_s23 + $0x6c] ss:$0 sps:$4 sm:$0xff]  }
  0xa4   : > { %586 = vst [vmem:[#allocation3 + $0x60] sm:$0xf] %v7328_v1  ;;  %587 = vst [vmem:[#allocation3 + $0x70] sm:$0xf] %v7328_v1  ;;  %v6952_v29 = vld [vmem:[%s7601_s23 + $0x70] ss:$0 sps:$4 sm:$0xff]  }
  0xa5   : > { %588 = vst [vmem:[#allocation3 + $0x80] sm:$0xf] %v7328_v1  ;;  %589 = vst [vmem:[#allocation3 + $0x90] sm:$0xf] %v7328_v1  ;;  %v6953_v30 = vld [vmem:[%s7601_s23 + $0x74] ss:$0 sps:$4 sm:$0xff]  }
  0xa6   : > { %590 = vst [vmem:[#allocation3 + $0x8] sm:$0xf0] %v7328_v1  ;;  %591 = vst [vmem:[#allocation3 + $0x18] sm:$0xf0] %v7328_v1  ;;  %v6954_v31 = vld [vmem:[%s7601_s23 + $0x78] ss:$0 sps:$4 sm:$0xff]  }
  0xa7   : > { %592 = vst [vmem:[#allocation3 + $0x28] sm:$0xf0] %v7328_v1  ;;  %593 = vst [vmem:[#allocation3 + $0x38] sm:$0xf0] %v7328_v1  ;;  %v6955_v32 = vld [vmem:[%s7601_s23 + $0x7c] ss:$0 sps:$4 sm:$0xff]  }
  0xa8   : > { %594 = vst [vmem:[#allocation3 + $0x48] sm:$0xf0] %v7328_v1  ;;  %595 = vst [vmem:[#allocation3 + $0x58] sm:$0xf0] %v7328_v1 }
  0xa9   : > { %596 = vst [vmem:[#allocation3 + $0x68] sm:$0xf0] %v7328_v1  ;;  %597 = vst [vmem:[#allocation3 + $0x78] sm:$0xf0] %v7328_v1 }
  0xaa   : > { %598 = vst [vmem:[#allocation3 + $0x88] sm:$0xf0] %v7328_v1  ;;  %599 = vst [vmem:[#allocation3 + $0x98] sm:$0xf0] %v7328_v1 }
  0xab   : > { %548 = vst [vmem:[#allocation2 + $0x20] sm:$0xf0] %v6924_v0  ;;  %549 = vst [vmem:[#allocation2 + $0x28] sm:$0xf] %v6925_v2 }
  0xac   : > { %550 = vst [vmem:[#allocation2 + $0x30] sm:$0xf0] %v6926_v3  ;;  %551 = vst [vmem:[#allocation2 + $0x38] sm:$0xf] %v6927_v4 }
  0xad   : > { %552 = vst [vmem:[#allocation2 + $0x40] sm:$0xf0] %v6928_v5  ;;  %553 = vst [vmem:[#allocation2 + $0x48] sm:$0xf] %v6929_v6 }
  0xae   : > { %554 = vst [vmem:[#allocation2 + $0x50] sm:$0xf0] %v6930_v7  ;;  %555 = vst [vmem:[#allocation2 + $0x58] sm:$0xf] %v6931_v8 }
  0xaf   : > { %556 = vst [vmem:[#allocation2 + $0x60] sm:$0xf0] %v6932_v9  ;;  %557 = vst [vmem:[#allocation2 + $0x68] sm:$0xf] %v6933_v10 }
  0xb0   : > { %558 = vst [vmem:[#allocation2 + $0x70] sm:$0xf0] %v6934_v11  ;;  %559 = vst [vmem:[#allocation2 + $0x78] sm:$0xf] %v6935_v12 }
  0xb1   : > { %560 = vst [vmem:[#allocation2 + $0x80] sm:$0xf0] %v6936_v13  ;;  %561 = vst [vmem:[#allocation2 + $0x88] sm:$0xf] %v6937_v14 }
  0xb2   : > { %562 = vst [vmem:[#allocation2 + $0x90] sm:$0xf0] %v6938_v15  ;;  %563 = vst [vmem:[#allocation2 + $0x98] sm:$0xf] %v6939_v16 }
  0xb3   : > { %564 = vst [vmem:[#allocation2 + $0xa0] sm:$0xf0] %v6940_v17  ;;  %565 = vst [vmem:[#allocation2 + $0xa8] sm:$0xf] %v6941_v18 }
  0xb4   : > { %566 = vst [vmem:[#allocation2 + $0xb0] sm:$0xf0] %v6942_v19  ;;  %567 = vst [vmem:[#allocation2 + $0xb8] sm:$0xf] %v6943_v20 }
  0xb5   : > { %568 = vst [vmem:[#allocation2 + $0xc0] sm:$0xf0] %v6944_v21  ;;  %569 = vst [vmem:[#allocation2 + $0xc8] sm:$0xf] %v6945_v22 }
  0xb6   : > { %570 = vst [vmem:[#allocation2 + $0xd0] sm:$0xf0] %v6946_v23  ;;  %571 = vst [vmem:[#allocation2 + $0xd8] sm:$0xf] %v6947_v24 }
  0xb7   : > { %572 = vst [vmem:[#allocation2 + $0xe0] sm:$0xf0] %v6948_v25  ;;  %573 = vst [vmem:[#allocation2 + $0xe8] sm:$0xf] %v6949_v26 }
  0xb8   : > { %574 = vst [vmem:[#allocation2 + $0xf0] sm:$0xf0] %v6950_v27  ;;  %575 = vst [vmem:[#allocation2 + $0xf8] sm:$0xf] %v6951_v28 }
  0xb9   : > { %576 = vst [vmem:[#allocation2 + $0x100] sm:$0xf0] %v6952_v29  ;;  %577 = vst [vmem:[#allocation2 + $0x108] sm:$0xf] %v6953_v30 }
  0xba   : > { %578 = vst [vmem:[#allocation2 + $0x110] sm:$0xf0] %v6954_v31  ;;  %579 = vst [vmem:[#allocation2 + $0x118] sm:$0xf] %v6955_v32 }
  0xbb PF: > { %v6956_v33 = vld [vmem:[#allocation7 + $0x40] sm:$0xff]   ;;  %v6960_v37 = vld [vmem:[#allocation7 + $0x48] sm:$0xff]   ;;  %v6964_v41 = vld [vmem:[#allocation7 + $0x50] sm:$0xff]   ;;  %s6065_s14 = sshll.u32 %s7305_s30, 7  ;;  %vm835_vm0 = vcmask 1043456  }
  0xbc   : > { %v6957_v34 = vld [vmem:[#allocation7 + $0xc0] sm:$0xff]   ;;  %6132 = vmatprep.subr.bf16.mxu0 %v6956_v33  ;;  %v6961_v38 = vld [vmem:[#allocation7 + $0xc8] sm:$0xff]   ;;  %v6965_v42 = vld [vmem:[#allocation7 + $0xd0] sm:$0xff]   ;;  %s7652_s16 = scalar_lea.vmem [#allocation2], %s6065_s14  ;;  %vm624_vm1 = vsmask.f32 4352 }
  0xbd   : > { %v6958_v35 = vld [vmem:[#allocation7] sm:$0xff]   ;;  %6208 = vmatprep.subr.bf16.mxu1 %v6957_v34  ;;  %v6962_v39 = vld [vmem:[#allocation7 + $0x8] sm:$0xff]   ;;  %v6966_v43 = vld [vmem:[#allocation7 + $0x10] sm:$0xff]   ;;  %vm886_vm2 = vsmask.f32 3328 }
  0xbe   : > { %v6959_v36 = vld [vmem:[#allocation7 + $0x80] sm:$0xff]   ;;  %6133 = vmatpush3.bf16.msra.mxu0 %v6958_v35  ;;  %v6963_v40 = vld [vmem:[#allocation7 + $0x88] sm:$0xff]   ;;  %v6967_v44 = vld [vmem:[#allocation7 + $0x90] sm:$0xff]  }
  0xbf   : > { %6209 = vmatpush3.bf16.msra.mxu1 %v6959_v36  ;;  %6134 = vmatprep.subr.bf16.mxu0 %v6960_v37  ;;  %v6968_v45 = vld [vmem:[#allocation7 + $0x58] sm:$0xff]   ;;  %v6972_v49 = vld [vmem:[#allocation7 + $0x60] sm:$0xff]   ;;  %v6976_v53 = vld [vmem:[#allocation7 + $0x68] sm:$0xff]  }
  0xc0   : > { %6210 = vmatprep.subr.bf16.mxu1 %v6961_v38  ;;  %v6969_v46 = vld [vmem:[#allocation7 + $0xd8] sm:$0xff]   ;;  %v6973_v50 = vld [vmem:[#allocation7 + $0xe0] sm:$0xff]   ;;  %v6977_v54 = vld [vmem:[#allocation7 + $0xe8] sm:$0xff]  }
  0xc1   : > { %v6970_v47 = vld [vmem:[#allocation7 + $0x18] sm:$0xff]   ;;  %v6974_v51 = vld [vmem:[#allocation7 + $0x20] sm:$0xff]   ;;  %v6978_v55 = vld [vmem:[#allocation7 + $0x28] sm:$0xff]  }
  0xc2   : > { %6135 = vmatpush3.bf16.msra.mxu0 %v6962_v39  ;;  %v6971_v48 = vld [vmem:[#allocation7 + $0x98] sm:$0xff]   ;;  %v6975_v52 = vld [vmem:[#allocation7 + $0xa0] sm:$0xff]   ;;  %v6979_v56 = vld [vmem:[#allocation7 + $0xa8] sm:$0xff]  }
  0xc3   : > { %6211 = vmatpush3.bf16.msra.mxu1 %v6963_v40  ;;  %6136 = vmatprep.subr.bf16.mxu0 %v6964_v41  ;;  %v6980_v57 = vld [vmem:[#allocation7 + $0x70] sm:$0xff]   ;;  %v6984_v61 = vld [vmem:[#allocation7 + $0x78] sm:$0xff]   ;;  %v605_v1 = vld [vmem:[%s7652_s16 + $0x8] sm:$0xf] }
  0xc4   : > { %6212 = vmatprep.subr.bf16.mxu1 %v6965_v42  ;;  %v6981_v58 = vld [vmem:[#allocation7 + $0xf0] sm:$0xff]   ;;  %v6985_v62 = vld [vmem:[#allocation7 + $0xf8] sm:$0xff]   ;;  %v805_v2 = vld [vmem:[%s7652_s16] sm:$0xf0]  ;;  %v837_v4 = vrot.slane %v605_v1, 4  ;;  %v634_v15 = vshrl.u32 %v605_v1, 16 }
  0xc5   : > { %v6982_v59 = vld [vmem:[#allocation7 + $0x30] sm:$0xff]   ;;  %v6986_v63 = vld [vmem:[#allocation7 + $0x38] sm:$0xff]   ;;  %v836_v3 = vrot.slane %v805_v2, 4  ;;  %v604_v11 = vld [vmem:[%s7652_s16] sm:$0xf8]  ;;  %v637_v25 = vshll.u32 %v605_v1, 16 }
  0xc6   : > { %6137 = vmatpush3.bf16.msra.mxu0 %v6966_v43  ;;  %v6983_v60 = vld [vmem:[#allocation7 + $0xb0] sm:$0xff]   ;;  %v6987_v0 = vld [vmem:[#allocation7 + $0xb8] sm:$0xff]   ;;  %v626_v13 = vshrl.u32 %v604_v11, 16  ;;  %v629_v14 = vshll.u32 %v604_v11, 16  ;;  %v876_v16 = vld [vmem:[%s7652_s16 + $0x8] sm:$0x1f] }
  0xc7   : > { %6213 = vmatpush3.bf16.msra.mxu1 %v6967_v44  ;;  %6138 = vmatprep.subr.bf16.mxu0 %v6968_v45  ;;  %v5808_v5 = vld [vmem:[%s7652_s16 + $0x10] sm:$0xf8]  ;;  %v5809_v6 = vld [vmem:[%s7652_s16 + $0x18] sm:$0xf]  ;;  %v838_v12 = vsel %vm835_vm0, %v836_v3, %v837_v4  ;;  %v6988_v17 = vld [vmem:[#allocation7 + $0x140] sm:$0xff]   ;;  %v636_v24 = vrot.slane %v634_v15, 3 }
  0xc8   : > { %6214 = vmatprep.subr.bf16.mxu1 %v6969_v46  ;;  %v1092_v7 = vshrl.u32 %v5808_v5, 16  ;;  %v1095_v8 = vshll.u32 %v5808_v5, 16  ;;  %v1100_v9 = vshrl.u32 %v5809_v6, 16  ;;  %v1103_v10 = vshll.u32 %v5809_v6, 16  ;;  %2603 = vmatprep.mubr.bf16.mxu0 %v838_v12  ;;  %v6989_v33 = vld [vmem:[#allocation7 + $0x100] sm:$0xff]   ;;  %v6990_v44 = vld [vmem:[#allocation7 + $0x148] sm:$0xff]  }
  0xc9   : > { %v628_v22 = vrot.slane %v626_v13, 3  ;;  %v631_v23 = vrot.slane %v629_v14, 4  ;;  %v888_v28 = vshrl.u32 %v805_v2, 16  ;;  %v639_v30 = vrot.slane %v637_v25, 4  ;;  %v607_v37 = vld [vmem:[%s7652_s16 + $0x18] sm:$0xf] }
  0xca   : > { %6139 = vmatpush3.bf16.msra.mxu0 %v6970_v47  ;;  %v1094_v18 = vrot.slane %v1092_v7, 3  ;;  %v1097_v19 = vrot.slane %v1095_v8, 4  ;;  %v1102_v20 = vrot.slane %v1100_v9, 3  ;;  %v1105_v21 = vrot.slane %v1103_v10, 4  ;;  %v806_v38 = vld [vmem:[%s7652_s16 + $0x10] sm:$0xf0] }
  0xcb   : > { %6215 = vmatpush3.bf16.msra.mxu1 %v6971_v48  ;;  %6140 = vmatprep.subr.bf16.mxu0 %v6972_v49  ;;  %v632_v29 = vor.u32 %v631_v23, %v628_v22  ;;  %v891_v31 = vshll.u32 %v805_v2, 16  ;;  %v896_v32 = vshrl.u32 %v876_v16, 16  ;;  %v890_v35 = vrot.slane %v888_v28, 4  ;;  %v5810_v43 = vld [vmem:[%s7652_s16 + $0x20] sm:$0xf8]  ;;  %v6992_v9 = vld [vmem:[#allocation7 + $0x150] sm:$0xff]  }
  0xcc   : > { %6216 = vmatprep.subr.bf16.mxu1 %v6973_v50  ;;  %v1098_v26 = vor.u32 %v1097_v19, %v1094_v18  ;;  %v1106_v27 = vor.u32 %v1105_v21, %v1102_v20  ;;  %v899_v36 = vshll.u32 %v876_v16, 16  ;;  %v640_v39 = vor.u32 %v639_v30, %v636_v24  ;;  %v5811_v47 = vld [vmem:[%s7652_s16 + $0x28] sm:$0xf]  ;;  %v5812_v15 = vld [vmem:[%s7652_s16 + $0x30] sm:$0xf8] }
  0xcd   : > { %v893_v40 = vrot.slane %v891_v31, 5  ;;  %v898_v41 = vrot.slane %v896_v32, 4  ;;  %v839_v42 = vrot.slane %v806_v38, 4  ;;  %v840_v46 = vrot.slane %v607_v37, 4  ;;  %v609_v14 = vld [vmem:[%s7652_s16 + $0x28] sm:$0xf] }
  0xce   : > { %6141 = vmatpush3.bf16.msra.mxu0 %v6974_v51  ;;  %v1107_v34 = vsel %vm624_vm1, %v1098_v26, %v1106_v27  ;;  %v901_v45 = vrot.slane %v899_v36, 5  ;;  %v1109_v48 = vshrl.u32 %v5810_v43, 16  ;;  %v1112_v49 = vshll.u32 %v5810_v43, 16  ;;  %v807_v20 = vld [vmem:[%s7652_s16 + $0x20] sm:$0xf0]  ;;  %v6993_v27 = vld [vmem:[#allocation7 + $0x110] sm:$0xff]  }
  0xcf   : > { %6217 = vmatpush3.bf16.msra.mxu1 %v6975_v52  ;;  %6142 = vmatprep.subr.bf16.mxu0 %v6976_v53  ;;  %v641_v50 = vsel %vm624_vm1, %v632_v29, %v640_v39  ;;  %v894_v51 = vor.u32 %v893_v40, %v890_v35  ;;  %v1117_v52 = vshrl.u32 %v5811_v47, 16  ;;  %v1120_v53 = vshll.u32 %v5811_v47, 16  ;;  %v5813_v21 = vld [vmem:[%s7652_s16 + $0x38] sm:$0xf]  ;;  %v608_v26 = vld [vmem:[%s7652_s16 + $0x20] sm:$0xf8] }
  0xd0   : > { %6218 = vmatprep.subr.bf16.mxu1 %v6977_v54  ;;  %2716 = vmatprep.mubr.bf16.mxu1 %v1107_v34  ;;  %v606_v54 = vld [vmem:[%s7652_s16 + $0x10] sm:$0xf8]  ;;  %v651_v3 = vshrl.u32 %v607_v37, 16  ;;  %v654_v4 = vshll.u32 %v607_v37, 16  ;;  %v905_v8 = vshrl.u32 %v806_v38, 16  ;;  %v908_v12 = vshll.u32 %v806_v38, 16 }
  0xd1   : > { %v842_v25 = vrot.slane %v807_v20, 4  ;;  %v843_v29 = vrot.slane %v609_v14, 4  ;;  %v1126_v30 = vshrl.u32 %v5812_v15, 16  ;;  %v1129_v31 = vshll.u32 %v5812_v15, 16 }
  0xd2   : > { %6143 = vmatpush3.bf16.msra.mxu0 %v6978_v55  ;;  %v877_v55 = vld [vmem:[%s7652_s16 + $0x18] sm:$0x1f]  ;;  %v653_v10 = vrot.slane %v651_v3, 3  ;;  %v656_v11 = vrot.slane %v654_v4, 4  ;;  %v907_v18 = vrot.slane %v905_v8, 4  ;;  %v910_v23 = vrot.slane %v908_v12, 5 }
  0xd3   : > { %6219 = vmatpush3.bf16.msra.mxu1 %v6979_v56  ;;  %6144 = vmatprep.subr.bf16.mxu0 %v6980_v57  ;;  %v6991_v56 = vld [vmem:[#allocation7 + $0x108] sm:$0xff]   ;;  %v902_v57 = vor.u32 %v901_v45, %v898_v41  ;;  %v913_v13 = vshrl.u32 %v877_v55, 16  ;;  %v916_v19 = vshll.u32 %v877_v55, 16  ;;  %v1134_v34 = vshrl.u32 %v5813_v21, 16  ;;  %v6994_v55 = vld [vmem:[#allocation7 + $0x158] sm:$0xff]  }
  0xd4   : > { %6220 = vmatprep.subr.bf16.mxu1 %v6981_v58  ;;  %v841_v58 = vsel %vm835_vm0, %v839_v42, %v840_v46  ;;  %v657_v22 = vor.u32 %v656_v11, %v653_v10  ;;  %v1137_v35 = vshll.u32 %v5813_v21, 16  ;;  %v844_v37 = vsel %vm835_vm0, %v842_v25, %v843_v29  ;;  %v611_v4 = vld [vmem:[%s7652_s16 + $0x38] sm:$0xf]  ;;  %v610_v11 = vld [vmem:[%s7652_s16 + $0x30] sm:$0xf8] }
  0xd5   : > { %v903_v1 = vsel %vm886_vm2, %v894_v51, %v902_v57  ;;  %v915_v24 = vrot.slane %v913_v13, 4  ;;  %v918_v28 = vrot.slane %v916_v19, 5  ;;  %v1128_v38 = vrot.slane %v1126_v30, 3  ;;  %v5816_v29 = vld [vmem:[%s7652_s16 + $0x50] sm:$0xf8] }
  0xd6   : > { %6145 = vmatpush3.bf16.msra.mxu0 %v6982_v59  ;;  %v1111_v59 = vrot.slane %v1109_v48, 3  ;;  %v1131_v39 = vrot.slane %v1129_v31, 4  ;;  %v1136_v40 = vrot.slane %v1134_v34, 3  ;;  %v1139_v41 = vrot.slane %v1137_v35, 4  ;;  %v7697_v34 = vld [vmem:[%s7652_s16 + $0x40] sm:$0xf0] }
  0xd7   : > { %6221 = vmatpush3.bf16.msra.mxu1 %v6983_v60  ;;  %6146 = vmatprep.subr.bf16.mxu0 %v6984_v61  ;;  %v1114_v60 = vrot.slane %v1112_v49, 4  ;;  %v1119_v61 = vrot.slane %v1117_v52, 3  ;;  %v919_v36 = vor.u32 %v918_v28, %v915_v24  ;;  %v660_v42 = vshrl.u32 %v608_v26, 16  ;;  %v879_v24 = vld [vmem:[%s7652_s16 + $0x38] sm:$0x1f] }
  0xd8   : > { %6222 = vmatprep.subr.bf16.mxu1 %v6985_v62  ;;  %v1122_v62 = vrot.slane %v1120_v53, 4  ;;  %v663_v43 = vshll.u32 %v608_v26, 16  ;;  %v1132_v46 = vor.u32 %v1131_v39, %v1128_v38  ;;  %v668_v47 = vshrl.u32 %v609_v14, 16  ;;  %v7682_v53 = vld [vmem:[%s7652_s16 + $0x30] sm:$0xf0] }
  0xd9   : > { %v1115_v2 = vor.u32 %v1114_v60, %v1111_v59  ;;  %v671_v48 = vshll.u32 %v609_v14, 16  ;;  %v1140_v49 = vor.u32 %v1139_v41, %v1136_v40  ;;  %v922_v52 = vshrl.u32 %v807_v20, 16  ;;  %v5815_v60 = vld [vmem:[%s7652_s16 + $0x48] sm:$0xf]  ;;  %v5817_v35 = vld [vmem:[%s7652_s16 + $0x58] sm:$0xf] }
  0xda   : > { %6147 = vmatpush3.bf16.msra.mxu0 %v6986_v63  ;;  %v643_v63 = vshrl.u32 %v606_v54, 16  ;;  %v1123_v5 = vor.u32 %v1122_v62, %v1119_v61  ;;  %v665_v51 = vrot.slane %v663_v43, 4  ;;  %v846_v8 = vrot.slane %v611_v4, 4 }
  0xdb   : > { %6223 = vmatpush3.bf16.msra.mxu1 %v6987_v0  ;;  %6284 = vmatprep.subr.bf16.mxu0 %v6988_v17  ;;  %v646_v0 = vshll.u32 %v606_v54, 16  ;;  %v5814_v54 = vld [vmem:[%s7652_s16 + $0x40] sm:$0xf8]  ;;  %v673_v57 = vrot.slane %v671_v48, 4  ;;  %v1141_v61 = vsel %vm624_vm1, %v1132_v46, %v1140_v49  ;;  %v1151_v14 = vshrl.u32 %v5815_v60, 16 }
  0xdc   : > { %v645_v6 = vrot.slane %v643_v63, 3  ;;  %v1124_v16 = vsel %vm624_vm1, %v1115_v2, %v1123_v5  ;;  %v924_v63 = vrot.slane %v922_v52, 4  ;;  %v845_v5 = vrot.slane %v7682_v53, 4  ;;  %v6998_v46 = vld [vmem:[#allocation7 + $0x160] sm:$0xff]  }
  0xdd   : > { %2604 = vmatmul.mubr.bf16.vlgmr.msra.gmra.mrb[0].mxu0 %v641_v50  ;;  %v648_v7 = vrot.slane %v646_v0, 4  ;;  %v662_v50 = vrot.slane %v660_v42, 3  ;;  %v1146_v10 = vshll.u32 %v5814_v54, 16  ;;  %v1154_v15 = vshll.u32 %v5815_v60, 16  ;;  %v6999_v52 = vld [vmem:[#allocation7 + $0x120] sm:$0xff]  }
  0xde   : > { %6285 = vmatpush3.bf16.msra.mxu0 %v6989_v33  ;;  %2611 = vmatprep.mubr.bf16.mxu0 %v841_v58  ;;  %v911_v33 = vor.u32 %v910_v23, %v907_v18  ;;  %v925_v58 = vshll.u32 %v807_v20, 16  ;;  %v1153_v20 = vrot.slane %v1151_v14, 3  ;;  %v680_v23 = vshll.u32 %v610_v11, 16 }
  0xdf   : > { %6286 = vmatprep.subr.bf16.mxu0 %v6990_v44  ;;  %2717 = vmatmul.mubr.bf16.vlgmr.msra.gmra.mrb[0].mxu1 %v903_v1  ;;  %v649_v17 = vor.u32 %v648_v7, %v645_v6  ;;  %v878_v44 = vld [vmem:[%s7652_s16 + $0x28] sm:$0x1f]  ;;  %v666_v62 = vor.u32 %v665_v51, %v662_v50  ;;  %v6995_v6 = vld [vmem:[#allocation7 + $0x118] sm:$0xff]   ;;  %v1148_v19 = vrot.slane %v1146_v10, 4  ;;  %v1156_v21 = vrot.slane %v1154_v15, 4 }
  0xe0   : > { %2724 = vmatprep.mubr.bf16.mxu1 %v1124_v16  ;;  %v920_v45 = vsel %vm886_vm2, %v911_v33, %v919_v36  ;;  %v930_v59 = vshrl.u32 %v878_v44, 16  ;;  %v933_v0 = vshll.u32 %v878_v44, 16  ;;  %v927_v2 = vrot.slane %v925_v58, 5  ;;  %v6996_v36 = vld [vmem:[#allocation7 + $0x1c0] sm:$0xff]   ;;  %v613_v50 = vld [vmem:[%s7652_s16 + $0x48] sm:$0xf] }
  0xe1   : > { %v658_v32 = vsel %vm624_vm1, %v649_v17, %v657_v22  ;;  %v847_v17 = vsel %vm835_vm0, %v845_v5, %v846_v8  ;;  %v677_v22 = vshrl.u32 %v610_v11, 16  ;;  %v688_v28 = vshll.u32 %v611_v4, 16  ;;  %6360 = vmatprep.subr.bf16.mxu1 %v6996_v36  ;;  %v5818_v11 = vld [vmem:[%s7652_s16 + $0x60] sm:$0xf8] }
  0xe2   : > { %6287 = vmatpush3.bf16.msra.mxu0 %v6991_v56  ;;  %v670_v56 = vrot.slane %v668_v47, 3  ;;  %v932_v3 = vrot.slane %v930_v59, 4  ;;  %v935_v7 = vrot.slane %v933_v0, 5  ;;  %v928_v13 = vor.u32 %v927_v2, %v924_v63  ;;  %v880_v2 = vld [vmem:[%s7652_s16 + $0x48] sm:$0x1f] }
  0xe3   : > { %6288 = vmatprep.subr.bf16.mxu0 %v6992_v9  ;;  %v1143_v9 = vshrl.u32 %v5814_v54, 16  ;;  %v1157_v30 = vor.u32 %v1156_v21, %v1153_v20  ;;  %v679_v31 = vrot.slane %v677_v22, 3  ;;  %v939_v33 = vshrl.u32 %v7682_v53, 16 }
  0xe4   : > { %v674_v1 = vor.u32 %v673_v57, %v670_v56  ;;  %v936_v16 = vor.u32 %v935_v7, %v932_v3  ;;  %v690_v38 = vrot.slane %v688_v28, 4  ;;  %v942_v39 = vshll.u32 %v7682_v53, 16  ;;  %v612_v57 = vld [vmem:[%s7652_s16 + $0x40] sm:$0xf8] }
  0xe5   : > { %2612 = vmatmul.mubr.bf16.gmra.mrb[4].mxu0 %v658_v32  ;;  %v1145_v18 = vrot.slane %v1143_v9, 3  ;;  %v682_v32 = vrot.slane %v680_v23, 4  ;;  %v947_v40 = vshrl.u32 %v879_v24, 16  ;;  %v941_v43 = vrot.slane %v939_v33, 4 }
  0xe6   : > { %2619 = vmatprep.mubr.bf16.mxu0 %v844_v37  ;;  %6289 = vmatpush3.bf16.msra.mxu0 %v6993_v27  ;;  %v675_v12 = vsel %vm624_vm1, %v666_v62, %v674_v1  ;;  %v937_v25 = vsel %vm886_vm2, %v928_v13, %v936_v16  ;;  %v685_v27 = vshrl.u32 %v611_v4, 16  ;;  %v950_v44 = vshll.u32 %v879_v24, 16  ;;  %v7712_v16 = vld [vmem:[%s7652_s16 + $0x50] sm:$0xf0] }
  0xe7   : > { %2725 = vmatmul.mubr.bf16.gmra.mrb[4].mxu1 %v920_v45  ;;  %6290 = vmatprep.subr.bf16.mxu0 %v6994_v55  ;;  %v1149_v26 = vor.u32 %v1148_v19, %v1145_v18  ;;  %v683_v42 = vor.u32 %v682_v32, %v679_v31  ;;  %v6997_v45 = vld [vmem:[#allocation7 + $0x180] sm:$0xff]   ;;  %v944_v48 = vrot.slane %v942_v39, 5  ;;  %v949_v49 = vrot.slane %v947_v40, 4  ;;  %v7001_v32 = vld [vmem:[#allocation7 + $0x188] sm:$0xff]  }
  0xe8   : > { %2732 = vmatprep.mubr.bf16.mxu1 %v1141_v61  ;;  %v687_v37 = vrot.slane %v685_v27, 3  ;;  %v848_v51 = vrot.slane %v7697_v34, 4  ;;  %v952_v54 = vrot.slane %v950_v44, 5  ;;  %v849_v53 = vrot.slane %v613_v50, 4  ;;  %6361 = vmatpush3.bf16.msra.mxu1 %v6997_v45 }
  0xe9   : > { %v1158_v41 = vsel %vm624_vm1, %v1149_v26, %v1157_v30  ;;  %v1160_v55 = vshrl.u32 %v5816_v29, 16  ;;  %v1163_v56 = vshll.u32 %v5816_v29, 16  ;;  %v945_v59 = vor.u32 %v944_v48, %v941_v43  ;;  %v5819_v26 = vld [vmem:[%s7652_s16 + $0x68] sm:$0xf]  ;;  %v615_v30 = vld [vmem:[%s7652_s16 + $0x58] sm:$0xf] }
  0xea   : > { %6291 = vmatpush3.bf16.msra.mxu0 %v6995_v6  ;;  %v691_v47 = vor.u32 %v690_v38, %v687_v37  ;;  %v1168_v60 = vshrl.u32 %v5817_v35, 16  ;;  %v1171_v61 = vshll.u32 %v5817_v35, 16  ;;  %v953_v62 = vor.u32 %v952_v54, %v949_v49  ;;  %v614_v37 = vld [vmem:[%s7652_s16 + $0x50] sm:$0xf8] }
  0xeb   : > { %6292 = vmatprep.subr.bf16.mxu0 %v6998_v46  ;;  %v850_v63 = vsel %vm835_vm0, %v848_v51, %v849_v53  ;;  %v1162_v0 = vrot.slane %v1160_v55, 3  ;;  %v1165_v1 = vrot.slane %v1163_v56, 4  ;;  %v694_v5 = vshrl.u32 %v612_v57, 16  ;;  %v5820_v55 = vld [vmem:[%s7652_s16 + $0x70] sm:$0xf8] }
  0xec   : > { %v692_v58 = vsel %vm624_vm1, %v683_v42, %v691_v47  ;;  %v1170_v3 = vrot.slane %v1168_v60, 3  ;;  %v1173_v4 = vrot.slane %v1171_v61, 4  ;;  %v697_v6 = vshll.u32 %v612_v57, 16  ;;  %v7727_v60 = vld [vmem:[%s7652_s16 + $0x60] sm:$0xf0]  ;;  %v7002_v61 = vld [vmem:[#allocation7 + $0x168] sm:$0xff]  }
  0xed   : > { %2620 = vmatmul.mubr.bf16.gmra.mrb[8].mxu0 %v675_v12  ;;  %v954_v7 = vsel %vm886_vm2, %v945_v59, %v953_v62  ;;  %v1166_v8 = vor.u32 %v1165_v1, %v1162_v0  ;;  %v702_v9 = vshrl.u32 %v613_v50, 16  ;;  %v705_v10 = vshll.u32 %v613_v50, 16  ;;  %v881_v50 = vld [vmem:[%s7652_s16 + $0x58] sm:$0x1f] }
  0xee   : > { %2627 = vmatprep.mubr.bf16.mxu0 %v847_v17  ;;  %6293 = vmatpush3.bf16.msra.mxu0 %v6999_v52  ;;  %v1174_v12 = vor.u32 %v1173_v4, %v1170_v3  ;;  %v696_v13 = vrot.slane %v694_v5, 3  ;;  %v699_v14 = vrot.slane %v697_v6, 4  ;;  %v956_v15 = vshrl.u32 %v7697_v34, 16  ;;  %v7000_v17 = vld [vmem:[#allocation7 + $0x1c8] sm:$0xff]   ;;  %v5821_v6 = vld [vmem:[%s7652_s16 + $0x78] sm:$0xf] }
  0xef   : > { %2733 = vmatmul.mubr.bf16.gmra.mrb[8].mxu1 %v937_v25  ;;  %v704_v18 = vrot.slane %v702_v9, 3  ;;  %v707_v19 = vrot.slane %v705_v10, 4  ;;  %v959_v20 = vshll.u32 %v7697_v34, 16  ;;  %v964_v21 = vshrl.u32 %v880_v2, 16  ;;  %6362 = vmatprep.subr.bf16.mxu1 %v7000_v17 }
  0xf0   : > { %2740 = vmatprep.mubr.bf16.mxu1 %v1158_v41  ;;  %v1175_v22 = vsel %vm624_vm1, %v1166_v8, %v1174_v12  ;;  %v700_v23 = vor.u32 %v699_v14, %v696_v13  ;;  %v958_v24 = vrot.slane %v956_v15, 4  ;;  %v967_v25 = vshll.u32 %v880_v2, 16  ;;  %6363 = vmatpush3.bf16.msra.mxu1 %v7001_v32  ;;  %v7004_v8 = vld [vmem:[#allocation7 + $0x1d0] sm:$0xff]   ;;  %v617_v12 = vld [vmem:[%s7652_s16 + $0x68] sm:$0xf] }
  0xf1   : > { %v708_v27 = vor.u32 %v707_v19, %v704_v18  ;;  %v961_v28 = vrot.slane %v959_v20, 5  ;;  %v966_v29 = vrot.slane %v964_v21, 4  ;;  %v851_v31 = vrot.slane %v7712_v16, 4  ;;  %6294 = vmatprep.subr.bf16.mxu0 %v7002_v61  ;;  %v7005_v14 = vld [vmem:[#allocation7 + $0x190] sm:$0xff]   ;;  %v616_v19 = vld [vmem:[%s7652_s16 + $0x60] sm:$0xf8]  ;;  %6364 = vmatprep.subr.bf16.mxu1 %v7004_v8 }
  0xf2   : > { %v969_v33 = vrot.slane %v967_v25, 5  ;;  %v852_v35 = vrot.slane %v615_v30, 4  ;;  %v1177_v34 = vshrl.u32 %v5818_v11, 16  ;;  %v1180_v36 = vshll.u32 %v5818_v11, 16 }
  0xf3   : > { %v709_v38 = vsel %vm624_vm1, %v700_v23, %v708_v27  ;;  %v962_v39 = vor.u32 %v961_v28, %v958_v24  ;;  %v1185_v40 = vshrl.u32 %v5819_v26, 16  ;;  %v1188_v41 = vshll.u32 %v5819_v26, 16  ;;  %v882_v28 = vld [vmem:[%s7652_s16 + $0x68] sm:$0x1f] }
  0xf4   : > { %v970_v42 = vor.u32 %v969_v33, %v966_v29  ;;  %v853_v43 = vsel %vm835_vm0, %v851_v31, %v852_v35  ;;  %v1179_v44 = vrot.slane %v1177_v34, 3  ;;  %v1182_v45 = vrot.slane %v1180_v36, 4  ;;  %6365 = vmatpush3.bf16.msra.mxu1 %v7005_v14  ;;  %v883_v14 = vld [vmem:[%s7652_s16 + $0x78] sm:$0x1f] }
  0xf5   : > { %2628 = vmatmul.mubr.bf16.gmra.mrb[12].mxu0 %v692_v58  ;;  %v1187_v46 = vrot.slane %v1185_v40, 3  ;;  %v1190_v47 = vrot.slane %v1188_v41, 4  ;;  %v711_v48 = vshrl.u32 %v614_v37, 16  ;;  %v714_v49 = vshll.u32 %v614_v37, 16  ;;  %v5822_v37 = vld [vmem:[%s7652_s16 + $0x80] sm:$0xf8] }
  0xf6   : > { %2635 = vmatprep.mubr.bf16.mxu0 %v850_v63  ;;  %v971_v51 = vsel %vm886_vm2, %v962_v39, %v970_v42  ;;  %v1183_v52 = vor.u32 %v1182_v45, %v1179_v44  ;;  %v719_v54 = vshrl.u32 %v615_v30, 16  ;;  %v722_v53 = vshll.u32 %v615_v30, 16  ;;  %v7742_v42 = vld [vmem:[%s7652_s16 + $0x70] sm:$0xf0] }
  0xf7   : > { %2741 = vmatmul.mubr.bf16.gmra.mrb[12].mxu1 %v954_v7  ;;  %v1191_v56 = vor.u32 %v1190_v47, %v1187_v46  ;;  %v713_v57 = vrot.slane %v711_v48, 3  ;;  %v716_v58 = vrot.slane %v714_v49, 4  ;;  %v973_v59 = vshrl.u32 %v7712_v16, 16  ;;  %v7003_v7 = vld [vmem:[#allocation7 + $0x128] sm:$0xff]   ;;  %v7006_v44 = vld [vmem:[#allocation7 + $0x170] sm:$0xff]  }
  0xf8   : > { %2748 = vmatprep.mubr.bf16.mxu1 %v1175_v22  ;;  %v721_v62 = vrot.slane %v719_v54, 3  ;;  %v724_v63 = vrot.slane %v722_v53, 4  ;;  %v976_v0 = vshll.u32 %v7712_v16, 16  ;;  %v981_v1 = vshrl.u32 %v881_v50, 16  ;;  %6295 = vmatpush3.bf16.msra.mxu0 %v7003_v7  ;;  %v619_v49 = vld [vmem:[%s7652_s16 + $0x78] sm:$0xf] }
  0xf9   : > { %v1192_v2 = vsel %vm624_vm1, %v1183_v52, %v1191_v56  ;;  %v717_v3 = vor.u32 %v716_v58, %v713_v57  ;;  %v975_v4 = vrot.slane %v973_v59, 4  ;;  %v984_v5 = vshll.u32 %v881_v50, 16  ;;  %v618_v53 = vld [vmem:[%s7652_s16 + $0x70] sm:$0xf8]  ;;  %6296 = vmatprep.subr.bf16.mxu0 %v7006_v44 }
  0xfa   : > { %v725_v9 = vor.u32 %v724_v63, %v721_v62  ;;  %v978_v10 = vrot.slane %v976_v0, 5  ;;  %v983_v11 = vrot.slane %v981_v1, 4  ;;  %v854_v13 = vrot.slane %v7727_v60, 4  ;;  %v7007_v59 = vld [vmem:[#allocation7 + $0x130] sm:$0xff]  }
  0xfb   : > { %v986_v15 = vrot.slane %v984_v5, 5  ;;  %v855_v16 = vrot.slane %v617_v12, 4  ;;  %v1194_v17 = vshrl.u32 %v5820_v55, 16  ;;  %v1197_v18 = vshll.u32 %v5820_v55, 16  ;;  %v7009_v5 = vld [vmem:[#allocation7 + $0x198] sm:$0xff]  }
  0xfc   : > { %v726_v20 = vsel %vm624_vm1, %v717_v3, %v725_v9  ;;  %v979_v21 = vor.u32 %v978_v10, %v975_v4  ;;  %v1202_v22 = vshrl.u32 %v5821_v6, 16  ;;  %v1205_v23 = vshll.u32 %v5821_v6, 16  ;;  %6297 = vmatpush3.bf16.msra.mxu0 %v7007_v59  ;;  %v7008_v4 = vld [vmem:[#allocation7 + $0x1d8] sm:$0xff]  }
  0xfd   : > { %2636 = vmatmul.mubr.bf16.gmra.mrb[16].mxu0 %v709_v38  ;;  %v987_v24 = vor.u32 %v986_v15, %v983_v11  ;;  %v856_v25 = vsel %vm835_vm0, %v854_v13, %v855_v16  ;;  %v1196_v26 = vrot.slane %v1194_v17, 3  ;;  %v1199_v27 = vrot.slane %v1197_v18, 4  ;;  %6366 = vmatprep.subr.bf16.mxu1 %v7008_v4 }
  0xfe   : > { %2643 = vmatprep.mubr.bf16.mxu0 %v853_v43  ;;  %v1204_v29 = vrot.slane %v1202_v22, 3  ;;  %v1207_v30 = vrot.slane %v1205_v23, 4  ;;  %v728_v31 = vshrl.u32 %v616_v19, 16  ;;  %v731_v32 = vshll.u32 %v616_v19, 16  ;;  %v5823_v43 = vld [vmem:[%s7652_s16 + $0x88] sm:$0xf]  ;;  %6367 = vmatpush3.bf16.msra.mxu1 %v7009_v5 }
  0xff   : > { %2749 = vmatmul.mubr.bf16.gmra.mrb[16].mxu1 %v971_v51  ;;  %v988_v33 = vsel %vm886_vm2, %v979_v21, %v987_v24  ;;  %v1200_v35 = vor.u32 %v1199_v27, %v1196_v26  ;;  %v736_v34 = vshrl.u32 %v617_v12, 16  ;;  %v739_v36 = vshll.u32 %v617_v12, 16  ;;  %v7756_v23 = vld [vmem:[%s7652_s16 + $0x80] sm:$0xf0]  ;;  %v5824_v24 = vld [vmem:[%s7652_s16 + $0x90] sm:$0xf8] }
 0x100   : > { %2756 = vmatprep.mubr.bf16.mxu1 %v1192_v2  ;;  %v1208_v38 = vor.u32 %v1207_v30, %v1204_v29  ;;  %v730_v39 = vrot.slane %v728_v31, 3  ;;  %v733_v40 = vrot.slane %v731_v32, 4  ;;  %v990_v41 = vshrl.u32 %v7727_v60, 16  ;;  %v621_v30 = vld [vmem:[%s7652_s16 + $0x88] sm:$0xf] }
 0x101   : > { %v738_v45 = vrot.slane %v736_v34, 3  ;;  %v741_v46 = vrot.slane %v739_v36, 4  ;;  %v993_v47 = vshll.u32 %v7727_v60, 16  ;;  %v998_v48 = vshrl.u32 %v882_v28, 16  ;;  %v5825_v31 = vld [vmem:[%s7652_s16 + $0x98] sm:$0xf] }
 0x102   : > { %v1209_v50 = vsel %vm624_vm1, %v1200_v35, %v1208_v38  ;;  %v734_v51 = vor.u32 %v733_v40, %v730_v39  ;;  %v992_v52 = vrot.slane %v990_v41, 4  ;;  %v1001_v54 = vshll.u32 %v882_v28, 16  ;;  %v620_v36 = vld [vmem:[%s7652_s16 + $0x80] sm:$0xf8]  ;;  %v7771_v5 = vld [vmem:[%s7652_s16 + $0x90] sm:$0xf0] }
 0x103   : > { %v742_v55 = vor.u32 %v741_v46, %v738_v45  ;;  %v995_v56 = vrot.slane %v993_v47, 5  ;;  %v1000_v57 = vrot.slane %v998_v48, 4  ;;  %v857_v58 = vrot.slane %v7742_v42, 4  ;;  %v7011_v41 = vld [vmem:[#allocation7 + $0x1a0] sm:$0xff]  }
 0x104   : > { %v1003_v61 = vrot.slane %v1001_v54, 5  ;;  %v858_v62 = vrot.slane %v619_v49, 4  ;;  %v1211_v63 = vshrl.u32 %v5822_v37, 16  ;;  %v1214_v60 = vshll.u32 %v5822_v37, 16 }
 0x105   : > { %2644 = vmatmul.mubr.bf16.gmra.mrb[20].mxu0 %v726_v20  ;;  %v743_v0 = vsel %vm624_vm1, %v734_v51, %v742_v55  ;;  %v996_v1 = vor.u32 %v995_v56, %v992_v52  ;;  %v1219_v2 = vshrl.u32 %v5823_v43, 16  ;;  %v1222_v3 = vshll.u32 %v5823_v43, 16  ;;  %v7012_v55 = vld [vmem:[#allocation7 + $0x178] sm:$0xff]   ;;  %v7013_v56 = vld [vmem:[#allocation7 + $0x1e8] sm:$0xff]  }
 0x106   : > { %2651 = vmatprep.mubr.bf16.mxu0 %v856_v25  ;;  %v1004_v6 = vor.u32 %v1003_v61, %v1000_v57  ;;  %v859_v7 = vsel %vm835_vm0, %v857_v58, %v858_v62  ;;  %v1213_v8 = vrot.slane %v1211_v63, 3  ;;  %v1216_v9 = vrot.slane %v1214_v60, 4  ;;  %v7010_v25 = vld [vmem:[#allocation7 + $0x1e0] sm:$0xff]   ;;  %6298 = vmatprep.subr.bf16.mxu0 %v7012_v55 }
 0x107   : > { %2757 = vmatmul.mubr.bf16.gmra.mrb[20].mxu1 %v988_v33  ;;  %v1221_v10 = vrot.slane %v1219_v2, 3  ;;  %v1224_v11 = vrot.slane %v1222_v3, 4  ;;  %v745_v12 = vshrl.u32 %v618_v53, 16  ;;  %v748_v13 = vshll.u32 %v618_v53, 16  ;;  %6368 = vmatprep.subr.bf16.mxu1 %v7010_v25 }
 0x108   : > { %2764 = vmatprep.mubr.bf16.mxu1 %v1209_v50  ;;  %v1005_v15 = vsel %vm886_vm2, %v996_v1, %v1004_v6  ;;  %v1217_v16 = vor.u32 %v1216_v9, %v1213_v8  ;;  %v753_v17 = vshrl.u32 %v619_v49, 16  ;;  %v756_v18 = vshll.u32 %v619_v49, 16  ;;  %v884_v50 = vld [vmem:[%s7652_s16 + $0x88] sm:$0x1f]  ;;  %6369 = vmatpush3.bf16.msra.mxu1 %v7011_v41  ;;  %v5826_v6 = vld [vmem:[%s7652_s16 + $0xa0] sm:$0xf8] }
 0x109   : > { %v1225_v19 = vor.u32 %v1224_v11, %v1221_v10  ;;  %v747_v20 = vrot.slane %v745_v12, 3  ;;  %v750_v21 = vrot.slane %v748_v13, 4  ;;  %v1007_v22 = vshrl.u32 %v7742_v42, 16  ;;  %6370 = vmatprep.subr.bf16.mxu1 %v7013_v56  ;;  %v623_v12 = vld [vmem:[%s7652_s16 + $0x98] sm:$0xf]  ;;  %v7016_v41 = vld [vmem:[#allocation7 + $0x1f0] sm:$0xff]  }
 0x10a   : > { %v755_v26 = vrot.slane %v753_v17, 3  ;;  %v758_v27 = vrot.slane %v756_v18, 4  ;;  %v1010_v28 = vshll.u32 %v7742_v42, 16  ;;  %v1015_v29 = vshrl.u32 %v883_v14, 16  ;;  %v7777_v13 = vld [vmem:[%s7652_s16 + $0xa8] sm:$0xf] }
 0x10b   : > { %v1226_v32 = vsel %vm624_vm1, %v1217_v16, %v1225_v19  ;;  %v751_v33 = vor.u32 %v750_v21, %v747_v20  ;;  %v1009_v35 = vrot.slane %v1007_v22, 4  ;;  %v1018_v34 = vshll.u32 %v883_v14, 16  ;;  %v7015_v22 = vld [vmem:[#allocation7 + $0x1a8] sm:$0xff]  }
 0x10c   : > { %v759_v37 = vor.u32 %v758_v27, %v755_v26  ;;  %v1012_v38 = vrot.slane %v1010_v28, 5  ;;  %v1017_v39 = vrot.slane %v1015_v29, 4  ;;  %v860_v40 = vrot.slane %v7756_v23, 4  ;;  %6371 = vmatpush3.bf16.msra.mxu1 %v7015_v22  ;;  %v7797_v22 = vld [vmem:[%s7652_s16 + $0x20] sm:$0xf0] }
 0x10d   : > { %2652 = vmatmul.mubr.bf16.gmra.mrb[24].mxu0 %v743_v0  ;;  %v1020_v43 = vrot.slane %v1018_v34, 5  ;;  %v861_v42 = vrot.slane %v621_v30, 4  ;;  %v1228_v44 = vshrl.u32 %v5824_v24, 16  ;;  %v1231_v45 = vshll.u32 %v5824_v24, 16  ;;  %6372 = vmatprep.subr.bf16.mxu1 %v7016_v41 }
 0x10e   : > { %2659 = vmatprep.mubr.bf16.mxu0 %v859_v7  ;;  %v760_v46 = vsel %vm624_vm1, %v751_v33, %v759_v37  ;;  %v1013_v47 = vor.u32 %v1012_v38, %v1009_v35  ;;  %v1236_v48 = vshrl.u32 %v5825_v31, 16  ;;  %v1239_v49 = vshll.u32 %v5825_v31, 16  ;;  %v7014_v7 = vld [vmem:[#allocation7 + $0x138] sm:$0xff]   ;;  %v622_v31 = vld [vmem:[%s7652_s16 + $0x90] sm:$0xf8] }
 0x10f   : > { %2765 = vmatmul.mubr.bf16.gmra.mrb[24].mxu1 %v1005_v15  ;;  %v1021_v51 = vor.u32 %v1020_v43, %v1017_v39  ;;  %v862_v52 = vsel %vm835_vm0, %v860_v40, %v861_v42  ;;  %v1230_v54 = vrot.slane %v1228_v44, 3  ;;  %v1233_v53 = vrot.slane %v1231_v45, 4  ;;  %6299 = vmatpush3.bf16.msra.mxu0 %v7014_v7  ;;  %v7017_v43 = vld [vmem:[#allocation7 + $0x1b0] sm:$0xff]  }
 0x110   : > { %2772 = vmatprep.mubr.bf16.mxu1 %v1226_v32  ;;  %v1238_v57 = vrot.slane %v1236_v48, 3  ;;  %v1241_v58 = vrot.slane %v1239_v49, 4  ;;  %v762_v59 = vshrl.u32 %v620_v36, 16  ;;  %v765_v61 = vshll.u32 %v620_v36, 16  ;;  %v885_v32 = vld [vmem:[%s7652_s16 + $0x98] sm:$0x1f]  ;;  %6373 = vmatpush3.bf16.msra.mxu1 %v7017_v43 }
 0x111   : > { %v1022_v62 = vsel %vm886_vm2, %v1013_v47, %v1021_v51  ;;  %v1234_v63 = vor.u32 %v1233_v53, %v1230_v54  ;;  %v770_v60 = vshrl.u32 %v621_v30, 16  ;;  %v773_v0 = vshll.u32 %v621_v30, 16  ;;  %v7018_v51 = vld [vmem:[#allocation7 + $0x1f8] sm:$0xff]  }
 0x112   : > { %v1242_v1 = vor.u32 %v1241_v58, %v1238_v57  ;;  %v764_v2 = vrot.slane %v762_v59, 3  ;;  %v767_v3 = vrot.slane %v765_v61, 4  ;;  %v1024_v4 = vshrl.u32 %v7756_v23, 16  ;;  %6374 = vmatprep.subr.bf16.mxu1 %v7018_v51  ;;  %v5828_v61 = vld [vmem:[%s7652_s16 + $0x10] sm:$0xf0] }
 0x113   : > { %v772_v8 = vrot.slane %v770_v60, 3  ;;  %v775_v9 = vrot.slane %v773_v0, 4  ;;  %v1027_v10 = vshll.u32 %v7756_v23, 16  ;;  %v1032_v11 = vshrl.u32 %v884_v50, 16 }
 0x114   : > { %v1243_v14 = vsel %vm624_vm1, %v1234_v63, %v1242_v1  ;;  %v768_v15 = vor.u32 %v767_v3, %v764_v2  ;;  %v1026_v16 = vrot.slane %v1024_v4, 4  ;;  %v1035_v17 = vshll.u32 %v884_v50, 16  ;;  %v7019_v2 = vld [vmem:[#allocation7 + $0x1b8] sm:$0xff]  }
 0x115   : > { %2660 = vmatmul.mubr.bf16.gmra.mrb[28].mxu0 %v760_v46  ;;  %v776_v18 = vor.u32 %v775_v9, %v772_v8  ;;  %v1029_v19 = vrot.slane %v1027_v10, 5  ;;  %v1034_v20 = vrot.slane %v1032_v11, 4  ;;  %v863_v21 = vrot.slane %v7771_v5, 4  ;;  %6375 = vmatpush3.bf16.msra.mxu1 %v7019_v2  ;;  %v7022_v2 = vld [vmem:[#allocation7 + $0x210] sm:$0xff]  }
 0x116   : > { %2667 = vmatprep.mubr.bf16.mxu0 %v862_v52  ;;  %v1037_v23 = vrot.slane %v1035_v17, 5  ;;  %v864_v24 = vrot.slane %v623_v12, 4  ;;  %v1245_v25 = vshrl.u32 %v5826_v6, 16  ;;  %v1248_v26 = vshll.u32 %v5826_v6, 16  ;;  %v5851_v17 = vld [vmem:[%s7652_s16 + $0x28] sm:$0xf] }
 0x117   : > { %2773 = vmatmul.mubr.bf16.gmra.mrb[28].mxu1 %v1022_v62  ;;  %v777_v27 = vsel %vm624_vm1, %v768_v15, %v776_v18  ;;  %v1030_v28 = vor.u32 %v1029_v19, %v1026_v16  ;;  %v1253_v29 = vshrl.u32 %v7777_v13, 16  ;;  %v1256_v30 = vshll.u32 %v7777_v13, 16  ;;  %v5838_v62 = vld [vmem:[%s7652_s16 + $0x18] sm:$0x1f]  ;;  %v7020_v16 = vld [vmem:[#allocation7 + $0x200] sm:$0xff]  }
 0x118   : > { %2780 = vmatprep.mubr.bf16.mxu1 %v1243_v14  ;;  %v1038_v33 = vor.u32 %v1037_v23, %v1034_v20  ;;  %v865_v35 = vsel %vm835_vm0, %v863_v21, %v864_v24  ;;  %v1247_v34 = vrot.slane %v1245_v25, 3  ;;  %v1250_v36 = vrot.slane %v1248_v26, 4  ;;  %v7028_v18 = vld [vmem:[%s7652_s16 + $0x18] sm:$0xf]  ;;  %6726 = vmatprep.subr.bf16.mxu0 %v7020_v16 }
 0x119   : > { %v1255_v37 = vrot.slane %v1253_v29, 3  ;;  %v1258_v38 = vrot.slane %v1256_v30, 4  ;;  %v779_v39 = vshrl.u32 %v622_v31, 16  ;;  %v782_v40 = vshll.u32 %v622_v31, 16  ;;  %v5829_v29 = vld [vmem:[%s7652_s16 + $0x20] sm:$0xf0] }
 0x11a   : > { %v1039_v42 = vsel %vm886_vm2, %v1030_v28, %v1038_v33  ;;  %v1251_v44 = vor.u32 %v1250_v36, %v1247_v34  ;;  %v787_v45 = vshrl.u32 %v623_v12, 16  ;;  %v790_v46 = vshll.u32 %v623_v12, 16  ;;  %v5850_v28 = vld [vmem:[%s7652_s16 + $0x20] sm:$0xf8] }
 0x11b   : > { %v1259_v47 = vor.u32 %v1258_v38, %v1255_v37  ;;  %v781_v48 = vrot.slane %v779_v39, 3  ;;  %v784_v49 = vrot.slane %v782_v40, 4  ;;  %v1041_v50 = vshrl.u32 %v7771_v5, 16  ;;  %v7808_v39 = vld [vmem:[%s7652_s16 + $0x30] sm:$0xf0] }
 0x11c   : > { %v789_v52 = vrot.slane %v787_v45, 3  ;;  %v792_v54 = vrot.slane %v790_v46, 4  ;;  %v1044_v53 = vshll.u32 %v7771_v5, 16  ;;  %v1049_v55 = vshrl.u32 %v885_v32, 16  ;;  %v5852_v45 = vld [vmem:[%s7652_s16 + $0x30] sm:$0xf8] }
 0x11d   : > { %2668 = vmatmul.mubr.bf16.gmra.mrb[32].mxu0 %v777_v27  ;;  %v1260_v56 = vsel %vm624_vm1, %v1251_v44, %v1259_v47  ;;  %v785_v57 = vor.u32 %v784_v49, %v781_v48  ;;  %v1043_v58 = vrot.slane %v1041_v50, 4  ;;  %v1052_v59 = vshll.u32 %v885_v32, 16  ;;  %v5853_v44 = vld [vmem:[%s7652_s16 + $0x38] sm:$0xf]  ;;  %v7021_v46 = vld [vmem:[#allocation7 + $0x208] sm:$0xff]  }
 0x11e   : > { %2675 = vmatprep.mubr.bf16.mxu0 %v865_v35  ;;  %v793_v63 = vor.u32 %v792_v54, %v789_v52  ;;  %v1046_v60 = vrot.slane %v1044_v53, 5  ;;  %v1051_v0 = vrot.slane %v1049_v55, 4  ;;  %v1352_v1 = vshrl.u32 %v5828_v61, 16  ;;  %v5839_v35 = vld [vmem:[%s7652_s16 + $0x28] sm:$0x1f] }
 0x11f   : > { %2781 = vmatmul.mubr.bf16.gmra.mrb[32].mxu1 %v1039_v42  ;;  %v1054_v3 = vrot.slane %v1052_v59, 5  ;;  %v1355_v4 = vshll.u32 %v5828_v61, 16  ;;  %v1360_v5 = vshrl.u32 %v5838_v62, 16  ;;  %v1363_v6 = vshll.u32 %v5838_v62, 16  ;;  %v7029_v54 = vld [vmem:[%s7652_s16 + $0x28] sm:$0xf] }
 0x120   : > { %2788 = vmatprep.mubr.bf16.mxu1 %v1260_v56  ;;  %v794_v7 = vsel %vm624_vm1, %v785_v57, %v793_v63  ;;  %v1047_v8 = vor.u32 %v1046_v60, %v1043_v58  ;;  %v1354_v9 = vrot.slane %v1352_v1, 4  ;;  %v1301_v10 = vrot.slane %v5828_v61, 4  ;;  %v5830_v62 = vld [vmem:[%s7652_s16 + $0x30] sm:$0xf0]  ;;  %v5840_v1 = vld [vmem:[%s7652_s16 + $0x38] sm:$0x1f] }
 0x121   : > { %v1055_v11 = vor.u32 %v1054_v3, %v1051_v0  ;;  %v1357_v12 = vrot.slane %v1355_v4, 5  ;;  %v1362_v14 = vrot.slane %v1360_v5, 4  ;;  %v1365_v15 = vrot.slane %v1363_v6, 5 }
 0x122   : > { %v1302_v19 = vrot.slane %v7028_v18, 4  ;;  %v1564_v20 = vshrl.u32 %v5851_v17, 16  ;;  %v1567_v21 = vshll.u32 %v5851_v17, 16  ;;  %v1766_v23 = vrot.slane %v5851_v17, 4  ;;  %v7823_v17 = vld [vmem:[%s7652_s16 + $0x40] sm:$0xf0] }
 0x123   : > { %v1056_v24 = vsel %vm886_vm2, %v1047_v8, %v1055_v11  ;;  %v1358_v25 = vor.u32 %v1357_v12, %v1354_v9  ;;  %v1366_v26 = vor.u32 %v1365_v15, %v1362_v14  ;;  %v1765_v27 = vrot.slane %v7797_v22, 4  ;;  %v7023_v11 = vld [vmem:[#allocation7 + $0x218] sm:$0xff]  }
 0x124   : > { %v1303_v30 = vsel %vm835_vm0, %v1301_v10, %v1302_v19  ;;  %v1566_v31 = vrot.slane %v1564_v20, 3  ;;  %v1569_v32 = vrot.slane %v1567_v21, 4  ;;  %v1556_v33 = vshrl.u32 %v5850_v28, 16 }
 0x125   : > { %2676 = vmatmul.mubr.bf16.gmra.mrb[36].mxu0 %v794_v7  ;;  %v1367_v34 = vsel %vm886_vm2, %v1358_v25, %v1366_v26  ;;  %v1767_v36 = vsel %vm835_vm0, %v1765_v27, %v1766_v23  ;;  %v1559_v37 = vshll.u32 %v5850_v28, 16  ;;  %v1369_v38 = vshrl.u32 %v5829_v29, 16  ;;  %v5854_v23 = vld [vmem:[%s7652_s16 + $0x40] sm:$0xf8]  ;;  %v7030_v27 = vld [vmem:[%s7652_s16 + $0x38] sm:$0xf] }
 0x126   : > { %2829 = vmatprep.mubr.bf16.mxu0 %v1367_v34  ;;  %v1558_v40 = vrot.slane %v1556_v33, 3  ;;  %v1570_v41 = vor.u32 %v1569_v32, %v1566_v31  ;;  %v1372_v43 = vshll.u32 %v5829_v29, 16  ;;  %v1377_v42 = vshrl.u32 %v5839_v35, 16  ;;  %v5841_v34 = vld [vmem:[%s7652_s16 + $0x48] sm:$0x1f] }
 0x127   : > { %2789 = vmatmul.mubr.bf16.gmra.mrb[36].mxu1 %v1056_v24  ;;  %v1561_v47 = vrot.slane %v1559_v37, 4  ;;  %v1371_v48 = vrot.slane %v1369_v38, 4  ;;  %v1380_v49 = vshll.u32 %v5839_v35, 16  ;;  %v1304_v50 = vrot.slane %v5829_v29, 4  ;;  %v5855_v29 = vld [vmem:[%s7652_s16 + $0x48] sm:$0xf] }
 0x128   : > { %2942 = vmatprep.mubr.bf16.mxu1 %v1767_v36  ;;  %v1374_v51 = vrot.slane %v1372_v43, 5  ;;  %v1379_v52 = vrot.slane %v1377_v42, 4  ;;  %v1305_v53 = vrot.slane %v7029_v54, 4  ;;  %v1768_v55 = vrot.slane %v7808_v39, 4  ;;  %v5831_v35 = vld [vmem:[%s7652_s16 + $0x40] sm:$0xf0] }
 0x129   : > { %v1562_v56 = vor.u32 %v1561_v47, %v1558_v40  ;;  %v1382_v57 = vrot.slane %v1380_v49, 5  ;;  %v1769_v58 = vrot.slane %v5853_v44, 4  ;;  %v1573_v61 = vshrl.u32 %v5852_v45, 16 }
 0x12a   : > { %v1375_v59 = vor.u32 %v1374_v51, %v1371_v48  ;;  %v7819_v3 = vsel %vm835_vm0, %v1304_v50, %v1305_v53  ;;  %v1576_v5 = vshll.u32 %v5852_v45, 16  ;;  %v1581_v6 = vshrl.u32 %v5853_v44, 16  ;;  %v7024_v45 = vld [vmem:[#allocation7 + $0x220] sm:$0xff]   ;;  %v7839_v50 = vld [vmem:[%s7652_s16 + $0x50] sm:$0xf0] }
 0x12b   : > { %v1571_v63 = vsel %vm624_vm1, %v1562_v56, %v1570_v41  ;;  %v1383_v60 = vor.u32 %v1382_v57, %v1379_v52  ;;  %v1770_v0 = vsel %vm835_vm0, %v1768_v55, %v1769_v58  ;;  %v1575_v4 = vrot.slane %v1573_v61, 3  ;;  %v5856_v55 = vld [vmem:[%s7652_s16 + $0x50] sm:$0xf8]  ;;  %v5857_v61 = vld [vmem:[%s7652_s16 + $0x58] sm:$0xf] }
 0x12c   : > { %v1584_v8 = vshll.u32 %v5853_v44, 16  ;;  %v1386_v9 = vshrl.u32 %v5830_v62, 16  ;;  %v1389_v10 = vshll.u32 %v5830_v62, 16  ;;  %v1578_v12 = vrot.slane %v1576_v5, 4 }
 0x12d   : > { %2830 = vmatmul.mubr.bf16.vlgmr.msra.gmra.mrb[40].mxu0 %v1303_v30  ;;  %v1384_v7 = vsel %vm886_vm2, %v1375_v59, %v1383_v60  ;;  %v1583_v14 = vrot.slane %v1581_v6, 3  ;;  %v1394_v15 = vshrl.u32 %v5840_v1, 16  ;;  %v1307_v21 = vrot.slane %v5830_v62, 4 }
 0x12e   : > { %6727 = vmatpush3.bf16.msra.mxu0 %v7020_v16  ;;  %2837 = vmatprep.mubr.bf16.mxu0 %v1384_v7  ;;  %v1397_v16 = vshll.u32 %v5840_v1, 16  ;;  %v1586_v18 = vrot.slane %v1584_v8, 4  ;;  %v1388_v19 = vrot.slane %v1386_v9, 4  ;;  %v1391_v20 = vrot.slane %v1389_v10, 5  ;;  %v5842_v9 = vld [vmem:[%s7652_s16 + $0x58] sm:$0x1f] }
 0x12f   : > { %6728 = vmatprep.subr.bf16.mxu0 %v7021_v46  ;;  %2943 = vmatmul.mubr.bf16.vlgmr.msra.gmra.mrb[40].mxu1 %v1571_v63  ;;  %v1579_v24 = vor.u32 %v1578_v12, %v1575_v4  ;;  %v1396_v25 = vrot.slane %v1394_v15, 4  ;;  %v1308_v28 = vrot.slane %v7030_v27, 4  ;;  %v1771_v32 = vrot.slane %v7823_v17, 4  ;;  %v7025_v4 = vld [vmem:[#allocation7 + $0x228] sm:$0xff]  }
 0x130   : > { %2950 = vmatprep.mubr.bf16.mxu1 %v1770_v0  ;;  %v1399_v26 = vrot.slane %v1397_v16, 5  ;;  %v1587_v30 = vor.u32 %v1586_v18, %v1583_v14  ;;  %v1392_v31 = vor.u32 %v1391_v20, %v1388_v19  ;;  %v1772_v33 = vrot.slane %v5855_v29, 4  ;;  %v7031_v0 = vld [vmem:[%s7652_s16 + $0x48] sm:$0xf] }
 0x131   : > { %v7833_v37 = vsel %vm835_vm0, %v1307_v21, %v1308_v28  ;;  %v1590_v38 = vshrl.u32 %v5854_v23, 16  ;;  %v1593_v40 = vshll.u32 %v5854_v23, 16  ;;  %v1598_v42 = vshrl.u32 %v5855_v29, 16 }
 0x132   : > { %6729 = vmatpush3.bf16.msra.mxu0 %v7021_v46  ;;  %v1400_v36 = vor.u32 %v1399_v26, %v1396_v25  ;;  %v1588_v41 = vsel %vm624_vm1, %v1579_v24, %v1587_v30  ;;  %v1773_v43 = vsel %vm835_vm0, %v1771_v32, %v1772_v33  ;;  %v1601_v44 = vshll.u32 %v5855_v29, 16  ;;  %v7026_v25 = vld [vmem:[#allocation7 + $0x230] sm:$0xff]   ;;  %v7859_v30 = vld [vmem:[%s7652_s16 + $0x60] sm:$0xf0] }
 0x133   : > { %6730 = vmatprep.subr.bf16.mxu0 %v7022_v2  ;;  %v1592_v47 = vrot.slane %v1590_v38, 3  ;;  %v1595_v48 = vrot.slane %v1593_v40, 4  ;;  %v1403_v49 = vshrl.u32 %v5831_v35, 16  ;;  %v1600_v51 = vrot.slane %v1598_v42, 3 }
 0x134   : > { %v1401_v46 = vsel %vm886_vm2, %v1392_v31, %v1400_v36  ;;  %v1603_v52 = vrot.slane %v1601_v44, 4  ;;  %v1406_v54 = vshll.u32 %v5831_v35, 16  ;;  %v1411_v53 = vshrl.u32 %v5841_v34, 16  ;;  %v7027_v36 = vld [vmem:[#allocation7 + $0x238] sm:$0xff]   ;;  %v5859_v44 = vld [vmem:[%s7652_s16 + $0x68] sm:$0xf] }
 0x135   : > { %2838 = vmatmul.mubr.bf16.gmra.mrb[44].mxu0 %v7819_v3  ;;  %v1596_v56 = vor.u32 %v1595_v48, %v1592_v47  ;;  %v1405_v57 = vrot.slane %v1403_v49, 4  ;;  %v1414_v58 = vshll.u32 %v5841_v34, 16  ;;  %v1310_v59 = vrot.slane %v5831_v35, 4  ;;  %v5858_v34 = vld [vmem:[%s7652_s16 + $0x60] sm:$0xf8] }
 0x136   : > { %6731 = vmatpush3.bf16.msra.mxu0 %v7022_v2  ;;  %2845 = vmatprep.mubr.bf16.mxu0 %v1401_v46  ;;  %v1604_v62 = vor.u32 %v1603_v52, %v1600_v51  ;;  %v1408_v63 = vrot.slane %v1406_v54, 5  ;;  %v1413_v60 = vrot.slane %v1411_v53, 4  ;;  %v1311_v1 = vrot.slane %v7031_v0, 4  ;;  %v7845_v2 = vld [vmem:[%s7652_s16 + $0x50] sm:$0xf0] }
 0x137   : > { %6732 = vmatprep.subr.bf16.mxu0 %v7023_v11  ;;  %2951 = vmatmul.mubr.bf16.gmra.mrb[44].mxu1 %v1588_v41  ;;  %v1416_v5 = vrot.slane %v1414_v58, 5  ;;  %v1774_v6 = vrot.slane %v7839_v50, 4  ;;  %v1775_v7 = vrot.slane %v5857_v61, 4  ;;  %v1607_v8 = vshrl.u32 %v5856_v55, 16  ;;  %v7867_v49 = vld [vmem:[%s7652_s16 + $0x60] sm:$0xf0] }
 0x138   : > { %2958 = vmatprep.mubr.bf16.mxu1 %v1773_v43  ;;  %v1605_v10 = vsel %vm624_vm1, %v1596_v56, %v1604_v62  ;;  %v7852_v12 = vsel %vm835_vm0, %v1310_v59, %v1311_v1  ;;  %v1610_v14 = vshll.u32 %v5856_v55, 16  ;;  %v1615_v19 = vshrl.u32 %v5857_v61, 16  ;;  %v7032_v43 = vld [vmem:[%s7652_s16 + $0x58] sm:$0xf]  ;;  %v5843_v51 = vld [vmem:[%s7652_s16 + $0x68] sm:$0x1f] }
 0x139   : > { %v1417_v15 = vor.u32 %v1416_v5, %v1413_v60  ;;  %v1776_v16 = vsel %vm835_vm0, %v1774_v6, %v1775_v7  ;;  %v1609_v18 = vrot.slane %v1607_v8, 3  ;;  %v1618_v21 = vshll.u32 %v5857_v61, 16  ;;  %v7876_v60 = vld [vmem:[%s7652_s16 + $0x70] sm:$0xf0] }
 0x13a   : > { %6733 = vmatpush3.bf16.msra.mxu0 %v7023_v11  ;;  %v1409_v11 = vor.u32 %v1408_v63, %v1405_v57  ;;  %v1612_v20 = vrot.slane %v1610_v14, 4  ;;  %v1420_v23 = vshrl.u32 %v7845_v2, 16  ;;  %v1423_v24 = vshll.u32 %v7845_v2, 16  ;;  %v5860_v5 = vld [vmem:[%s7652_s16 + $0x70] sm:$0xf8] }
 0x13b   : > { %6734 = vmatprep.subr.bf16.mxu0 %v7024_v45  ;;  %v1617_v27 = vrot.slane %v1615_v19, 3  ;;  %v1428_v28 = vshrl.u32 %v5842_v9, 16  ;;  %v1431_v29 = vshll.u32 %v5842_v9, 16  ;;  %v1620_v32 = vrot.slane %v1618_v21, 4 }
 0x13c   : > { %v1418_v26 = vsel %vm886_vm2, %v1409_v11, %v1417_v15  ;;  %v1613_v31 = vor.u32 %v1612_v20, %v1609_v18  ;;  %v1422_v33 = vrot.slane %v1420_v23, 4  ;;  %v1425_v35 = vrot.slane %v1423_v24, 5  ;;  %v7885_v11 = vld [vmem:[%s7652_s16 + $0x70] sm:$0xf0] }
 0x13d   : > { %2846 = vmatmul.mubr.bf16.gmra.mrb[48].mxu0 %v7833_v37  ;;  %v1430_v38 = vrot.slane %v1428_v28, 4  ;;  %v1433_v40 = vrot.slane %v1431_v29, 5  ;;  %v1313_v41 = vrot.slane %v7845_v2, 4  ;;  %v1314_v42 = vrot.slane %v7032_v43, 4  ;;  %v5844_v29 = vld [vmem:[%s7652_s16 + $0x78] sm:$0x1f] }
 0x13e   : > { %6735 = vmatpush3.bf16.msra.mxu0 %v7024_v45  ;;  %2853 = vmatprep.mubr.bf16.mxu0 %v1418_v26  ;;  %v1621_v45 = vor.u32 %v1620_v32, %v1617_v27  ;;  %v1426_v46 = vor.u32 %v1425_v35, %v1422_v33  ;;  %v1777_v47 = vrot.slane %v7859_v30, 4  ;;  %v1778_v48 = vrot.slane %v5859_v44, 4  ;;  %v7033_v26 = vld [vmem:[%s7652_s16 + $0x68] sm:$0xf]  ;;  %v5862_v43 = vld [vmem:[%s7652_s16 + $0x80] sm:$0xf8] }
 0x13f   : > { %6736 = vmatprep.subr.bf16.mxu0 %v7025_v4  ;;  %2959 = vmatmul.mubr.bf16.gmra.mrb[48].mxu1 %v1605_v10  ;;  %v1434_v52 = vor.u32 %v1433_v40, %v1430_v38  ;;  %v1624_v54 = vshrl.u32 %v5858_v34, 16  ;;  %v1627_v53 = vshll.u32 %v5858_v34, 16  ;;  %v1632_v57 = vshrl.u32 %v5859_v44, 16  ;;  %v5861_v10 = vld [vmem:[%s7652_s16 + $0x78] sm:$0xf] }
 0x140   : > { %2966 = vmatprep.mubr.bf16.mxu1 %v1776_v16  ;;  %v1622_v55 = vsel %vm624_vm1, %v1613_v31, %v1621_v45  ;;  %v1779_v56 = vsel %vm835_vm0, %v1777_v47, %v1778_v48  ;;  %v1635_v58 = vshll.u32 %v5859_v44, 16  ;;  %v1437_v63 = vshrl.u32 %v7867_v49, 16  ;;  %v7894_v34 = vld [vmem:[%s7652_s16 + $0x80] sm:$0xf0] }
 0x141   : > { %v1435_v59 = vsel %vm886_vm2, %v1426_v46, %v1434_v52  ;;  %v1626_v61 = vrot.slane %v1624_v54, 3  ;;  %v1629_v62 = vrot.slane %v1627_v53, 4  ;;  %v1634_v0 = vrot.slane %v1632_v57, 3 }
 0x142   : > { %6737 = vmatpush3.bf16.msra.mxu0 %v7025_v4  ;;  %v1637_v1 = vrot.slane %v1635_v58, 4  ;;  %v1440_v2 = vshll.u32 %v7867_v49, 16  ;;  %v1445_v4 = vshrl.u32 %v5843_v51, 16  ;;  %v7881_v6 = vsel %vm835_vm0, %v1313_v41, %v1314_v42 }
 0x143   : > { %6738 = vmatprep.subr.bf16.mxu0 %v7026_v25  ;;  %v1630_v7 = vor.u32 %v1629_v62, %v1626_v61  ;;  %v1439_v8 = vrot.slane %v1437_v63, 4  ;;  %v1448_v9 = vshll.u32 %v5843_v51, 16  ;;  %v1316_v18 = vrot.slane %v7867_v49, 4  ;;  %v7908_v61 = vld [vmem:[%s7652_s16 + $0x80] sm:$0xf0] }
 0x144   : > { %v1638_v14 = vor.u32 %v1637_v1, %v1634_v0  ;;  %v1442_v15 = vrot.slane %v1440_v2, 5  ;;  %v1447_v16 = vrot.slane %v1445_v4, 4  ;;  %v1780_v20 = vrot.slane %v7876_v60, 4  ;;  %v5845_v2 = vld [vmem:[%s7652_s16 + $0x88] sm:$0x1f] }
 0x145   : > { %2854 = vmatmul.mubr.bf16.gmra.mrb[52].mxu0 %v7852_v12  ;;  %v1450_v19 = vrot.slane %v1448_v9, 5  ;;  %v1781_v21 = vrot.slane %v5861_v10, 4  ;;  %v1641_v23 = vshrl.u32 %v5860_v5, 16  ;;  %v1317_v27 = vrot.slane %v7033_v26, 4  ;;  %v7920_v26 = vld [vmem:[%s7652_s16 + $0x90] sm:$0xf0] }
 0x146   : > { %6739 = vmatpush3.bf16.msra.mxu0 %v7026_v25  ;;  %2861 = vmatprep.mubr.bf16.mxu0 %v1435_v59  ;;  %v1639_v24 = vsel %vm624_vm1, %v1630_v7, %v1638_v14  ;;  %v1443_v25 = vor.u32 %v1442_v15, %v1439_v8  ;;  %v1644_v28 = vshll.u32 %v5860_v5, 16  ;;  %v1649_v35 = vshrl.u32 %v5861_v10, 16  ;;  %v7034_v5 = vld [vmem:[%s7652_s16 + $0x78] sm:$0xf] }
 0x147   : > { %6740 = vmatprep.subr.bf16.mxu0 %v7027_v36  ;;  %2967 = vmatmul.mubr.bf16.gmra.mrb[52].mxu1 %v1622_v55  ;;  %v1451_v31 = vor.u32 %v1450_v19, %v1447_v16  ;;  %v1782_v32 = vsel %vm835_vm0, %v1780_v20, %v1781_v21  ;;  %v1643_v33 = vrot.slane %v1641_v23, 3  ;;  %v1652_v40 = vshll.u32 %v5861_v10, 16  ;;  %v5863_v55 = vld [vmem:[%s7652_s16 + $0x88] sm:$0xf]  ;;  %v5864_v21 = vld [vmem:[%s7652_s16 + $0x90] sm:$0xf8] }
 0x148   : > { %2974 = vmatprep.mubr.bf16.mxu1 %v1779_v56  ;;  %v1646_v38 = vrot.slane %v1644_v28, 4  ;;  %v1457_v41 = vshll.u32 %v7885_v11, 16  ;;  %v1651_v44 = vrot.slane %v1649_v35, 3  ;;  %v1462_v45 = vshrl.u32 %v5844_v29, 16 }
 0x149   : > { %v1452_v42 = vsel %vm886_vm2, %v1443_v25, %v1451_v31  ;;  %v1465_v46 = vshll.u32 %v5844_v29, 16  ;;  %v1654_v48 = vrot.slane %v1652_v40, 4  ;;  %v7902_v52 = vsel %vm835_vm0, %v1316_v18, %v1317_v27 }
 0x14a   : > { %6741 = vmatpush3.bf16.msra.mxu0 %v7027_v36  ;;  %v1454_v36 = vshrl.u32 %v7885_v11, 16  ;;  %v1647_v47 = vor.u32 %v1646_v38, %v1643_v33  ;;  %v1459_v51 = vrot.slane %v1457_v41, 5  ;;  %v1464_v54 = vrot.slane %v1462_v45, 4 }
 0x14b   : > { %v1467_v53 = vrot.slane %v1465_v46, 5  ;;  %v1655_v56 = vor.u32 %v1654_v48, %v1651_v44  ;;  %v1319_v58 = vrot.slane %v7885_v11, 4  ;;  %v1783_v59 = vrot.slane %v7894_v34, 4  ;;  %v5846_v46 = vld [vmem:[%s7652_s16 + $0x98] sm:$0x1f] }
 0x14c   : > { %v1456_v49 = vrot.slane %v1454_v36, 4  ;;  %v1784_v63 = vrot.slane %v5863_v55, 4  ;;  %v1658_v0 = vshrl.u32 %v5862_v43, 16  ;;  %v1661_v1 = vshll.u32 %v5862_v43, 16  ;;  %v7928_v36 = vld [vmem:[%s7652_s16 + $0x90] sm:$0xf0] }
 0x14d   : > { %2862 = vmatmul.mubr.bf16.gmra.mrb[56].mxu0 %v7881_v6  ;;  %v1468_v62 = vor.u32 %v1467_v53, %v1464_v54  ;;  %v1656_v4 = vsel %vm624_vm1, %v1647_v47, %v1655_v56  ;;  %v1320_v7 = vrot.slane %v7034_v5, 4  ;;  %v1666_v8 = vshrl.u32 %v5863_v55, 16  ;;  %v7035_v43 = vld [vmem:[%s7652_s16 + $0x88] sm:$0xf] }
 0x14e   : > { %2869 = vmatprep.mubr.bf16.mxu0 %v1452_v42  ;;  %v1460_v57 = vor.u32 %v1459_v51, %v1456_v49  ;;  %v1669_v9 = vshll.u32 %v5863_v55, 16  ;;  %v1660_v11 = vrot.slane %v1658_v0, 3  ;;  %v1663_v14 = vrot.slane %v1661_v1, 4 }
 0x14f   : > { %2975 = vmatmul.mubr.bf16.gmra.mrb[56].mxu1 %v1639_v24  ;;  %v1471_v15 = vshrl.u32 %v7908_v61, 16  ;;  %v1668_v16 = vrot.slane %v1666_v8, 3  ;;  %v1474_v19 = vshll.u32 %v7908_v61, 16  ;;  %v1479_v20 = vshrl.u32 %v5845_v2, 16  ;;  %v5867_v8 = vld [vmem:[%s7652_s16 + $0xa8] sm:$0xf] }
 0x150   : > { %2982 = vmatprep.mubr.bf16.mxu1 %v1782_v32  ;;  %v1469_v10 = vsel %vm886_vm2, %v1460_v57, %v1468_v62  ;;  %v1671_v18 = vrot.slane %v1669_v9, 4  ;;  %v1785_v23 = vsel %vm835_vm0, %v1783_v59, %v1784_v63  ;;  %v1482_v25 = vshll.u32 %v5845_v2, 16  ;;  %v5865_v32 = vld [vmem:[%s7652_s16 + $0x98] sm:$0xf]  ;;  %v5866_v2 = vld [vmem:[%s7652_s16 + $0xa0] sm:$0xf8] }
 0x151   : > { %v1473_v24 = vrot.slane %v1471_v15, 4  ;;  %v7923_v27 = vsel %vm835_vm0, %v1319_v58, %v1320_v7  ;;  %v1664_v28 = vor.u32 %v1663_v14, %v1660_v11  ;;  %v1476_v29 = vrot.slane %v1474_v19, 5  ;;  %v7942_v9 = vld [vmem:[%s7652_s16 + $0xa0] sm:$0xf0] }
 0x152   : > { %v1481_v31 = vrot.slane %v1479_v20, 4  ;;  %v1672_v33 = vor.u32 %v1671_v18, %v1668_v16  ;;  %v1484_v35 = vrot.slane %v1482_v25, 5  ;;  %v1322_v38 = vrot.slane %v7908_v61, 4  ;;  %v7948_v15 = vld [vmem:[%s7652_s16 + $0xa0] sm:$0xf0] }
 0x153   : > { %v1675_v40 = vshrl.u32 %v5864_v21, 16  ;;  %v1477_v41 = vor.u32 %v1476_v29, %v1473_v24  ;;  %v1323_v42 = vrot.slane %v7035_v43, 4  ;;  %v1786_v44 = vrot.slane %v7920_v26, 4 }
 0x154   : > { %v1678_v45 = vshll.u32 %v5864_v21, 16  ;;  %v1485_v47 = vor.u32 %v1484_v35, %v1481_v31  ;;  %v1787_v48 = vrot.slane %v5865_v32, 4  ;;  %v1683_v51 = vshrl.u32 %v5865_v32, 16  ;;  %v5847_v21 = vld [vmem:[%s7652_s16 + $0xa8] sm:$0x1f] }
 0x155   : > { %2870 = vmatmul.mubr.bf16.gmra.mrb[60].mxu0 %v7902_v52  ;;  %v1677_v49 = vrot.slane %v1675_v40, 3  ;;  %v1686_v53 = vshll.u32 %v5865_v32, 16  ;;  %v1488_v55 = vshrl.u32 %v7928_v36, 16  ;;  %v1491_v56 = vshll.u32 %v7928_v36, 16 }
 0x156   : > { %2877 = vmatprep.mubr.bf16.mxu0 %v1469_v10  ;;  %v1680_v54 = vrot.slane %v1678_v45, 4  ;;  %v1486_v57 = vsel %vm886_vm2, %v1477_v41, %v1485_v47  ;;  %v1685_v58 = vrot.slane %v1683_v51, 3  ;;  %v1496_v59 = vshrl.u32 %v5846_v46, 16  ;;  %v7957_v45 = vld [vmem:[%s7652_s16 + $0xb0] sm:$0xf0] }
 0x157   : > { %2983 = vmatmul.mubr.bf16.gmra.mrb[60].mxu1 %v1656_v4  ;;  %v1499_v61 = vshll.u32 %v5846_v46, 16  ;;  %v1673_v62 = vsel %vm624_vm1, %v1664_v28, %v1672_v33  ;;  %v1688_v63 = vrot.slane %v1686_v53, 4  ;;  %v1490_v0 = vrot.slane %v1488_v55, 4  ;;  %v5868_v51 = vld [vmem:[%s7652_s16 + $0xb0] sm:$0xf8] }
 0x158   : > { %2990 = vmatprep.mubr.bf16.mxu1 %v1785_v23  ;;  %v1493_v1 = vrot.slane %v1491_v56, 5  ;;  %v1788_v4 = vsel %vm835_vm0, %v1786_v44, %v1787_v48  ;;  %v1498_v5 = vrot.slane %v1496_v59, 4  ;;  %v7945_v10 = vsel %vm835_vm0, %v1322_v38, %v1323_v42  ;;  %v7036_v53 = vld [vmem:[%s7652_s16 + $0x98] sm:$0xf] }
 0x159   : > { %v1501_v7 = vrot.slane %v1499_v61, 5  ;;  %v1681_v11 = vor.u32 %v1680_v54, %v1677_v49  ;;  %v1689_v16 = vor.u32 %v1688_v63, %v1685_v58  ;;  %v1692_v19 = vshrl.u32 %v5866_v2, 16  ;;  %v5869_v58 = vld [vmem:[%s7652_s16 + $0xb8] sm:$0xf]  ;;  %v5880_v63 = vld [vmem:[%s7652_s16 + $0x28] sm:$0x1f] }
 0x15a   : > { %v1494_v14 = vor.u32 %v1493_v1, %v1490_v0  ;;  %v1695_v20 = vshll.u32 %v5866_v2, 16  ;;  %v1789_v23 = vrot.slane %v7942_v9, 4  ;;  %v1790_v24 = vrot.slane %v5867_v8, 4 }
 0x15b   : > { %v1502_v18 = vor.u32 %v1501_v7, %v1498_v5  ;;  %v1700_v25 = vshrl.u32 %v5867_v8, 16  ;;  %v1703_v28 = vshll.u32 %v5867_v8, 16  ;;  %v1694_v31 = vrot.slane %v1692_v19, 3 }
 0x15c   : > { %v1697_v32 = vrot.slane %v1695_v20, 4  ;;  %v1505_v33 = vshrl.u32 %v7948_v15, 16  ;;  %v1508_v40 = vshll.u32 %v7948_v15, 16  ;;  %v1513_v41 = vshrl.u32 %v5847_v21, 16 }
 0x15d   : > { %2878 = vmatmul.mubr.bf16.gmra.mrb[64].mxu0 %v7923_v27  ;;  %v1503_v29 = vsel %vm886_vm2, %v1494_v14, %v1502_v18  ;;  %v1702_v35 = vrot.slane %v1700_v25, 3  ;;  %v1705_v38 = vrot.slane %v1703_v28, 4  ;;  %v1833_v43 = vshrl.u32 %v7808_v39, 16 }
 0x15e   : > { %2885 = vmatprep.mubr.bf16.mxu0 %v1486_v57  ;;  %v1507_v42 = vrot.slane %v1505_v33, 4  ;;  %v1516_v44 = vshll.u32 %v5847_v21, 16  ;;  %v1836_v46 = vshll.u32 %v7808_v39, 16  ;;  %v1690_v47 = vsel %vm624_vm1, %v1681_v11, %v1689_v16 }
 0x15f   : > { %2991 = vmatmul.mubr.bf16.gmra.mrb[64].mxu1 %v1673_v62  ;;  %v1510_v48 = vrot.slane %v1508_v40, 5  ;;  %v1515_v49 = vrot.slane %v1513_v41, 4  ;;  %v1325_v54 = vrot.slane %v7928_v36, 4  ;;  %v1326_v55 = vrot.slane %v7036_v53, 4 }
 0x160   : > { %2998 = vmatprep.mubr.bf16.mxu1 %v1788_v4  ;;  %v1791_v56 = vsel %vm835_vm0, %v1789_v23, %v1790_v24  ;;  %v1518_v57 = vrot.slane %v1516_v44, 5  ;;  %v1698_v59 = vor.u32 %v1697_v32, %v1694_v31  ;;  %v1706_v61 = vor.u32 %v1705_v38, %v1702_v35  ;;  %v5881_v24 = vld [vmem:[%s7652_s16 + $0x38] sm:$0x1f]  ;;  %v5882_v31 = vld [vmem:[%s7652_s16 + $0x48] sm:$0x1f] }
 0x161   : > { %v1511_v39 = vor.u32 %v1510_v48, %v1507_v42  ;;  %v1792_v62 = vrot.slane %v7957_v45, 4  ;;  %v1793_v1 = vrot.slane %v5869_v58, 4  ;;  %v1709_v2 = vshrl.u32 %v5868_v51, 16 }
 0x162   : > { %v1519_v0 = vor.u32 %v1518_v57, %v1515_v49  ;;  %v1712_v4 = vshll.u32 %v5868_v51, 16  ;;  %v1717_v36 = vshrl.u32 %v5869_v58, 16  ;;  %v1720_v5 = vshll.u32 %v5869_v58, 16 }
 0x163   : > { %v1816_v7 = vshrl.u32 %v7797_v22, 16  ;;  %v1819_v8 = vshll.u32 %v7797_v22, 16  ;;  %v7972_v11 = vsel %vm835_vm0, %v1325_v54, %v1326_v55  ;;  %v1328_v14 = vrot.slane %v7948_v15, 4 }
 0x164   : > { %v1824_v16 = vshrl.u32 %v5880_v63, 16  ;;  %v1827_v18 = vshll.u32 %v5880_v63, 16  ;;  %v1520_v19 = vsel %vm886_vm2, %v1511_v39, %v1519_v0  ;;  %v1329_v20 = vrot.slane %v7777_v13, 4  ;;  %v5884_v0 = vld [vmem:[%s7652_s16 + $0x68] sm:$0x1f] }
 0x165   : > { %2886 = vmatmul.mubr.bf16.gmra.mrb[68].mxu0 %v7945_v10  ;;  %v1818_v21 = vrot.slane %v1816_v7, 4  ;;  %v1821_v23 = vrot.slane %v1819_v8, 5  ;;  %v1707_v25 = vsel %vm624_vm1, %v1698_v59, %v1706_v61  ;;  %v1794_v28 = vsel %vm835_vm0, %v1792_v62, %v1793_v1  ;;  %v5883_v61 = vld [vmem:[%s7652_s16 + $0x58] sm:$0x1f] }
 0x166   : > { %2893 = vmatprep.mubr.bf16.mxu0 %v1503_v29  ;;  %v1826_v29 = vrot.slane %v1824_v16, 4  ;;  %v1829_v22 = vrot.slane %v1827_v18, 5  ;;  %v1711_v32 = vrot.slane %v1709_v2, 3  ;;  %v1714_v15 = vrot.slane %v1712_v4, 4 }
 0x167   : > { %2999 = vmatmul.mubr.bf16.gmra.mrb[68].mxu1 %v1690_v47  ;;  %v1719_v33 = vrot.slane %v1717_v36, 3  ;;  %v1722_v35 = vrot.slane %v1720_v5, 4  ;;  %v1841_v38 = vshrl.u32 %v5881_v24, 16  ;;  %v1844_v40 = vshll.u32 %v5881_v24, 16 }
 0x168   : > { %3006 = vmatprep.mubr.bf16.mxu1 %v1791_v56  ;;  %v1850_v13 = vshrl.u32 %v7823_v17, 16  ;;  %v1853_v41 = vshll.u32 %v7823_v17, 16  ;;  %v1822_v42 = vor.u32 %v1821_v23, %v1818_v21  ;;  %v1830_v44 = vor.u32 %v1829_v22, %v1826_v29 }
 0x169   : > { %v1858_v47 = vshrl.u32 %v5882_v31, 16  ;;  %v1861_v48 = vshll.u32 %v5882_v31, 16  ;;  %v1835_v49 = vrot.slane %v1833_v43, 4  ;;  %v1838_v51 = vrot.slane %v1836_v46, 5 }
 0x16a   : > { %v1330_v54 = vsel %vm835_vm0, %v1328_v14, %v1329_v20  ;;  %v1715_v53 = vor.u32 %v1714_v15, %v1711_v32  ;;  %v1723_v55 = vor.u32 %v1722_v35, %v1719_v33  ;;  %v1843_v56 = vrot.slane %v1841_v38, 4  ;;  %v5886_v32 = vld [vmem:[%s7652_s16 + $0x88] sm:$0x1f] }
 0x16b   : > { %v1846_v57 = vrot.slane %v1844_v40, 5  ;;  %v1852_v58 = vrot.slane %v1850_v13, 4  ;;  %v1855_v59 = vrot.slane %v1853_v41, 5  ;;  %v1831_v17 = vsel %vm886_vm2, %v1822_v42, %v1830_v44 }
 0x16c   : > { %v1860_v39 = vrot.slane %v1858_v47, 4  ;;  %v1863_v62 = vrot.slane %v1861_v48, 5  ;;  %v1867_v63 = vshrl.u32 %v7839_v50, 16  ;;  %v1870_v43 = vshll.u32 %v7839_v50, 16 }
 0x16d   : > { %2894 = vmatmul.mubr.bf16.gmra.mrb[72].mxu0 %v7972_v11  ;;  %v1724_v46 = vsel %vm624_vm1, %v1715_v53, %v1723_v55  ;;  %v1875_v1 = vshrl.u32 %v5883_v61, 16  ;;  %v1878_v2 = vshll.u32 %v5883_v61, 16  ;;  %v1839_v4 = vor.u32 %v1838_v51, %v1835_v49  ;;  %v5887_v61 = vld [vmem:[%s7652_s16 + $0x98] sm:$0x1f] }
 0x16e   : > { %2901 = vmatprep.mubr.bf16.mxu0 %v1520_v19  ;;  %v1847_v36 = vor.u32 %v1846_v57, %v1843_v56  ;;  %v1856_v5 = vor.u32 %v1855_v59, %v1852_v58  ;;  %v1884_v7 = vshrl.u32 %v7859_v30, 16  ;;  %v1864_v8 = vor.u32 %v1863_v62, %v1860_v39 }
 0x16f   : > { %3007 = vmatmul.mubr.bf16.gmra.mrb[72].mxu1 %v1707_v25  ;;  %v1887_v14 = vshll.u32 %v7859_v30, 16  ;;  %v1892_v16 = vshrl.u32 %v5884_v0, 16  ;;  %v1895_v18 = vshll.u32 %v5884_v0, 16  ;;  %v1869_v50 = vrot.slane %v1867_v63, 4  ;;  %v5885_v25 = vld [vmem:[%s7652_s16 + $0x78] sm:$0x1f] }
 0x170   : > { %3014 = vmatprep.mubr.bf16.mxu1 %v1794_v28  ;;  %v1872_v19 = vrot.slane %v1870_v43, 5  ;;  %v1877_v20 = vrot.slane %v1875_v1, 4  ;;  %v1880_v21 = vrot.slane %v1878_v2, 5  ;;  %v1848_v23 = vsel %vm886_vm2, %v1839_v4, %v1847_v36 }
 0x171   : > { %v1886_v24 = vrot.slane %v1884_v7, 4  ;;  %v1865_v28 = vsel %vm886_vm2, %v1856_v5, %v1864_v8  ;;  %v1889_v29 = vrot.slane %v1887_v14, 5  ;;  %v1894_v22 = vrot.slane %v1892_v16, 4 }
 0x172   : > { %v1897_v31 = vrot.slane %v1895_v18, 5  ;;  %v1873_v15 = vor.u32 %v1872_v19, %v1869_v50  ;;  %v1901_v30 = vshrl.u32 %v7876_v60, 16  ;;  %v1881_v33 = vor.u32 %v1880_v21, %v1877_v20 }
 0x173   : > { %v1904_v35 = vshll.u32 %v7876_v60, 16  ;;  %v1909_v38 = vshrl.u32 %v5885_v25, 16  ;;  %v1912_v40 = vshll.u32 %v5885_v25, 16  ;;  %v1918_v13 = vshrl.u32 %v7894_v34, 16 }
 0x174   : > { %v1921_v41 = vshll.u32 %v7894_v34, 16  ;;  %v1926_v42 = vshrl.u32 %v5886_v32, 16  ;;  %v1929_v44 = vshll.u32 %v5886_v32, 16  ;;  %v1890_v47 = vor.u32 %v1889_v29, %v1886_v24 }
 0x175   : > { %2902 = vmatmul.mubr.bf16.gmra.mrb[76].mxu0 %v1330_v54  ;;  %v1898_v48 = vor.u32 %v1897_v31, %v1894_v22  ;;  %v1903_v49 = vrot.slane %v1901_v30, 4  ;;  %v1882_v51 = vsel %vm886_vm2, %v1873_v15, %v1881_v33  ;;  %v1906_v54 = vrot.slane %v1904_v35, 5 }
 0x176   : > { %6742 = vmatprep.mubr.bf16.mxu0 %v1831_v17  ;;  %v1911_v53 = vrot.slane %v1909_v38, 4  ;;  %v1914_v55 = vrot.slane %v1912_v40, 5  ;;  %v1920_v60 = vrot.slane %v1918_v13, 4  ;;  %v1923_v56 = vrot.slane %v1921_v41, 5  ;;  %v5888_v17 = vld [vmem:[%s7652_s16 + $0xa8] sm:$0x1f] }
 0x177   : > { %3015 = vmatmul.mubr.bf16.gmra.mrb[76].mxu1 %v1724_v46  ;;  %v1928_v57 = vrot.slane %v1926_v42, 4  ;;  %v1931_v58 = vrot.slane %v1929_v44, 5  ;;  %v1899_v59 = vsel %vm886_vm2, %v1890_v47, %v1898_v48  ;;  %v1907_v34 = vor.u32 %v1906_v54, %v1903_v49 }
 0x178   : > { %v1915_v39 = vor.u32 %v1914_v55, %v1911_v53  ;;  %v1935_v62 = vshrl.u32 %v7920_v26, 16  ;;  %v1938_v63 = vshll.u32 %v7920_v26, 16  ;;  %v1924_v43 = vor.u32 %v1923_v56, %v1920_v60 }
 0x179   : > { %v1932_v0 = vor.u32 %v1931_v58, %v1928_v57  ;;  %v1943_v46 = vshrl.u32 %v5887_v61, 16  ;;  %v1946_v1 = vshll.u32 %v5887_v61, 16  ;;  %v1952_v2 = vshrl.u32 %v7942_v9, 16 }
 0x17a   : > { %v1955_v4 = vshll.u32 %v7942_v9, 16  ;;  %v1960_v36 = vshrl.u32 %v5888_v17, 16  ;;  %v1963_v5 = vshll.u32 %v5888_v17, 16  ;;  %v1937_v7 = vrot.slane %v1935_v62, 4 }
 0x17b   : > { %v1940_v8 = vrot.slane %v1938_v63, 5  ;;  %v1916_v14 = vsel %vm886_vm2, %v1907_v34, %v1915_v39  ;;  %v1933_v16 = vsel %vm886_vm2, %v1924_v43, %v1932_v0  ;;  %v1945_v18 = vrot.slane %v1943_v46, 4 }
 0x17c   : > { %v1948_v26 = vrot.slane %v1946_v1, 5  ;;  %v1954_v50 = vrot.slane %v1952_v2, 4  ;;  %v1957_v19 = vrot.slane %v1955_v4, 5  ;;  %v1962_v20 = vrot.slane %v1960_v36, 4 }
 0x17d   : > { %6743 = vmatmul.mubr.bf16.vlgmr.msra.gmra.mrb[80].mxu0 %v1848_v23  ;;  %v1965_v21 = vrot.slane %v1963_v5, 5  ;;  %v5889_v23 = vld [vmem:[%s7652_s16 + $0xb8] sm:$0x1f]  ;;  %v1941_v24 = vor.u32 %v1940_v8, %v1937_v7  ;;  %v1969_v25 = vshrl.u32 %v7957_v45, 16 }
 0x17e   : > { %6746 = vmatprep.mubr.bf16.mxu0 %v1865_v28  ;;  %v1949_v9 = vor.u32 %v1948_v26, %v1945_v18  ;;  %v1972_v28 = vshll.u32 %v7957_v45, 16  ;;  %v1977_v29 = vshrl.u32 %v5889_v23, 16  ;;  %v1980_v22 = vshll.u32 %v5889_v23, 16 }
 0x17f   : > { %v1958_v31 = vor.u32 %v1957_v19, %v1954_v50  ;;  %v1966_v32 = vor.u32 %v1965_v21, %v1962_v20  ;;  %v1971_v15 = vrot.slane %v1969_v25, 4 }
 0x180   : > { %v1950_v30 = vsel %vm886_vm2, %v1941_v24, %v1949_v9  ;;  %v1974_v33 = vrot.slane %v1972_v28, 5  ;;  %v1979_v35 = vrot.slane %v1977_v29, 4  ;;  %v1982_v38 = vrot.slane %v1980_v22, 5 }
 0x181   : > { %v1967_v40 = vsel %vm886_vm2, %v1958_v31, %v1966_v32 }
 0x182   : > { %v1975_v13 = vor.u32 %v1974_v33, %v1971_v15  ;;  %v1983_v41 = vor.u32 %v1982_v38, %v1979_v35 }
 0x184   : > { %v1984_v42 = vsel %vm886_vm2, %v1975_v13, %v1983_v41 }
 0x185   : > { %6747 = vmatmul.mubr.bf16.gmra.mrb[84].mxu0 %v1882_v51 }
 0x186   : > { %6750 = vmatprep.mubr.bf16.mxu0 %v1899_v59 }
 0x18d   : > { %6751 = vmatmul.mubr.bf16.gmra.mrb[88].mxu0 %v1916_v14 }
 0x18e   : > { %6754 = vmatprep.mubr.bf16.mxu0 %v1933_v16 }
 0x195   : > { %6755 = vmatmul.mubr.bf16.gmra.mrb[92].mxu0 %v1950_v30 }
 0x196   : > { %6758 = vmatprep.mubr.bf16.mxu0 %v1967_v40 }
 0x19d   : > { %6759 = vmatmul.mubr.bf16.gmra.mrb[96].mxu0 %v1984_v42 }
 0x1b0   : > { %v6148_v45 = vpop.f32.mrb[0].mxu0 }
 0x1b1   : > { %v6149_v44 = vpop.f32.mrb[1].mxu0 }
 0x1b2   : > { %v6150_v47 = vadd.f32 %v6149_v44, %v6148_v45  ;;  %v6151_v48 = vpop.f32.mrb[2].mxu0  ;;  %v6224_v49 = vpop.f32.mrb[0].mxu1 }
 0x1b3   : > { %v6152_v51 = vpop.f32.mrb[3].mxu0  ;;  %v6225_v54 = vpop.f32.mrb[1].mxu1 }
 0x1b4   : > { %v6153_v53 = vadd.f32 %v6152_v51, %v6151_v48  ;;  %v6226_v55 = vadd.f32 %v6225_v54, %v6224_v49  ;;  %v6227_v60 = vpop.f32.mrb[2].mxu1 }
 0x1b5   : > { %v6228_v56 = vpop.f32.mrb[3].mxu1 }
 0x1b6   : > { %v8017_v57 = vadd.f32 %v6226_v55, %v6150_v47  ;;  %v6229_v58 = vadd.f32 %v6228_v56, %v6227_v60 }
 0x1b8   : > { %v8019_v59 = vadd.f32 %v6229_v58, %v6153_v53  ;;  %v6154_v61 = vpop.f32.mrb[4].mxu0 }
 0x1b9   : > { %v6155_v17 = vpop.f32.mrb[5].mxu0 }
 0x1ba   : > { %v6156_v34 = vadd.f32 %v6155_v17, %v6154_v61  ;;  %v6157_v39 = vpop.f32.mrb[6].mxu0  ;;  %v6230_v62 = vpop.f32.mrb[4].mxu1 }
 0x1bb   : > { %v6158_v63 = vpop.f32.mrb[7].mxu0  ;;  %v6231_v43 = vpop.f32.mrb[5].mxu1 }
 0x1bc   : > { %v6159_v0 = vadd.f32 %v6158_v63, %v6157_v39  ;;  %v6232_v46 = vadd.f32 %v6231_v43, %v6230_v62  ;;  %v6233_v1 = vpop.f32.mrb[6].mxu1 }
 0x1bd   : > { %v6234_v2 = vpop.f32.mrb[7].mxu1 }
 0x1be   : > { %v8021_v4 = vadd.f32 %v6232_v46, %v6156_v34  ;;  %v6235_v36 = vadd.f32 %v6234_v2, %v6233_v1 }
 0x1c0   : > { %v8023_v5 = vadd.f32 %v6235_v36, %v6159_v0  ;;  %v6160_v7 = vpop.f32.mrb[8].mxu0 }
 0x1c1   : > { %v6161_v8 = vpop.f32.mrb[9].mxu0 }
 0x1c2   : > { %v6162_v14 = vadd.f32 %v6161_v8, %v6160_v7  ;;  %v6163_v16 = vpop.f32.mrb[10].mxu0  ;;  %v6236_v18 = vpop.f32.mrb[8].mxu1 }
 0x1c3   : > { %v6164_v26 = vpop.f32.mrb[11].mxu0  ;;  %v6237_v50 = vpop.f32.mrb[9].mxu1 }
 0x1c4   : > { %v6165_v19 = vadd.f32 %v6164_v26, %v6163_v16  ;;  %v6238_v20 = vadd.f32 %v6237_v50, %v6236_v18  ;;  %v6239_v21 = vpop.f32.mrb[10].mxu1 }
 0x1c5   : > { %v6240_v23 = vpop.f32.mrb[11].mxu1 }
 0x1c6   : > { %v8025_v24 = vadd.f32 %v6238_v20, %v6162_v14  ;;  %v6241_v25 = vadd.f32 %v6240_v23, %v6239_v21 }
 0x1c8   : > { %v8027_v9 = vadd.f32 %v6241_v25, %v6165_v19  ;;  %v6166_v28 = vpop.f32.mrb[12].mxu0 }
 0x1c9   : > { %v6167_v29 = vpop.f32.mrb[13].mxu0 }
 0x1ca   : > { %v6168_v22 = vadd.f32 %v6167_v29, %v6166_v28  ;;  %v6169_v31 = vpop.f32.mrb[14].mxu0  ;;  %v6242_v32 = vpop.f32.mrb[12].mxu1 }
 0x1cb   : > { %v6170_v15 = vpop.f32.mrb[15].mxu0  ;;  %v6243_v30 = vpop.f32.mrb[13].mxu1 }
 0x1cc   : > { %v6171_v33 = vadd.f32 %v6170_v15, %v6169_v31  ;;  %v6244_v35 = vadd.f32 %v6243_v30, %v6242_v32  ;;  %v6245_v38 = vpop.f32.mrb[14].mxu1 }
 0x1cd   : > { %v6246_v40 = vpop.f32.mrb[15].mxu1 }
 0x1ce   : > { %v8029_v13 = vadd.f32 %v6244_v35, %v6168_v22  ;;  %v6247_v41 = vadd.f32 %v6246_v40, %v6245_v38 }
 0x1d0   : > { %v8031_v42 = vadd.f32 %v6247_v41, %v6171_v33  ;;  %v6172_v45 = vpop.f32.mrb[16].mxu0 }
 0x1d1   : > { %v6173_v44 = vpop.f32.mrb[17].mxu0 }
 0x1d2   : > { %v6174_v47 = vadd.f32 %v6173_v44, %v6172_v45  ;;  %v6175_v48 = vpop.f32.mrb[18].mxu0  ;;  %v6248_v49 = vpop.f32.mrb[16].mxu1 }
 0x1d3   : > { %v6176_v51 = vpop.f32.mrb[19].mxu0  ;;  %v6249_v54 = vpop.f32.mrb[17].mxu1 }
 0x1d4   : > { %v6177_v53 = vadd.f32 %v6176_v51, %v6175_v48  ;;  %v6250_v55 = vadd.f32 %v6249_v54, %v6248_v49  ;;  %v6251_v60 = vpop.f32.mrb[18].mxu1 }
 0x1d5   : > { %v6252_v56 = vpop.f32.mrb[19].mxu1 }
 0x1d6   : > { %v8033_v58 = vadd.f32 %v6250_v55, %v6174_v47  ;;  %v6253_v61 = vadd.f32 %v6252_v56, %v6251_v60 }
 0x1d8   : > { %v8035_v17 = vadd.f32 %v6253_v61, %v6177_v53  ;;  %v6178_v34 = vpop.f32.mrb[20].mxu0 }
 0x1d9   : > { %v6179_v39 = vpop.f32.mrb[21].mxu0 }
 0x1da   : > { %v6180_v62 = vadd.f32 %v6179_v39, %v6178_v34  ;;  %v6181_v63 = vpop.f32.mrb[22].mxu0  ;;  %v6254_v43 = vpop.f32.mrb[20].mxu1 }
 0x1db   : > { %v6182_v0 = vpop.f32.mrb[23].mxu0  ;;  %v6255_v46 = vpop.f32.mrb[21].mxu1 }
 0x1dc   : > { %v6183_v1 = vadd.f32 %v6182_v0, %v6181_v63  ;;  %v6256_v2 = vadd.f32 %v6255_v46, %v6254_v43  ;;  %v6257_v36 = vpop.f32.mrb[22].mxu1 }
 0x1dd   : > { %v6258_v7 = vpop.f32.mrb[23].mxu1 }
 0x1de   : > { %v8037_v8 = vadd.f32 %v6256_v2, %v6180_v62  ;;  %v6259_v14 = vadd.f32 %v6258_v7, %v6257_v36 }
 0x1e0   : > { %v8039_v16 = vadd.f32 %v6259_v14, %v6183_v1  ;;  %v6184_v18 = vpop.f32.mrb[24].mxu0 }
 0x1e1   : > { %v6185_v26 = vpop.f32.mrb[25].mxu0 }
 0x1e2   : > { %v6186_v50 = vadd.f32 %v6185_v26, %v6184_v18  ;;  %v6187_v19 = vpop.f32.mrb[26].mxu0  ;;  %v6260_v20 = vpop.f32.mrb[24].mxu1 }
 0x1e3   : > { %v6188_v21 = vpop.f32.mrb[27].mxu0  ;;  %v6261_v23 = vpop.f32.mrb[25].mxu1 }
 0x1e4   : > { %v6189_v25 = vadd.f32 %v6188_v21, %v6187_v19  ;;  %v6262_v28 = vadd.f32 %v6261_v23, %v6260_v20  ;;  %v6263_v29 = vpop.f32.mrb[26].mxu1 }
 0x1e5   : > { %v6264_v22 = vpop.f32.mrb[27].mxu1 }
 0x1e6   : > { %v8041_v31 = vadd.f32 %v6262_v28, %v6186_v50  ;;  %v6265_v32 = vadd.f32 %v6264_v22, %v6263_v29 }
 0x1e8   : > { %v8043_v15 = vadd.f32 %v6265_v32, %v6189_v25  ;;  %v6190_v30 = vpop.f32.mrb[28].mxu0 }
 0x1e9   : > { %v6191_v33 = vpop.f32.mrb[29].mxu0 }
 0x1ea   : > { %v6192_v35 = vadd.f32 %v6191_v33, %v6190_v30  ;;  %v6193_v38 = vpop.f32.mrb[30].mxu0  ;;  %v6266_v40 = vpop.f32.mrb[28].mxu1 }
 0x1eb   : > { %v6194_v41 = vpop.f32.mrb[31].mxu0  ;;  %v6267_v45 = vpop.f32.mrb[29].mxu1 }
 0x1ec   : > { %v6195_v44 = vadd.f32 %v6194_v41, %v6193_v38  ;;  %v6268_v47 = vadd.f32 %v6267_v45, %v6266_v40  ;;  %v6269_v48 = vpop.f32.mrb[30].mxu1 }
 0x1ed   : > { %v6270_v49 = vpop.f32.mrb[31].mxu1 }
 0x1ee   : > { %v8045_v51 = vadd.f32 %v6268_v47, %v6192_v35  ;;  %v6271_v54 = vadd.f32 %v6270_v49, %v6269_v48 }
 0x1f0   : > { %v8047_v53 = vadd.f32 %v6271_v54, %v6195_v44  ;;  %v6196_v55 = vpop.f32.mrb[32].mxu0 }
 0x1f1   : > { %v6197_v60 = vpop.f32.mrb[33].mxu0 }
 0x1f2   : > { %v6198_v56 = vadd.f32 %v6197_v60, %v6196_v55  ;;  %v6199_v61 = vpop.f32.mrb[34].mxu0  ;;  %v6272_v34 = vpop.f32.mrb[32].mxu1 }
 0x1f3   : > { %v6200_v39 = vpop.f32.mrb[35].mxu0  ;;  %v6273_v62 = vpop.f32.mrb[33].mxu1 }
 0x1f4   : > { %v6201_v63 = vadd.f32 %v6200_v39, %v6199_v61  ;;  %v6274_v43 = vadd.f32 %v6273_v62, %v6272_v34  ;;  %v6275_v0 = vpop.f32.mrb[34].mxu1 }
 0x1f5   : > { %v6276_v46 = vpop.f32.mrb[35].mxu1 }
 0x1f6   : > { %v8049_v1 = vadd.f32 %v6274_v43, %v6198_v56  ;;  %v6277_v2 = vadd.f32 %v6276_v46, %v6275_v0 }
 0x1f8   : > { %v8051_v36 = vadd.f32 %v6277_v2, %v6201_v63  ;;  %v6202_v7 = vpop.f32.mrb[36].mxu0 }
 0x1f9   : > { %v6203_v14 = vpop.f32.mrb[37].mxu0 }
 0x1fa   : > { %v6204_v18 = vadd.f32 %v6203_v14, %v6202_v7  ;;  %v6205_v26 = vpop.f32.mrb[38].mxu0  ;;  %v6278_v50 = vpop.f32.mrb[36].mxu1 }
 0x1fb   : > { %v6206_v19 = vpop.f32.mrb[39].mxu0  ;;  %v6279_v20 = vpop.f32.mrb[37].mxu1 }
 0x1fc   : > { %v6207_v21 = vadd.f32 %v6206_v19, %v6205_v26  ;;  %v6280_v23 = vadd.f32 %v6279_v20, %v6278_v50  ;;  %v6281_v25 = vpop.f32.mrb[38].mxu1 }
 0x1fd   : > { %v6282_v28 = vpop.f32.mrb[39].mxu1 }
 0x1fe   : > { %v8053_v29 = vadd.f32 %v6280_v23, %v6204_v18  ;;  %v6283_v22 = vadd.f32 %v6282_v28, %v6281_v25 }
 0x200   : > { %v6300_v32 = vpop.f32.mrb[40].mxu0  ;;  %v8055_v30 = vadd.f32 %v6283_v22, %v6207_v21 }
 0x201   : > { %v6301_v33 = vpop.f32.mrb[41].mxu0 }
 0x202   : > { %v6302_v35 = vadd.f32 %v6301_v33, %v6300_v32  ;;  %v6303_v38 = vpop.f32.mrb[42].mxu0  ;;  %v6376_v40 = vpop.f32.mrb[40].mxu1 }
 0x203   : > { %v6304_v41 = vpop.f32.mrb[43].mxu0  ;;  %v6377_v47 = vpop.f32.mrb[41].mxu1 }
 0x204   : > { %v2832_v45 = vadd.f32 %v6302_v35, %v8017_v57  ;;  %v6305_v44 = vadd.f32 %v6304_v41, %v6303_v38  ;;  %v6378_v48 = vadd.f32 %v6377_v47, %v6376_v40  ;;  %v6379_v49 = vpop.f32.mrb[42].mxu1 }
 0x205   : > { %v6380_v55 = vpop.f32.mrb[43].mxu1 }
 0x206   : > { %v2835_v54 = vadd.f32 %v6305_v44, %v8019_v59  ;;  %v6381_v60 = vadd.f32 %v6380_v55, %v6379_v49  ;;  %v8059_v56 = vadd.f32 %v6378_v48, %v2832_v45 }
 0x208   : > { %v6306_v61 = vpop.f32.mrb[44].mxu0  ;;  %v8061_v39 = vadd.f32 %v6381_v60, %v2835_v54 }
 0x209   : > { %v6307_v34 = vpop.f32.mrb[45].mxu0 }
 0x20a   : > { %v6308_v62 = vadd.f32 %v6307_v34, %v6306_v61  ;;  %v6309_v63 = vpop.f32.mrb[46].mxu0  ;;  %v6382_v43 = vpop.f32.mrb[44].mxu1 }
 0x20b   : > { %v6310_v0 = vpop.f32.mrb[47].mxu0  ;;  %v6383_v2 = vpop.f32.mrb[45].mxu1 }
 0x20c   : > { %v2840_v57 = vadd.f32 %v6308_v62, %v8021_v4  ;;  %v6311_v46 = vadd.f32 %v6310_v0, %v6309_v63  ;;  %v6384_v7 = vadd.f32 %v6383_v2, %v6382_v43  ;;  %v6385_v14 = vpop.f32.mrb[46].mxu1 }
 0x20d   : > { %v6386_v18 = vpop.f32.mrb[47].mxu1 }
 0x20e   : > { %v2843_v59 = vadd.f32 %v6311_v46, %v8023_v5  ;;  %v6387_v26 = vadd.f32 %v6386_v18, %v6385_v14  ;;  %v8065_v50 = vadd.f32 %v6384_v7, %v2840_v57 }
 0x210   : > { %v6312_v19 = vpop.f32.mrb[48].mxu0  ;;  %v8067_v21 = vadd.f32 %v6387_v26, %v2843_v59 }
 0x211   : > { %v6313_v20 = vpop.f32.mrb[49].mxu0 }
 0x212   : > { %v6314_v23 = vadd.f32 %v6313_v20, %v6312_v19  ;;  %v6315_v25 = vpop.f32.mrb[50].mxu0  ;;  %v6388_v28 = vpop.f32.mrb[48].mxu1 }
 0x213   : > { %v6316_v22 = vpop.f32.mrb[51].mxu0  ;;  %v6389_v33 = vpop.f32.mrb[49].mxu1 }
 0x214   : > { %v2848_v4 = vadd.f32 %v6314_v23, %v8025_v24  ;;  %v6317_v32 = vadd.f32 %v6316_v22, %v6315_v25  ;;  %v6390_v35 = vadd.f32 %v6389_v33, %v6388_v28  ;;  %v6391_v38 = vpop.f32.mrb[50].mxu1 }
 0x215   : > { %v6392_v40 = vpop.f32.mrb[51].mxu1 }
 0x216   : > { %v2851_v5 = vadd.f32 %v6317_v32, %v8027_v9  ;;  %v6393_v41 = vadd.f32 %v6392_v40, %v6391_v38  ;;  %v8071_v45 = vadd.f32 %v6390_v35, %v2848_v4 }
 0x218   : > { %v6318_v44 = vpop.f32.mrb[52].mxu0  ;;  %v8073_v48 = vadd.f32 %v6393_v41, %v2851_v5 }
 0x219   : > { %v6319_v47 = vpop.f32.mrb[53].mxu0 }
 0x21a   : > { %v6320_v49 = vadd.f32 %v6319_v47, %v6318_v44  ;;  %v6321_v54 = vpop.f32.mrb[54].mxu0  ;;  %v6394_v55 = vpop.f32.mrb[52].mxu1 }
 0x21b   : > { %v6322_v60 = vpop.f32.mrb[55].mxu0  ;;  %v6395_v34 = vpop.f32.mrb[53].mxu1 }
 0x21c   : > { %v2856_v24 = vadd.f32 %v6320_v49, %v8029_v13  ;;  %v6323_v61 = vadd.f32 %v6322_v60, %v6321_v54  ;;  %v6396_v62 = vadd.f32 %v6395_v34, %v6394_v55  ;;  %v6397_v63 = vpop.f32.mrb[54].mxu1 }
 0x21d   : > { %v6398_v43 = vpop.f32.mrb[55].mxu1 }
 0x21e   : > { %v2859_v9 = vadd.f32 %v6323_v61, %v8031_v42  ;;  %v6399_v0 = vadd.f32 %v6398_v43, %v6397_v63  ;;  %v8077_v57 = vadd.f32 %v6396_v62, %v2856_v24 }
 0x220   : > { %v6324_v46 = vpop.f32.mrb[56].mxu0  ;;  %v8079_v7 = vadd.f32 %v6399_v0, %v2859_v9 }
 0x221   : > { %v6325_v2 = vpop.f32.mrb[57].mxu0 }
 0x222   : > { %v6326_v14 = vadd.f32 %v6325_v2, %v6324_v46  ;;  %v6327_v59 = vpop.f32.mrb[58].mxu0  ;;  %v6400_v18 = vpop.f32.mrb[56].mxu1 }
 0x223   : > { %v6328_v26 = vpop.f32.mrb[59].mxu0  ;;  %v6401_v20 = vpop.f32.mrb[57].mxu1 }
 0x224   : > { %v2864_v13 = vadd.f32 %v6326_v14, %v8033_v58  ;;  %v6329_v19 = vadd.f32 %v6328_v26, %v6327_v59  ;;  %v6402_v23 = vadd.f32 %v6401_v20, %v6400_v18  ;;  %v6403_v25 = vpop.f32.mrb[58].mxu1 }
 0x225   : > { %v6404_v28 = vpop.f32.mrb[59].mxu1 }
 0x226   : > { %v2867_v42 = vadd.f32 %v6329_v19, %v8035_v17  ;;  %v6405_v22 = vadd.f32 %v6404_v28, %v6403_v25  ;;  %v8083_v4 = vadd.f32 %v6402_v23, %v2864_v13 }
 0x228   : > { %v6330_v32 = vpop.f32.mrb[60].mxu0  ;;  %v8085_v35 = vadd.f32 %v6405_v22, %v2867_v42 }
 0x229   : > { %v6331_v33 = vpop.f32.mrb[61].mxu0 }
 0x22a   : > { %v6332_v38 = vadd.f32 %v6331_v33, %v6330_v32  ;;  %v6333_v5 = vpop.f32.mrb[62].mxu0  ;;  %v6406_v40 = vpop.f32.mrb[60].mxu1 }
 0x22b   : > { %v6334_v41 = vpop.f32.mrb[63].mxu0  ;;  %v6407_v47 = vpop.f32.mrb[61].mxu1 }
 0x22c   : > { %v2872_v58 = vadd.f32 %v6332_v38, %v8037_v8  ;;  %v6335_v44 = vadd.f32 %v6334_v41, %v6333_v5  ;;  %v6408_v49 = vadd.f32 %v6407_v47, %v6406_v40  ;;  %v6409_v54 = vpop.f32.mrb[62].mxu1 }
 0x22d   : > { %v6410_v55 = vpop.f32.mrb[63].mxu1 }
 0x22e   : > { %v2875_v17 = vadd.f32 %v6335_v44, %v8039_v16  ;;  %v6411_v60 = vadd.f32 %v6410_v55, %v6409_v54  ;;  %v8089_v24 = vadd.f32 %v6408_v49, %v2872_v58 }
 0x230   : > { %v6336_v61 = vpop.f32.mrb[64].mxu0  ;;  %v8091_v62 = vadd.f32 %v6411_v60, %v2875_v17 }
 0x231   : > { %v6337_v34 = vpop.f32.mrb[65].mxu0 }
 0x232   : > { %v6338_v63 = vadd.f32 %v6337_v34, %v6336_v61  ;;  %v6339_v9 = vpop.f32.mrb[66].mxu0  ;;  %v6412_v43 = vpop.f32.mrb[64].mxu1 }
 0x233   : > { %v6340_v0 = vpop.f32.mrb[67].mxu0  ;;  %v6413_v2 = vpop.f32.mrb[65].mxu1 }
 0x234   : > { %v2880_v8 = vadd.f32 %v6338_v63, %v8041_v31  ;;  %v6341_v46 = vadd.f32 %v6340_v0, %v6339_v9  ;;  %v6414_v14 = vadd.f32 %v6413_v2, %v6412_v43  ;;  %v6415_v59 = vpop.f32.mrb[66].mxu1 }
 0x235   : > { %v6416_v18 = vpop.f32.mrb[67].mxu1 }
 0x236   : > { %v2883_v16 = vadd.f32 %v6341_v46, %v8043_v15  ;;  %v6417_v26 = vadd.f32 %v6416_v18, %v6415_v59  ;;  %v8095_v13 = vadd.f32 %v6414_v14, %v2880_v8 }
 0x238   : > { %v6342_v19 = vpop.f32.mrb[68].mxu0  ;;  %v8097_v23 = vadd.f32 %v6417_v26, %v2883_v16 }
 0x239   : > { %v6343_v20 = vpop.f32.mrb[69].mxu0 }
 0x23a   : > { %v6344_v25 = vadd.f32 %v6343_v20, %v6342_v19  ;;  %v6345_v42 = vpop.f32.mrb[70].mxu0  ;;  %v6418_v28 = vpop.f32.mrb[68].mxu1 }
 0x23b   : > { %v6346_v22 = vpop.f32.mrb[71].mxu0  ;;  %v6419_v33 = vpop.f32.mrb[69].mxu1 }
 0x23c   : > { %v2888_v31 = vadd.f32 %v6344_v25, %v8045_v51  ;;  %v6347_v32 = vadd.f32 %v6346_v22, %v6345_v42  ;;  %v6420_v38 = vadd.f32 %v6419_v33, %v6418_v28  ;;  %v6421_v5 = vpop.f32.mrb[70].mxu1  ;;  %v8118_v33 = vld [vmem:[%s8617_s2] ss:$0 sm:$0xff] }
 0x23d   : > { %v6422_v40 = vpop.f32.mrb[71].mxu1 }
 0x23e   : > { %v2891_v15 = vadd.f32 %v6347_v32, %v8047_v53  ;;  %v6423_v41 = vadd.f32 %v6422_v40, %v6421_v5  ;;  %v8101_v58 = vadd.f32 %v6420_v38, %v2888_v31 }
 0x240   : > { %v6348_v44 = vpop.f32.mrb[72].mxu0  ;;  %v8103_v49 = vadd.f32 %v6423_v41, %v2891_v15  ;;  %v8126_v15 = vld [vmem:[%s8618_s3] ss:$0 sm:$0xff] }
 0x241   : > { %v6349_v47 = vpop.f32.mrb[73].mxu0 }
 0x242   : > { %v6350_v54 = vadd.f32 %v6349_v47, %v6348_v44  ;;  %v6351_v17 = vpop.f32.mrb[74].mxu0  ;;  %v6424_v55 = vpop.f32.mrb[72].mxu1 }
 0x243   : > { %v6352_v60 = vpop.f32.mrb[75].mxu0  ;;  %v6425_v34 = vpop.f32.mrb[73].mxu1 }
 0x244   : > { %v2896_v51 = vadd.f32 %v6350_v54, %v8049_v1  ;;  %v6353_v61 = vadd.f32 %v6352_v60, %v6351_v17  ;;  %v6426_v63 = vadd.f32 %v6425_v34, %v6424_v55  ;;  %v6427_v9 = vpop.f32.mrb[74].mxu1 }
 0x245   : > { %v6428_v43 = vpop.f32.mrb[75].mxu1 }
 0x246   : > { %v2899_v53 = vadd.f32 %v6353_v61, %v8051_v36  ;;  %v6429_v0 = vadd.f32 %v6428_v43, %v6427_v9  ;;  %v8107_v8 = vadd.f32 %v6426_v63, %v2896_v51 }
 0x248   : > { %v6354_v46 = vpop.f32.mrb[76].mxu0  ;;  %v8109_v14 = vadd.f32 %v6429_v0, %v2899_v53 }
 0x249   : > { %v6355_v2 = vpop.f32.mrb[77].mxu0 }
 0x24a   : > { %v6356_v59 = vadd.f32 %v6355_v2, %v6354_v46  ;;  %v6357_v16 = vpop.f32.mrb[78].mxu0  ;;  %v6430_v18 = vpop.f32.mrb[76].mxu1 }
 0x24b   : > { %v6358_v26 = vpop.f32.mrb[79].mxu0  ;;  %v6431_v20 = vpop.f32.mrb[77].mxu1 }
 0x24c   : > { %v2904_v1 = vadd.f32 %v6356_v59, %v8053_v29  ;;  %v6359_v19 = vadd.f32 %v6358_v26, %v6357_v16  ;;  %v6432_v25 = vadd.f32 %v6431_v20, %v6430_v18  ;;  %v6433_v42 = vpop.f32.mrb[78].mxu1 }
 0x24d   : > { %v6434_v28 = vpop.f32.mrb[79].mxu1 }
 0x24e   : > { %v2907_v36 = vadd.f32 %v6359_v19, %v8055_v30  ;;  %v6435_v22 = vadd.f32 %v6434_v28, %v6433_v42  ;;  %v8113_v31 = vadd.f32 %v6432_v25, %v2904_v1 }
 0x250   : > { %v6744_v32 = vpop.f32.mrb[80].mxu0  ;;  %v8121_v29 = vadd.f32 %v6435_v22, %v2907_v36 }
 0x251   : > { %v3066_v38 = vadd.f32 %v6744_v32, %v8065_v50  ;;  %v3057_v5 = vpop.f32.mrb[81].mxu0 }
 0x252   : > { %v3058_v30 = vadd.f32 %v3057_v5, %v8059_v56  ;;  %v6745_v40 = vpop.f32.mrb[82].mxu0 }
 0x253   : > { %v3145_v41 = vmul.f32 %v8118_v33, %v3066_v38  ;;  %v3069_v44 = vadd.f32 %v6745_v40, %v8067_v21  ;;  %v3060_v47 = vpop.f32.mrb[83].mxu0 }
 0x254   : > { %v3143_v54 = vmul.f32 %v8118_v33, %v3058_v30  ;;  %v3061_v50 = vadd.f32 %v3060_v47, %v8061_v39 }
 0x255   : > { %v3172_v17 = vadd.f32 %v8126_v15, %v3145_v41  ;;  %v3146_v55 = vmul.f32 %v8118_v33, %v3069_v44 }
 0x256   : > { %v3170_v60 = vadd.f32 %v8126_v15, %v3143_v54  ;;  %v3144_v51 = vmul.f32 %v8118_v33, %v3061_v50 }
 0x257   : > { %v3173_v56 = vadd.f32 %v8126_v15, %v3146_v55  ;;  %v3192_v63 = vmax.f32 %v3172_v17, 0.0 }
 0x258   : > { %v3171_v61 = vadd.f32 %v8126_v15, %v3144_v51  ;;  %v6748_v34 = vpop.f32.mrb[84].mxu0  ;;  %v3190_v43 = vmax.f32 %v3170_v60, 0.0 }
 0x259   : > { %v3193_v21 = vmax.f32 %v3173_v56, 0.0  ;;  %v3082_v9 = vadd.f32 %v6748_v34, %v8077_v57  ;;  %v3073_v53 = vpop.f32.mrb[85].mxu0 }
 0x25a   : > { %v3191_v39 = vmax.f32 %v3171_v61, 0.0  ;;  %v3074_v0 = vadd.f32 %v3073_v53, %v8071_v45  ;;  %v6749_v46 = vpop.f32.mrb[86].mxu0 }
 0x25b   : > { %v3211_v2 = vpack.c.bf16 %v3193_v21, %v3192_v63  ;;  %v3149_v59 = vmul.f32 %v8118_v33, %v3082_v9  ;;  %v3085_v16 = vadd.f32 %v6749_v46, %v8079_v7  ;;  %v3076_v18 = vpop.f32.mrb[87].mxu0 }
 0x25c   : > { %v3210_v26 = vpack.c.bf16 %v3191_v39, %v3190_v43  ;;  %v3147_v1 = vmul.f32 %v8118_v33, %v3074_v0  ;;  %v3077_v19 = vadd.f32 %v3076_v18, %v8073_v48 }
 0x25d   : > { %v3231_v20 = vrot.slane %v3211_v2, 4  ;;  %v3176_v57 = vadd.f32 %v8126_v15, %v3149_v59  ;;  %v3150_v25 = vmul.f32 %v8118_v33, %v3085_v16 }
 0x25e   : > { %v3230_v42 = vrot.slane %v3210_v26, 4  ;;  %v3174_v45 = vadd.f32 %v8126_v15, %v3147_v1  ;;  %v3148_v36 = vmul.f32 %v8118_v33, %v3077_v19 }
 0x25f   : > { %3252 = vst [vmem:[#allocation3 + $0x18] ss:$-4 sps:$4 sm:$0xff] %v3231_v20   ;;  %v3177_v28 = vadd.f32 %v8126_v15, %v3150_v25  ;;  %v3196_v32 = vmax.f32 %v3176_v57, 0.0 }
 0x260   : > { %3250 = vst [vmem:[#allocation3 + $0x8] ss:$-4 sps:$4 sm:$0xff] %v3230_v42   ;;  %v3175_v7 = vadd.f32 %v8126_v15, %v3148_v36  ;;  %v6752_v22 = vpop.f32.mrb[88].mxu0  ;;  %v3194_v30 = vmax.f32 %v3174_v45, 0.0 }
 0x261   : > { %v3197_v38 = vmax.f32 %v3177_v28, 0.0  ;;  %v3098_v48 = vadd.f32 %v6752_v22, %v8089_v24  ;;  %v3089_v5 = vpop.f32.mrb[89].mxu0 }
 0x262   : > { %v3195_v40 = vmax.f32 %v3175_v7, 0.0  ;;  %v3090_v41 = vadd.f32 %v3089_v5, %v8083_v4  ;;  %v6753_v44 = vpop.f32.mrb[90].mxu0 }
 0x263   : > { %v3213_v47 = vpack.c.bf16 %v3197_v38, %v3196_v32  ;;  %v3153_v54 = vmul.f32 %v8118_v33, %v3098_v48  ;;  %v3101_v50 = vadd.f32 %v6753_v44, %v8091_v62  ;;  %v3092_v17 = vpop.f32.mrb[91].mxu0 }
 0x264   : > { %v3212_v55 = vpack.c.bf16 %v3195_v40, %v3194_v30  ;;  %v3151_v60 = vmul.f32 %v8118_v33, %v3090_v41  ;;  %v3093_v51 = vadd.f32 %v3092_v17, %v8085_v35 }
 0x265   : > { %v3233_v56 = vrot.slane %v3213_v47, 4  ;;  %v3180_v24 = vadd.f32 %v8126_v15, %v3153_v54  ;;  %v3154_v61 = vmul.f32 %v8118_v33, %v3101_v50 }
 0x266   : > { %v3232_v34 = vrot.slane %v3212_v55, 4  ;;  %v3178_v4 = vadd.f32 %v8126_v15, %v3151_v60  ;;  %v3152_v63 = vmul.f32 %v8118_v33, %v3093_v51 }
 0x267   : > { %3256 = vst [vmem:[#allocation3 + $0x38] ss:$-4 sps:$4 sm:$0xff] %v3233_v56   ;;  %v3181_v21 = vadd.f32 %v8126_v15, %v3154_v61  ;;  %v3200_v53 = vmax.f32 %v3180_v24, 0.0 }
 0x268   : > { %3254 = vst [vmem:[#allocation3 + $0x28] ss:$-4 sps:$4 sm:$0xff] %v3232_v34   ;;  %v3179_v62 = vadd.f32 %v8126_v15, %v3152_v63  ;;  %v6756_v9 = vpop.f32.mrb[92].mxu0  ;;  %v3198_v0 = vmax.f32 %v3178_v4, 0.0 }
 0x269   : > { %v3201_v43 = vmax.f32 %v3181_v21, 0.0  ;;  %v3114_v35 = vadd.f32 %v6756_v9, %v8101_v58  ;;  %v3105_v39 = vpop.f32.mrb[93].mxu0 }
 0x26a   : > { %v3199_v46 = vmax.f32 %v3179_v62, 0.0  ;;  %v3106_v2 = vadd.f32 %v3105_v39, %v8095_v13  ;;  %v6757_v59 = vpop.f32.mrb[94].mxu0 }
 0x26b   : > { %v3215_v16 = vpack.c.bf16 %v3201_v43, %v3200_v53  ;;  %v3157_v18 = vmul.f32 %v8118_v33, %v3114_v35  ;;  %v3117_v26 = vadd.f32 %v6757_v59, %v8103_v49  ;;  %v3108_v1 = vpop.f32.mrb[95].mxu0 }
 0x26c   : > { %v3214_v19 = vpack.c.bf16 %v3199_v46, %v3198_v0  ;;  %v3155_v20 = vmul.f32 %v8118_v33, %v3106_v2  ;;  %v3109_v57 = vadd.f32 %v3108_v1, %v8097_v23 }
 0x26d   : > { %v3235_v25 = vrot.slane %v3215_v16, 4  ;;  %v3184_v58 = vadd.f32 %v8126_v15, %v3157_v18  ;;  %v3158_v42 = vmul.f32 %v8118_v33, %v3117_v26 }
 0x26e   : > { %v3234_v45 = vrot.slane %v3214_v19, 4  ;;  %v3182_v13 = vadd.f32 %v8126_v15, %v3155_v20  ;;  %v3156_v36 = vmul.f32 %v8118_v33, %v3109_v57 }
 0x26f   : > { %3260 = vst [vmem:[#allocation3 + $0x58] ss:$-4 sps:$4 sm:$0xff] %v3235_v25   ;;  %v3185_v28 = vadd.f32 %v8126_v15, %v3158_v42  ;;  %v3204_v22 = vmax.f32 %v3184_v58, 0.0 }
 0x270   : > { %3258 = vst [vmem:[#allocation3 + $0x48] ss:$-4 sps:$4 sm:$0xff] %v3234_v45   ;;  %v3183_v49 = vadd.f32 %v8126_v15, %v3156_v36  ;;  %v6760_v7 = vpop.f32.mrb[96].mxu0  ;;  %v3202_v48 = vmax.f32 %v3182_v13, 0.0 }
 0x271   : > { %v3205_v32 = vmax.f32 %v3185_v28, 0.0  ;;  %v3130_v23 = vadd.f32 %v6760_v7, %v8113_v31  ;;  %v3121_v38 = vpop.f32.mrb[97].mxu0 }
 0x272   : > { %v3203_v5 = vmax.f32 %v3183_v49, 0.0  ;;  %v3122_v30 = vadd.f32 %v3121_v38, %v8107_v8  ;;  %v6761_v40 = vpop.f32.mrb[98].mxu0 }
 0x273   : > { %v3217_v41 = vpack.c.bf16 %v3205_v32, %v3204_v22  ;;  %v3161_v44 = vmul.f32 %v8118_v33, %v3130_v23  ;;  %v3133_v47 = vadd.f32 %v6761_v40, %v8121_v29  ;;  %v3124_v54 = vpop.f32.mrb[99].mxu0 }
 0x274   : > { %v3216_v50 = vpack.c.bf16 %v3203_v5, %v3202_v48  ;;  %v3159_v17 = vmul.f32 %v8118_v33, %v3122_v30  ;;  %v3125_v55 = vadd.f32 %v3124_v54, %v8109_v14 }
 0x275   : > { %v3237_v60 = vrot.slane %v3217_v41, 4  ;;  %v3188_v31 = vadd.f32 %v8126_v15, %v3161_v44  ;;  %v3162_v51 = vmul.f32 %v8118_v33, %v3133_v47 }
 0x276   : > { %v3236_v56 = vrot.slane %v3216_v50, 4  ;;  %v3186_v8 = vadd.f32 %v8126_v15, %v3159_v17  ;;  %v3160_v24 = vmul.f32 %v8118_v33, %v3125_v55  ;;  %v7329_v33 = vmov (!%p5770_p4), 0  }
 0x277   : > { %3264 = vst [vmem:[#allocation3 + $0x78] ss:$-4 sps:$4 sm:$0xff] %v3237_v60   ;;  %v3189_v61 = vadd.f32 %v8126_v15, %v3162_v51  ;;  %v3208_v34 = vmax.f32 %v3188_v31, 0.0  ;;  %3273 = vst [vmem:[#allocation3] sm:$0xf0] (!%p5770_p4), %v7329_v33 }
 0x278   : > { %3262 = vst [vmem:[#allocation3 + $0x68] ss:$-4 sps:$4 sm:$0xff] %v3236_v56   ;;  %v3187_v29 = vadd.f32 %v8126_v15, %v3160_v24  ;;  %v3206_v63 = vmax.f32 %v3186_v8, 0.0  ;;  %3274 = vst [vmem:[#allocation3 + $0x8] sm:$0xf] (!%p5770_p4), %v7329_v33 }
 0x279   : > { %v3209_v4 = vmax.f32 %v3189_v61, 0.0 }
 0x27a   : > { %v3207_v14 = vmax.f32 %v3187_v29, 0.0  ;;  %3272 = sbr.rel (%p5770_p4) target bundleno = 641 (0x281), region = 68 }
 0x27b   : > { %v3219_v21 = vpack.c.bf16 %v3209_v4, %v3208_v34 }
 0x27c   : > { %v3218_v62 = vpack.c.bf16 %v3207_v14, %v3206_v63 }
 0x27d   : > { %v3239_v9 = vrot.slane %v3219_v21, 4 }
 0x27e   : > { %v3238_v53 = vrot.slane %v3218_v62, 4 }
 0x27f   : > { %3268 = vst [vmem:[#allocation3 + $0x98] ss:$-4 sps:$4 sm:$0xff] %v3239_v9  }
 0x280   : > { %3266 = vst [vmem:[#allocation3 + $0x88] ss:$-4 sps:$4 sm:$0xff] %v3238_v53  }
 0x281 PF: > { %p5965_p3 = scmp.ne.s32.totalorder %s7305_s30, 1 }
 0x282   : > { %v7330_v15 = vmov (!%p5965_p3), 0  }
 0x283   : > { %3278 = sbr.rel (%p5965_p3) target bundleno = 650 (0x28a), region = 72  ;;  %3280 = vst [vmem:[#allocation3 + $0x90] sm:$0xf0] (!%p5965_p3), %v7330_v15  ;;  %3281 = vst [vmem:[#allocation3 + $0x98] sm:$0xf] (!%p5965_p3), %v7330_v15 }
 0x28a PF: > { %v7037_v43 = vld [vmem:[#allocation9 + $0x40] sm:$0xff]   ;;  %v7041_v46 = vld [vmem:[#allocation9 + $0x48] sm:$0xff]   ;;  %v7045_v18 = vld [vmem:[#allocation9 + $0x50] sm:$0xff]   ;;  %s8663_s17 = sld [smem:[#allocation22_spill]]  ;;  %s8664_s24 = sld [smem:[#allocation15_spill]] }
 0x28b   : > { %v7038_v35 = vld [vmem:[#allocation9 + $0xc0] sm:$0xff]   ;;  %6454 = vmatprep.subr.bf16.mxu1 %v7037_v43  ;;  %v7042_v2 = vld [vmem:[#allocation9 + $0xc8] sm:$0xff]   ;;  %v7046_v26 = vld [vmem:[#allocation9 + $0xd0] sm:$0xff]   ;;  %s6084_s20 = sshll.u32 %s7305_s30, 4  ;;  %s8665_s19 = sld [smem:[#allocation17_spill]] }
 0x28c   : > { %v7039_v39 = vld [vmem:[#allocation9] sm:$0xff]   ;;  %6518 = vmatprep.subr.bf16.mxu0 %v7038_v35  ;;  %v7043_v59 = vld [vmem:[#allocation9 + $0x8] sm:$0xff]   ;;  %v7047_v1 = vld [vmem:[#allocation9 + $0x10] sm:$0xff]   ;;  %s5640_s16 = sshll.u32 %s7614_s18, 4  ;;  %s8666_s27 = sld [smem:[#allocation23_spill]]  ;;  %s8548_s16 = int_to_ptr.vmem [resolvable:$true] %s5640_s16 }
 0x28d   : > { %v7040_v0 = vld [vmem:[#allocation9 + $0x80] sm:$0xff]   ;;  %6455 = vmatpush3.bf16.msra.mxu1 %v7039_v39  ;;  %v7044_v16 = vld [vmem:[#allocation9 + $0x88] sm:$0xff]   ;;  %v7048_v19 = vld [vmem:[#allocation9 + $0x90] sm:$0xff]   ;;  %s8554_s8 = scalar_lea.sflag [#allocation6], %s337_s9  ;;  %s7195_s7 = scalar_lea.vmem %s8548_s16, 1024 }
 0x28e   : > { %6519 = vmatpush3.bf16.msra.mxu0 %v7040_v0  ;;  %6456 = vmatprep.subr.bf16.mxu1 %v7041_v46  ;;  %v7049_v20 = vld [vmem:[#allocation9 + $0x58] sm:$0xff]   ;;  %v7053_v42 = vld [vmem:[#allocation9 + $0x60] sm:$0xff]   ;;  %v7057_v28 = vld [vmem:[#allocation9 + $0x68] sm:$0xff]   ;;  %p7196_p7 = scmp.ne.s32.totalorder %s8548_s16, %s7195_s7  ;;  %s7331_s1 = smov [#allocation10]  }
 0x28f   : > { %6520 = vmatprep.subr.bf16.mxu0 %v7042_v2  ;;  %v7050_v57 = vld [vmem:[#allocation9 + $0xd8] sm:$0xff]   ;;  %v7054_v45 = vld [vmem:[#allocation9 + $0xe0] sm:$0xff]   ;;  %v7058_v49 = vld [vmem:[#allocation9 + $0xe8] sm:$0xff]  }
 0x290   : > { %v7051_v25 = vld [vmem:[#allocation9 + $0x18] sm:$0xff]   ;;  %v7055_v13 = vld [vmem:[#allocation9 + $0x20] sm:$0xff]   ;;  %v7059_v7 = vld [vmem:[#allocation9 + $0x28] sm:$0xff]   ;;  %s6059_s23 = sshll.u32 %s8664_s24, 5 }
 0x291   : > { %6457 = vmatpush3.bf16.msra.mxu1 %v7043_v59  ;;  %v7052_v58 = vld [vmem:[#allocation9 + $0x98] sm:$0xff]   ;;  %v7056_v36 = vld [vmem:[#allocation9 + $0xa0] sm:$0xff]   ;;  %v7060_v22 = vld [vmem:[#allocation9 + $0xa8] sm:$0xff]   ;;  %s5637_s30 = sadd.s32 %s6084_s20, %s6059_s23  ;;  %p8668_p13 = scmp.ne.s32.totalorder %s8665_s19, 0 }
 0x292   : > { %6521 = vmatpush3.bf16.msra.mxu0 %v7044_v16  ;;  %6458 = vmatprep.subr.bf16.mxu1 %v7045_v18  ;;  %v7061_v32 = vld [vmem:[#allocation9 + $0x70] sm:$0xff]   ;;  %v7065_v5 = vld [vmem:[#allocation9 + $0x78] sm:$0xff]   ;;  %v3283_v44 = vld [vmem:[#allocation3 + $0x8] sm:$0xf]  ;;  %s6060_s14 = sshll.u32 %s5637_s30, 6  ;;  %s8667_s21 = smov %s8666_s27 }
 0x293   : > { %6522 = vmatprep.subr.bf16.mxu0 %v7046_v26  ;;  %v7062_v23 = vld [vmem:[#allocation9 + $0xf0] sm:$0xff]   ;;  %v7066_v30 = vld [vmem:[#allocation9 + $0xf8] sm:$0xff]   ;;  %v3442_v47 = vld [vmem:[#allocation3] sm:$0xf0]  ;;  %v3467_v17 = vrot.slane %v3283_v44, 4  ;;  %v3307_v24 = vshrl.u32 %v3283_v44, 16  ;;  %s8546_s6 = scalar_lea.hbm %s8666_s27, %s6060_s14  ;;  %p7197_p9 = pnand %p7196_p7, %p8668_p13 }
 0x294   : > { %v7063_v38 = vld [vmem:[#allocation9 + $0x30] sm:$0xff]   ;;  %v7067_v40 = vld [vmem:[#allocation9 + $0x38] sm:$0xff]   ;;  %v3466_v50 = vrot.slane %v3442_v47, 4  ;;  %v3282_v8 = vld [vmem:[#allocation3] sm:$0xf8]  ;;  %v3310_v61 = vshll.u32 %v3283_v44, 16 }
 0x295   : > { %6459 = vmatpush3.bf16.msra.mxu1 %v7047_v1  ;;  %v7064_v48 = vld [vmem:[#allocation9 + $0xb0] sm:$0xff]   ;;  %v7068_v41 = vld [vmem:[#allocation9 + $0xb8] sm:$0xff]   ;;  %v3299_v63 = vshrl.u32 %v3282_v8, 16  ;;  %v3498_v14 = vld [vmem:[#allocation3 + $0x8] sm:$0x1f]  ;;  %v3302_v53 = vshll.u32 %v3282_v8, 16  ;;  %p7198_p11 = pneg %p7197_p9 }
 0x296   : > { %6523 = vmatpush3.bf16.msra.mxu0 %v7048_v19  ;;  %6460 = vmatprep.subr.bf16.mxu1 %v7049_v20  ;;  %v3651_v54 = vld [vmem:[#allocation3 + $0x10] sm:$0xf8]  ;;  %v8190_v55 = vld [vmem:[#allocation3 + $0x18] sm:$0xf]  ;;  %v3468_v29 = vsel %vm835_vm0, %v3466_v50, %v3467_v17  ;;  %v7069_v21 = vld [vmem:[#allocation9 + $0x140] sm:$0xff]   ;;  %v3309_v33 = vrot.slane %v3307_v24, 3 }
 0x297   : > { %6524 = vmatprep.subr.bf16.mxu0 %v7050_v57  ;;  %v3668_v60 = vshrl.u32 %v3651_v54, 16  ;;  %v3671_v31 = vshll.u32 %v3651_v54, 16  ;;  %v3676_v51 = vshrl.u32 %v8190_v55, 16  ;;  %v3679_v56 = vshll.u32 %v8190_v55, 16  ;;  %4996 = vmatprep.mubr.bf16.mxu1 %v3468_v29  ;;  %v7070_v16 = vld [vmem:[#allocation9 + $0x100] sm:$0xff]   ;;  %v7071_v20 = vld [vmem:[#allocation9 + $0x148] sm:$0xff]  }
 0x298   : > { %v3301_v43 = vrot.slane %v3299_v63, 3  ;;  %v3312_v35 = vrot.slane %v3310_v61, 4  ;;  %v3507_v39 = vshrl.u32 %v3442_v47, 16  ;;  %v3304_v46 = vrot.slane %v3302_v53, 4  ;;  %v3285_v19 = vld [vmem:[#allocation3 + $0x18] sm:$0xf] }
 0x299   : > { %6461 = vmatpush3.bf16.msra.mxu1 %v7051_v25  ;;  %v3670_v34 = vrot.slane %v3668_v60, 3  ;;  %v3673_v4 = vrot.slane %v3671_v31, 4  ;;  %v3678_v62 = vrot.slane %v3676_v51, 3  ;;  %v3681_v9 = vrot.slane %v3679_v56, 4  ;;  %v7072_v24 = vld [vmem:[#allocation9 + $0x108] sm:$0xff]   ;;  %v7073_v63 = vld [vmem:[#allocation9 + $0x150] sm:$0xff]  }
 0x29a   : > { %6525 = vmatpush3.bf16.msra.mxu0 %v7052_v58  ;;  %6462 = vmatprep.subr.bf16.mxu1 %v7053_v42  ;;  %v3510_v2 = vshll.u32 %v3442_v47, 16  ;;  %v3515_v59 = vshrl.u32 %v3498_v14, 16  ;;  %v3313_v18 = vor.u32 %v3312_v35, %v3309_v33  ;;  %v3509_v26 = vrot.slane %v3507_v39, 4  ;;  %v3499_v47 = vld [vmem:[#allocation3 + $0x18] sm:$0x1f] }
 0x29b   : > { %6526 = vmatprep.subr.bf16.mxu0 %v7054_v45  ;;  %v3674_v15 = vor.u32 %v3673_v4, %v3670_v34  ;;  %v3682_v0 = vor.u32 %v3681_v9, %v3678_v62  ;;  %v3518_v1 = vshll.u32 %v3498_v14, 16  ;;  %v3305_v25 = vor.u32 %v3304_v46, %v3301_v43  ;;  %v3443_v45 = vld [vmem:[#allocation3 + $0x10] sm:$0xf0]  ;;  %v3287_v53 = vld [vmem:[#allocation3 + $0x28] sm:$0xf] }
 0x29c   : > { %v3512_v58 = vrot.slane %v3510_v2, 5  ;;  %v3517_v42 = vrot.slane %v3515_v59, 4  ;;  %v3324_v56 = vshrl.u32 %v3285_v19, 16  ;;  %v3327_v8 = vshll.u32 %v3285_v19, 16  ;;  %v8203_v33 = vld [vmem:[#allocation3 + $0x20] sm:$0xf0] }
 0x29d   : > { %6463 = vmatpush3.bf16.msra.mxu1 %v7055_v13  ;;  %v3683_v57 = vsel %vm624_vm1, %v3674_v15, %v3682_v0  ;;  %v3653_v13 = vld [vmem:[#allocation3 + $0x20] sm:$0xf8]  ;;  %v3524_v4 = vshrl.u32 %v3443_v45, 16  ;;  %v3527_v9 = vshll.u32 %v3443_v45, 16  ;;  %v3532_v35 = vshrl.u32 %v3499_v47, 16 }
 0x29e   : > { %6527 = vmatpush3.bf16.msra.mxu0 %v7056_v36  ;;  %6464 = vmatprep.subr.bf16.mxu1 %v7057_v28  ;;  %v3520_v36 = vrot.slane %v3518_v1, 5  ;;  %v3469_v28 = vrot.slane %v3443_v45, 4  ;;  %v3329_v62 = vrot.slane %v3327_v8, 4  ;;  %v3535_v39 = vshll.u32 %v3499_v47, 16  ;;  %v3655_v0 = vld [vmem:[#allocation3 + $0x30] sm:$0xf8] }
 0x29f   : > { %6528 = vmatprep.subr.bf16.mxu0 %v7058_v49  ;;  %5093 = vmatprep.mubr.bf16.mxu0 %v3683_v57  ;;  %v3470_v49 = vrot.slane %v3285_v19, 4  ;;  %v3526_v43 = vrot.slane %v3524_v4, 4  ;;  %v3529_v59 = vrot.slane %v3527_v9, 5  ;;  %v7075_v1 = vld [vmem:[#allocation9 + $0x158] sm:$0xff]   ;;  %v3534_v19 = vrot.slane %v3532_v35, 4 }
 0x2a0   : > { %v3473_v57 = vrot.slane %v3287_v53, 4  ;;  %v3500_v47 = vld [vmem:[#allocation3 + $0x28] sm:$0x1f]  ;;  %v3657_v4 = vld [vmem:[#allocation3 + $0x40] sm:$0xf8] }
 0x2a1   : > { %6465 = vmatpush3.bf16.msra.mxu1 %v7059_v7  ;;  %v8196_v7 = vld [vmem:[#allocation3 + $0x28] sm:$0xf]  ;;  %v3530_v45 = vor.u32 %v3529_v59, %v3526_v43  ;;  %v3552_v9 = vshll.u32 %v3500_v47, 16 }
 0x2a2   : > { %6529 = vmatpush3.bf16.msra.mxu0 %v7060_v22  ;;  %6466 = vmatprep.subr.bf16.mxu1 %v7061_v32  ;;  %v3685_v22 = vshrl.u32 %v3653_v13, 16  ;;  %v3314_v32 = vsel %vm624_vm1, %v3305_v25, %v3313_v18  ;;  %v3696_v44 = vshll.u32 %v8196_v7, 16  ;;  %v8207_v18 = vld [vmem:[#allocation3 + $0x38] sm:$0xf]  ;;  %v3702_v25 = vshrl.u32 %v3655_v0, 16 }
 0x2a3   : > { %6530 = vmatprep.subr.bf16.mxu0 %v7062_v23  ;;  %v3513_v23 = vor.u32 %v3512_v58, %v3509_v26  ;;  %v7074_v26 = vld [vmem:[#allocation9 + $0x110] sm:$0xff]   ;;  %v3286_v58 = vld [vmem:[#allocation3 + $0x20] sm:$0xf8] }
 0x2a4   : > { %v3698_v51 = vrot.slane %v3696_v44, 4  ;;  %v3344_v44 = vshll.u32 %v3287_v53, 16 }
 0x2a5   : > { %6467 = vmatpush3.bf16.msra.mxu1 %v7063_v38  ;;  %v3688_v38 = vshll.u32 %v3653_v13, 16  ;;  %v3705_v13 = vshll.u32 %v3655_v0, 16 }
 0x2a6   : > { %6531 = vmatpush3.bf16.msra.mxu0 %v7064_v48  ;;  %6468 = vmatprep.subr.bf16.mxu1 %v7065_v5  ;;  %v3693_v48 = vshrl.u32 %v8196_v7, 16  ;;  %v3284_v5 = vld [vmem:[#allocation3 + $0x10] sm:$0xf8] }
 0x2a7   : > { %6532 = vmatprep.subr.bf16.mxu0 %v7066_v30  ;;  %v3521_v30 = vor.u32 %v3520_v36, %v3517_v42  ;;  %v3690_v54 = vrot.slane %v3688_v38, 4  ;;  %v3316_v17 = vshrl.u32 %v3284_v5, 16  ;;  %v3319_v60 = vshll.u32 %v3284_v5, 16 }
 0x2a8   : > { %v3695_v50 = vrot.slane %v3693_v48, 3  ;;  %v3710_v36 = vshrl.u32 %v8207_v18, 16  ;;  %v3333_v48 = vshrl.u32 %v3286_v58, 16  ;;  %v3336_v5 = vshll.u32 %v3286_v58, 16 }
 0x2a9   : > { %6469 = vmatpush3.bf16.msra.mxu1 %v7067_v40  ;;  %v3471_v40 = vsel %vm835_vm0, %v3469_v28, %v3470_v49  ;;  %v3522_v31 = vsel %vm886_vm2, %v3513_v23, %v3521_v30  ;;  %v3318_v29 = vrot.slane %v3316_v17, 3  ;;  %v3321_v34 = vrot.slane %v3319_v60, 4 }
 0x2aa   : > { %6533 = vmatpush3.bf16.msra.mxu0 %v7068_v41  ;;  %6582 = vmatprep.subr.bf16.mxu1 %v7069_v21  ;;  %v3687_v41 = vrot.slane %v3685_v22, 3  ;;  %v3699_v14 = vor.u32 %v3698_v51, %v3695_v50  ;;  %v3326_v21 = vrot.slane %v3324_v56, 3  ;;  %v3704_v22 = vrot.slane %v3702_v25, 3  ;;  %v8215_v51 = vld [vmem:[#allocation3 + $0x30] sm:$0xf0]  ;;  %v7077_v56 = vld [vmem:[#allocation9 + $0x1c0] sm:$0xff]  }
 0x2ab   : > { %v3322_v15 = vor.u32 %v3321_v34, %v3318_v29  ;;  %v3707_v23 = vrot.slane %v3705_v13, 4  ;;  %v3712_v38 = vrot.slane %v3710_v36, 3  ;;  %v3335_v17 = vrot.slane %v3333_v48, 3  ;;  %v3289_v34 = vld [vmem:[#allocation3 + $0x38] sm:$0xf]  ;;  %6646 = vmatprep.subr.bf16.mxu0 %v7077_v56  ;;  %v7080_v48 = vld [vmem:[#allocation9 + $0x120] sm:$0xff]  }
 0x2ac   : > { %4997 = vmatmul.mubr.bf16.vlgmr.msra.gmra.mrb[80].mxu1 %v3314_v32  ;;  %v3691_v61 = vor.u32 %v3690_v54, %v3687_v41  ;;  %v3330_v2 = vor.u32 %v3329_v62, %v3326_v21  ;;  %v3713_v32 = vshll.u32 %v8207_v18, 16  ;;  %v3341_v41 = vshrl.u32 %v3287_v53, 16  ;;  %v7076_v54 = vld [vmem:[#allocation9 + $0x118] sm:$0xff]   ;;  %v8218_v53 = vld [vmem:[#allocation3 + $0x48] sm:$0xf] }
 0x2ad   : > { %6583 = vmatpush3.bf16.msra.mxu1 %v7070_v16  ;;  %5004 = vmatprep.mubr.bf16.mxu1 %v3471_v40  ;;  %v3472_v16 = vrot.slane %v8203_v33, 4  ;;  %v3708_v50 = vor.u32 %v3707_v23, %v3704_v22  ;;  %v3338_v60 = vrot.slane %v3336_v5, 4  ;;  %v3544_v29 = vshll.u32 %v8203_v33, 16 }
 0x2ae   : > { %6584 = vmatprep.subr.bf16.mxu1 %v7071_v20  ;;  %5094 = vmatmul.mubr.bf16.vlgmr.msra.gmra.mrb[100].mxu0 %v3522_v31  ;;  %v3700_v46 = vsel %vm624_vm1, %v3691_v61, %v3699_v14  ;;  %v3537_v20 = vrot.slane %v3535_v39, 5  ;;  %v3331_v42 = vsel %vm624_vm1, %v3322_v15, %v3330_v2  ;;  %v3715_v40 = vrot.slane %v3713_v32, 4  ;;  %v7079_v15 = vld [vmem:[#allocation9 + $0x160] sm:$0xff]  }
 0x2af   : > { %5101 = vmatprep.mubr.bf16.mxu0 %v3700_v46  ;;  %v3474_v49 = vsel %vm835_vm0, %v3472_v16, %v3473_v57  ;;  %v3541_v31 = vshrl.u32 %v8203_v33, 16  ;;  %v3346_v61 = vrot.slane %v3344_v44, 4  ;;  %v3339_v14 = vor.u32 %v3338_v60, %v3335_v17  ;;  %v3288_v46 = vld [vmem:[#allocation3 + $0x30] sm:$0xf8]  ;;  %v7081_v44 = vld [vmem:[#allocation9 + $0x1c8] sm:$0xff]  }
 0x2b0   : > { %v3538_v28 = vor.u32 %v3537_v20, %v3534_v19  ;;  %v3716_v8 = vor.u32 %v3715_v40, %v3712_v38  ;;  %v3549_v62 = vshrl.u32 %v3500_v47, 16  ;;  %v3546_v39 = vrot.slane %v3544_v29, 5  ;;  %v8229_v60 = vld [vmem:[#allocation3 + $0x40] sm:$0xf0]  ;;  %v3659_v29 = vld [vmem:[#allocation3 + $0x50] sm:$0xf8] }
 0x2b1   : > { %6585 = vmatpush3.bf16.msra.mxu1 %v7072_v24  ;;  %v3343_v24 = vrot.slane %v3341_v41, 3  ;;  %v3543_v21 = vrot.slane %v3541_v31, 4  ;;  %v3475_v0 = vrot.slane %v8215_v51, 4  ;;  %v3554_v2 = vrot.slane %v3552_v9, 5  ;;  %v7082_v31 = vld [vmem:[#allocation9 + $0x188] sm:$0xff]  }
 0x2b2   : > { %6586 = vmatprep.subr.bf16.mxu1 %v7073_v63  ;;  %v3539_v30 = vsel %vm886_vm2, %v3530_v45, %v3538_v28  ;;  %v7078_v63 = vld [vmem:[#allocation9 + $0x180] sm:$0xff]   ;;  %v3717_v43 = vsel %vm624_vm1, %v3708_v50, %v3716_v8  ;;  %v3551_v33 = vrot.slane %v3549_v62, 4  ;;  %v3476_v59 = vrot.slane %v3289_v34, 4  ;;  %v3501_v45 = vld [vmem:[#allocation3 + $0x38] sm:$0x1f] }
 0x2b3   : > { %v3347_v35 = vor.u32 %v3346_v61, %v3343_v24  ;;  %6647 = vmatpush3.bf16.msra.mxu0 %v7078_v63  ;;  %v3719_v16 = vshrl.u32 %v3657_v4, 16  ;;  %v3722_v19 = vshll.u32 %v3657_v4, 16  ;;  %v3727_v20 = vshrl.u32 %v8218_v53, 16  ;;  %v8233_v9 = vld [vmem:[#allocation3 + $0x58] sm:$0xf] }
 0x2b4   : > { %5005 = vmatmul.mubr.bf16.gmra.mrb[84].mxu1 %v3331_v42  ;;  %v3555_v57 = vor.u32 %v3554_v2, %v3551_v33  ;;  %v3477_v25 = vsel %vm835_vm0, %v3475_v0, %v3476_v59  ;;  %v3730_v42 = vshll.u32 %v8218_v53, 16  ;;  %v3350_v28 = vshrl.u32 %v3288_v46, 16  ;;  %6648 = vmatprep.subr.bf16.mxu0 %v7081_v44 }
 0x2b5   : > { %5012 = vmatprep.mubr.bf16.mxu1 %v3474_v49  ;;  %6587 = vmatpush3.bf16.msra.mxu1 %v7074_v26  ;;  %v3348_v26 = vsel %vm624_vm1, %v3339_v14, %v3347_v35  ;;  %v3721_v58 = vrot.slane %v3719_v16, 3  ;;  %v3724_v13 = vrot.slane %v3722_v19, 4  ;;  %v3729_v36 = vrot.slane %v3727_v20, 3  ;;  %v3502_v19 = vld [vmem:[#allocation3 + $0x48] sm:$0x1f] }
 0x2b6   : > { %6588 = vmatprep.subr.bf16.mxu1 %v7075_v1  ;;  %5102 = vmatmul.mubr.bf16.gmra.mrb[104].mxu0 %v3539_v30  ;;  %v3547_v1 = vor.u32 %v3546_v39, %v3543_v21  ;;  %v3353_v49 = vshll.u32 %v3288_v46, 16  ;;  %v3732_v32 = vrot.slane %v3730_v42, 4  ;;  %v3358_v23 = vshrl.u32 %v3289_v34, 16  ;;  %v3291_v21 = vld [vmem:[#allocation3 + $0x48] sm:$0xf] }
 0x2b7   : > { %5109 = vmatprep.mubr.bf16.mxu0 %v3717_v43  ;;  %v3361_v38 = vshll.u32 %v3289_v34, 16  ;;  %v3725_v5 = vor.u32 %v3724_v13, %v3721_v58  ;;  %v3352_v30 = vrot.slane %v3350_v28, 3  ;;  %v3558_v41 = vshrl.u32 %v8215_v51, 16  ;;  %v7083_v34 = vld [vmem:[#allocation9 + $0x168] sm:$0xff]   ;;  %6649 = vmatpush3.bf16.msra.mxu0 %v7082_v31  ;;  %v3290_v39 = vld [vmem:[#allocation3 + $0x40] sm:$0xf8] }
 0x2b8   : > { %v3556_v22 = vsel %vm886_vm2, %v3547_v1, %v3555_v57  ;;  %v3355_v40 = vrot.slane %v3353_v49, 4  ;;  %v3733_v47 = vor.u32 %v3732_v32, %v3729_v36  ;;  %v3561_v17 = vshll.u32 %v8215_v51, 16  ;;  %v7084_v28 = vld [vmem:[#allocation9 + $0x128] sm:$0xff]   ;;  %v7087_v31 = vld [vmem:[#allocation9 + $0x1d8] sm:$0xff]  }
 0x2b9   : > { %6589 = vmatpush3.bf16.msra.mxu1 %v7076_v54  ;;  %v3360_v54 = vrot.slane %v3358_v23, 3  ;;  %v3363_v50 = vrot.slane %v3361_v38, 4  ;;  %v3560_v8 = vrot.slane %v3558_v41, 4  ;;  %v3566_v24 = vshrl.u32 %v3501_v45, 16  ;;  %v7085_v38 = vld [vmem:[#allocation9 + $0x1d0] sm:$0xff]  }
 0x2ba   : > { %6590 = vmatprep.subr.bf16.mxu1 %v7079_v15  ;;  %v3356_v56 = vor.u32 %v3355_v40, %v3352_v30  ;;  %v3569_v61 = vshll.u32 %v3501_v45, 16  ;;  %v3734_v4 = vsel %vm624_vm1, %v3725_v5, %v3733_v47  ;;  %v3563_v14 = vrot.slane %v3561_v17, 5  ;;  %v7086_v41 = vld [vmem:[#allocation9 + $0x190] sm:$0xff]   ;;  %v3293_v17 = vld [vmem:[#allocation3 + $0x58] sm:$0xf]  ;;  %6650 = vmatprep.subr.bf16.mxu0 %v7085_v38 }
 0x2bb   : > { %v3364_v63 = vor.u32 %v3363_v50, %v3360_v54  ;;  %v3478_v62 = vrot.slane %v8229_v60, 4  ;;  %v3568_v51 = vrot.slane %v3566_v24, 4  ;;  %v3479_v43 = vrot.slane %v3291_v21, 4  ;;  %6651 = vmatpush3.bf16.msra.mxu0 %v7086_v41  ;;  %v7090_v38 = vld [vmem:[#allocation9 + $0x130] sm:$0xff]   ;;  %v7091_v41 = vld [vmem:[#allocation9 + $0x1e0] sm:$0xff]  }
 0x2bc   : > { %5013 = vmatmul.mubr.bf16.gmra.mrb[88].mxu1 %v3348_v26  ;;  %v3571_v15 = vrot.slane %v3569_v61, 5  ;;  %v3736_v35 = vshrl.u32 %v3659_v29, 16  ;;  %v3564_v46 = vor.u32 %v3563_v14, %v3560_v8  ;;  %v3739_v33 = vshll.u32 %v3659_v29, 16  ;;  %v3447_v61 = vld [vmem:[#allocation3 + $0x50] sm:$0xf0]  ;;  %6652 = vmatprep.subr.bf16.mxu0 %v7087_v31 }
 0x2bd   : > { %5020 = vmatprep.mubr.bf16.mxu1 %v3477_v25  ;;  %6591 = vmatpush3.bf16.msra.mxu1 %v7080_v48  ;;  %v3365_v0 = vsel %vm624_vm1, %v3356_v56, %v3364_v63  ;;  %v3744_v2 = vshrl.u32 %v8233_v9, 16  ;;  %v3480_v16 = vsel %vm835_vm0, %v3478_v62, %v3479_v43  ;;  %v3747_v1 = vshll.u32 %v8233_v9, 16  ;;  %v8243_v14 = vld [vmem:[#allocation3 + $0x68] sm:$0xf] }
 0x2be   : > { %5110 = vmatmul.mubr.bf16.gmra.mrb[108].mxu0 %v3556_v22  ;;  %6592 = vmatprep.subr.bf16.mxu1 %v7083_v34  ;;  %v3572_v59 = vor.u32 %v3571_v15, %v3568_v51  ;;  %v3738_v26 = vrot.slane %v3736_v35, 3  ;;  %v3741_v20 = vrot.slane %v3739_v33, 4  ;;  %v3367_v25 = vshrl.u32 %v3290_v39, 16  ;;  %v3661_v34 = vld [vmem:[#allocation3 + $0x60] sm:$0xf8] }
 0x2bf   : > { %5117 = vmatprep.mubr.bf16.mxu0 %v3734_v4  ;;  %v3746_v57 = vrot.slane %v3744_v2, 3  ;;  %v3370_v58 = vshll.u32 %v3290_v39, 16  ;;  %v3749_v45 = vrot.slane %v3747_v1, 4  ;;  %v3375_v13 = vshrl.u32 %v3291_v21, 16  ;;  %v3292_v35 = vld [vmem:[#allocation3 + $0x50] sm:$0xf8] }
 0x2c0   : > { %v3573_v42 = vsel %vm886_vm2, %v3564_v46, %v3572_v59  ;;  %v3378_v36 = vshll.u32 %v3291_v21, 16  ;;  %v3742_v49 = vor.u32 %v3741_v20, %v3738_v26  ;;  %v3369_v22 = vrot.slane %v3367_v25, 3  ;;  %v3503_v2 = vld [vmem:[#allocation3 + $0x58] sm:$0x1f] }
 0x2c1   : > { %v3372_v32 = vrot.slane %v3370_v58, 4  ;;  %v3575_v23 = vshrl.u32 %v8229_v60, 16  ;;  %v3750_v48 = vor.u32 %v3749_v45, %v3746_v57  ;;  %v3377_v5 = vrot.slane %v3375_v13, 3  ;;  %6593 = vmatpush3.bf16.msra.mxu1 %v7084_v28  ;;  %v7088_v58 = vld [vmem:[#allocation9 + $0x198] sm:$0xff]   ;;  %v7089_v28 = vld [vmem:[#allocation9 + $0x170] sm:$0xff]  }
 0x2c2   : > { %v3380_v30 = vrot.slane %v3378_v36, 4  ;;  %v3578_v40 = vshll.u32 %v8229_v60, 16  ;;  %v3583_v54 = vshrl.u32 %v3502_v19, 16  ;;  %v3586_v50 = vshll.u32 %v3502_v19, 16  ;;  %6653 = vmatpush3.bf16.msra.mxu0 %v7088_v58  ;;  %6594 = vmatprep.subr.bf16.mxu1 %v7089_v28 }
 0x2c3   : > { %v3373_v44 = vor.u32 %v3372_v32, %v3369_v22  ;;  %v3577_v47 = vrot.slane %v3575_v23, 4  ;;  %v3751_v56 = vsel %vm624_vm1, %v3742_v49, %v3750_v48  ;;  %v3482_v29 = vrot.slane %v3293_v17, 4  ;;  %6654 = vmatprep.subr.bf16.mxu0 %v7091_v41 }
 0x2c4   : > { %5021 = vmatmul.mubr.bf16.gmra.mrb[92].mxu1 %v3365_v0  ;;  %v3381_v8 = vor.u32 %v3380_v30, %v3377_v5  ;;  %v3580_v24 = vrot.slane %v3578_v40, 5  ;;  %v3585_v4 = vrot.slane %v3583_v54, 4  ;;  %v3588_v60 = vrot.slane %v3586_v50, 5  ;;  %v7092_v50 = vld [vmem:[#allocation9 + $0x1a0] sm:$0xff]  }
 0x2c5   : > { %5028 = vmatprep.mubr.bf16.mxu1 %v3480_v16  ;;  %v3481_v63 = vrot.slane %v3447_v61, 4  ;;  %v3753_v21 = vshrl.u32 %v3661_v34, 16  ;;  %v3756_v15 = vshll.u32 %v3661_v34, 16  ;;  %v3761_v43 = vshrl.u32 %v8243_v14, 16  ;;  %6595 = vmatpush3.bf16.msra.mxu1 %v7090_v38  ;;  %v3663_v34 = vld [vmem:[#allocation3 + $0x70] sm:$0xf8] }
 0x2c6   : > { %5118 = vmatmul.mubr.bf16.gmra.mrb[112].mxu0 %v3573_v42  ;;  %v3382_v62 = vsel %vm624_vm1, %v3373_v44, %v3381_v8  ;;  %v3581_v51 = vor.u32 %v3580_v24, %v3577_v47  ;;  %v3589_v39 = vor.u32 %v3588_v60, %v3585_v4  ;;  %v3764_v33 = vshll.u32 %v8243_v14, 16 }
 0x2c7   : > { %5125 = vmatprep.mubr.bf16.mxu0 %v3751_v56  ;;  %v3483_v0 = vsel %vm835_vm0, %v3481_v63, %v3482_v29  ;;  %v3755_v46 = vrot.slane %v3753_v21, 3  ;;  %v3758_v59 = vrot.slane %v3756_v15, 4  ;;  %v3763_v16 = vrot.slane %v3761_v43, 3  ;;  %v3295_v56 = vld [vmem:[#allocation3 + $0x68] sm:$0xf]  ;;  %6655 = vmatpush3.bf16.msra.mxu0 %v7092_v50 }
 0x2c8   : > { %v3384_v26 = vshrl.u32 %v3292_v35, 16  ;;  %v3387_v1 = vshll.u32 %v3292_v35, 16  ;;  %v3590_v19 = vsel %vm886_vm2, %v3581_v51, %v3589_v39  ;;  %v3766_v20 = vrot.slane %v3764_v33, 4  ;;  %v8252_v21 = vld [vmem:[#allocation3 + $0x78] sm:$0xf]  ;;  %v7093_v15 = vld [vmem:[#allocation9 + $0x1e8] sm:$0xff]  }
 0x2c9   : > { %v3392_v57 = vshrl.u32 %v3293_v17, 16  ;;  %v3395_v25 = vshll.u32 %v3293_v17, 16  ;;  %v3759_v42 = vor.u32 %v3758_v59, %v3755_v46  ;;  %v3592_v36 = vshrl.u32 %v3447_v61, 16  ;;  %v3504_v59 = vld [vmem:[#allocation3 + $0x68] sm:$0x1f]  ;;  %6656 = vmatprep.subr.bf16.mxu0 %v7093_v15 }
 0x2ca   : > { %v3386_v45 = vrot.slane %v3384_v26, 3  ;;  %v3389_v13 = vrot.slane %v3387_v1, 4  ;;  %v3767_v49 = vor.u32 %v3766_v20, %v3763_v16  ;;  %v3595_v23 = vshll.u32 %v3447_v61, 16  ;;  %v3448_v61 = vld [vmem:[#allocation3 + $0x60] sm:$0xf0] }
 0x2cb   : > { %v3394_v22 = vrot.slane %v3392_v57, 3  ;;  %v3397_v32 = vrot.slane %v3395_v25, 4  ;;  %v3594_v5 = vrot.slane %v3592_v36, 4  ;;  %v3600_v30 = vshrl.u32 %v3503_v2, 16  ;;  %v3297_v50 = vld [vmem:[#allocation3 + $0x78] sm:$0xf] }
 0x2cc   : > { %5029 = vmatmul.mubr.bf16.gmra.mrb[96].mxu1 %v3382_v62  ;;  %v3390_v48 = vor.u32 %v3389_v13, %v3386_v45  ;;  %v3603_v40 = vshll.u32 %v3503_v2, 16  ;;  %v3768_v44 = vsel %vm624_vm1, %v3759_v42, %v3767_v49  ;;  %v3597_v54 = vrot.slane %v3595_v23, 5  ;;  %v3294_v2 = vld [vmem:[#allocation3 + $0x60] sm:$0xf8]  ;;  %v7094_v42 = vld [vmem:[#allocation9 + $0x1a8] sm:$0xff]   ;;  %v7095_v49 = vld [vmem:[#allocation9 + $0x178] sm:$0xff]  }
 0x2cd   : > { %5036 = vmatprep.mubr.bf16.mxu1 %v3483_v0  ;;  %v3398_v47 = vor.u32 %v3397_v32, %v3394_v22  ;;  %v3602_v17 = vrot.slane %v3600_v30, 4  ;;  %v3485_v29 = vrot.slane %v3295_v56, 4  ;;  %v3409_v4 = vshrl.u32 %v3295_v56, 16  ;;  %6657 = vmatpush3.bf16.msra.mxu0 %v7094_v42 }
 0x2ce   : > { %5126 = vmatmul.mubr.bf16.gmra.mrb[116].mxu0 %v3590_v19  ;;  %v3605_v31 = vrot.slane %v3603_v40, 5  ;;  %v3598_v24 = vor.u32 %v3597_v54, %v3594_v5  ;;  %v3484_v63 = vrot.slane %v3448_v61, 4  ;;  %v3770_v62 = vshrl.u32 %v3663_v34, 16  ;;  %6596 = vmatprep.subr.bf16.mxu1 %v7095_v49  ;;  %v7096_v40 = vld [vmem:[#allocation9 + $0x138] sm:$0xff]  }
 0x2cf   : > { %5133 = vmatprep.mubr.bf16.mxu0 %v3768_v44  ;;  %v3399_v8 = vsel %vm624_vm1, %v3390_v48, %v3398_v47  ;;  %v3773_v51 = vshll.u32 %v3663_v34, 16  ;;  %v3778_v43 = vshrl.u32 %v8252_v21, 16  ;;  %v3781_v35 = vshll.u32 %v8252_v21, 16  ;;  %6597 = vmatpush3.bf16.msra.mxu1 %v7096_v40  ;;  %v8260_v34 = vld [vmem:[#allocation3 + $0x88] sm:$0xf] }
 0x2d0   : > { %v3606_v60 = vor.u32 %v3605_v31, %v3602_v17  ;;  %v3486_v0 = vsel %vm835_vm0, %v3484_v63, %v3485_v29  ;;  %v3772_v46 = vrot.slane %v3770_v62, 3  ;;  %v3401_v1 = vshrl.u32 %v3294_v2, 16 }
 0x2d1   : > { %v3775_v33 = vrot.slane %v3773_v51, 4  ;;  %v3780_v16 = vrot.slane %v3778_v43, 3  ;;  %v3783_v26 = vrot.slane %v3781_v35, 4  ;;  %v3404_v19 = vshll.u32 %v3294_v2, 16 }
 0x2d2   : > { %v3607_v39 = vsel %vm886_vm2, %v3598_v24, %v3606_v60  ;;  %v3411_v57 = vrot.slane %v3409_v4, 3  ;;  %v3412_v25 = vshll.u32 %v3295_v56, 16  ;;  %v3609_v58 = vshrl.u32 %v3448_v61, 16  ;;  %v3449_v56 = vld [vmem:[#allocation3 + $0x70] sm:$0xf0] }
 0x2d3   : > { %v3776_v20 = vor.u32 %v3775_v33, %v3772_v46  ;;  %v3784_v45 = vor.u32 %v3783_v26, %v3780_v16  ;;  %v3403_v13 = vrot.slane %v3401_v1, 3  ;;  %v3406_v36 = vrot.slane %v3404_v19, 4  ;;  %v3665_v24 = vld [vmem:[#allocation3 + $0x80] sm:$0xf8]  ;;  %v7097_v33 = vld [vmem:[#allocation9 + $0x1f0] sm:$0xff]  }
 0x2d4   : > { %5037 = vmatmul.mubr.bf16.gmra.mrb[100].mxu1 %v3399_v8  ;;  %v3612_v28 = vshll.u32 %v3448_v61, 16  ;;  %v3414_v22 = vrot.slane %v3412_v25, 4  ;;  %v3611_v32 = vrot.slane %v3609_v58, 4  ;;  %v3617_v23 = vshrl.u32 %v3504_v59, 16  ;;  %v3505_v1 = vld [vmem:[#allocation3 + $0x78] sm:$0x1f]  ;;  %6658 = vmatprep.subr.bf16.mxu0 %v7097_v33 }
 0x2d5   : > { %5044 = vmatprep.mubr.bf16.mxu1 %v3486_v0  ;;  %v3620_v38 = vshll.u32 %v3504_v59, 16  ;;  %v3785_v48 = vsel %vm624_vm1, %v3776_v20, %v3784_v45  ;;  %v3407_v5 = vor.u32 %v3406_v36, %v3403_v13  ;;  %v3488_v8 = vrot.slane %v3297_v50, 4  ;;  %v3296_v0 = vld [vmem:[#allocation3 + $0x70] sm:$0xf8] }
 0x2d6   : > { %5134 = vmatmul.mubr.bf16.gmra.mrb[120].mxu0 %v3607_v39  ;;  %v3614_v30 = vrot.slane %v3612_v28, 5  ;;  %v3415_v41 = vor.u32 %v3414_v22, %v3411_v57  ;;  %v3619_v44 = vrot.slane %v3617_v23, 4  ;;  %v3426_v61 = vshrl.u32 %v3297_v50, 16  ;;  %v7098_v58 = vld [vmem:[#allocation9 + $0x1b0] sm:$0xff]   ;;  %v7099_v28 = vld [vmem:[#allocation9 + $0x1f8] sm:$0xff]  }
 0x2d7   : > { %5141 = vmatprep.mubr.bf16.mxu0 %v3785_v48  ;;  %v3622_v47 = vrot.slane %v3620_v38, 5  ;;  %v3487_v29 = vrot.slane %v3449_v56, 4  ;;  %v3787_v4 = vshrl.u32 %v3665_v24, 16  ;;  %v3790_v60 = vshll.u32 %v3665_v24, 16  ;;  %6659 = vmatpush3.bf16.msra.mxu0 %v7098_v58  ;;  %v7100_v38 = vld [vmem:[#allocation9 + $0x1b8] sm:$0xff]  }
 0x2d8   : > { %v3615_v54 = vor.u32 %v3614_v30, %v3611_v32  ;;  %v3416_v17 = vsel %vm624_vm1, %v3407_v5, %v3415_v41  ;;  %v3429_v63 = vshll.u32 %v3297_v50, 16  ;;  %v3795_v51 = vshrl.u32 %v8260_v34, 16  ;;  %6660 = vmatprep.subr.bf16.mxu0 %v7099_v28  ;;  %v3868_v58 = vld [vmem:[#allocation3 + $0x28] sm:$0x1f] }
 0x2d9   : > { %v3623_v31 = vor.u32 %v3622_v47, %v3619_v44  ;;  %v3798_v15 = vshll.u32 %v8260_v34, 16  ;;  %v3489_v43 = vsel %vm835_vm0, %v3487_v29, %v3488_v8  ;;  %v3789_v35 = vrot.slane %v3787_v4, 3  ;;  %v7101_v47 = vld [vmem:[#allocation9 + $0x200] sm:$0xff]  }
 0x2da   : > { %v3792_v39 = vrot.slane %v3790_v60, 4  ;;  %v3428_v46 = vrot.slane %v3426_v61, 3  ;;  %v3797_v2 = vrot.slane %v3795_v51, 3  ;;  %v3418_v16 = vshrl.u32 %v3296_v0, 16  ;;  %6762 = vmatprep.subr.bf16.mxu1 %v7101_v47  ;;  %v4021_v51 = vld [vmem:[#allocation3 + $0x28] sm:$0xf] }
 0x2db   : > { %v3624_v62 = vsel %vm886_vm2, %v3615_v54, %v3623_v31  ;;  %v3800_v59 = vrot.slane %v3798_v15, 4  ;;  %v3421_v26 = vshll.u32 %v3296_v0, 16  ;;  %v3431_v20 = vrot.slane %v3429_v63, 4  ;;  %v3867_v31 = vld [vmem:[#allocation3 + $0x18] sm:$0x1f]  ;;  %6661 = vmatpush3.bf16.msra.mxu0 %v7100_v38 }
 0x2dc   : > { %5045 = vmatmul.mubr.bf16.gmra.mrb[104].mxu1 %v3416_v17  ;;  %v3793_v19 = vor.u32 %v3792_v39, %v3789_v35  ;;  %v3626_v57 = vshrl.u32 %v3449_v56, 16  ;;  %v3629_v25 = vshll.u32 %v3449_v56, 16  ;;  %v3420_v45 = vrot.slane %v3418_v16, 3  ;;  %v3811_v17 = vld [vmem:[#allocation3 + $0x10] sm:$0xf0] }
 0x2dd   : > { %5052 = vmatprep.mubr.bf16.mxu1 %v3489_v43  ;;  %v3801_v42 = vor.u32 %v3800_v59, %v3797_v2  ;;  %v3423_v13 = vrot.slane %v3421_v26, 4  ;;  %v3634_v36 = vshrl.u32 %v3505_v1, 16  ;;  %v3432_v49 = vor.u32 %v3431_v20, %v3428_v46  ;;  %v8270_v35 = vld [vmem:[#allocation3 + $0x20] sm:$0xf0] }
 0x2de   : > { %5142 = vmatmul.mubr.bf16.gmra.mrb[124].mxu0 %v3624_v62  ;;  %v3628_v22 = vrot.slane %v3626_v57, 4  ;;  %v3631_v32 = vrot.slane %v3629_v25, 5  ;;  %v3637_v23 = vshll.u32 %v3505_v1, 16  ;;  %v3836_v40 = vrot.slane %v8190_v55, 4  ;;  %v4020_v16 = vld [vmem:[#allocation3 + $0x20] sm:$0xf8] }
 0x2df   : > { %v3802_v48 = vsel %vm624_vm1, %v3793_v19, %v3801_v42  ;;  %v3424_v5 = vor.u32 %v3423_v13, %v3420_v45  ;;  %v3636_v30 = vrot.slane %v3634_v36, 4  ;;  %v3876_v56 = vshrl.u32 %v3811_v17, 16  ;;  %v3812_v26 = vld [vmem:[#allocation3 + $0x20] sm:$0xf0]  ;;  %v7102_v1 = vld [vmem:[#allocation9 + $0x208] sm:$0xff]  }
 0x2e0   : > { %5149 = vmatprep.mubr.bf16.mxu0 %v3802_v48  ;;  %v3632_v41 = vor.u32 %v3631_v32, %v3628_v22  ;;  %v3639_v44 = vrot.slane %v3637_v23, 5  ;;  %v3879_v8 = vshll.u32 %v3811_v17, 16  ;;  %v3884_v24 = vshrl.u32 %v3867_v31, 16  ;;  %v4023_v32 = vld [vmem:[#allocation3 + $0x38] sm:$0xf] }
 0x2e1   : > { %v3433_v54 = vsel %vm624_vm1, %v3424_v5, %v3432_v49  ;;  %v3887_v61 = vshll.u32 %v3867_v31, 16  ;;  %v3835_v4 = vrot.slane %v3811_v17, 4  ;;  %v3878_v55 = vrot.slane %v3876_v56, 4 }
 0x2e2   : > { %v3640_v50 = vor.u32 %v3639_v44, %v3636_v30  ;;  %v3881_v60 = vrot.slane %v3879_v8, 5  ;;  %v3886_v63 = vrot.slane %v3884_v24, 4  ;;  %v4045_v15 = vshrl.u32 %v4021_v51, 16  ;;  %v8277_v30 = vld [vmem:[#allocation3 + $0x30] sm:$0xf0] }
 0x2e3   : > { %v3889_v62 = vrot.slane %v3887_v61, 5  ;;  %v4048_v43 = vshll.u32 %v4021_v51, 16  ;;  %v4205_v39 = vrot.slane %v4021_v51, 4  ;;  %v3839_v0 = vrot.slane %v8196_v7, 4  ;;  %v3813_v8 = vld [vmem:[#allocation3 + $0x30] sm:$0xf0] }
 0x2e4   : > { %5053 = vmatmul.mubr.bf16.gmra.mrb[108].mxu1 %v3433_v54  ;;  %v3641_v29 = vsel %vm886_vm2, %v3632_v41, %v3640_v50  ;;  %v3882_v46 = vor.u32 %v3881_v60, %v3878_v55  ;;  %v3837_v2 = vsel %vm835_vm0, %v3835_v4, %v3836_v40  ;;  %v4204_v59 = vrot.slane %v8270_v35, 4  ;;  %v4022_v50 = vld [vmem:[#allocation3 + $0x30] sm:$0xf8] }
 0x2e5   : > { %v3890_v33 = vor.u32 %v3889_v62, %v3886_v63  ;;  %v4047_v19 = vrot.slane %v4045_v15, 3  ;;  %v4050_v20 = vrot.slane %v4048_v43, 4  ;;  %v4037_v57 = vshrl.u32 %v4020_v16, 16  ;;  %v7103_v61 = vld [vmem:[#allocation9 + $0x210] sm:$0xff]   ;;  %v3869_v15 = vld [vmem:[#allocation3 + $0x38] sm:$0x1f] }
 0x2e6   : > { %5150 = vmatmul.mubr.bf16.gmra.mrb[128].mxu0 %v3641_v29  ;;  %v4040_v25 = vshll.u32 %v4020_v16, 16  ;;  %v4206_v45 = vsel %vm835_vm0, %v4204_v59, %v4205_v39  ;;  %v3893_v13 = vshrl.u32 %v3812_v26, 16  ;;  %v3896_v7 = vshll.u32 %v3812_v26, 16 }
 0x2e7   : > { %v3891_v42 = vsel %vm886_vm2, %v3882_v46, %v3890_v33  ;;  %5287 = vmatprep.mubr.bf16.mxu0 %v4206_v45  ;;  %v4039_v36 = vrot.slane %v4037_v57, 3  ;;  %v4051_v49 = vor.u32 %v4050_v20, %v4047_v19  ;;  %v3901_v22 = vshrl.u32 %v3868_v58, 16  ;;  %v8288_v33 = vld [vmem:[#allocation3 + $0x40] sm:$0xf0]  ;;  %v7104_v19 = vld [vmem:[#allocation9 + $0x218] sm:$0xff]  }
 0x2e8   : > { %5190 = vmatprep.mubr.bf16.mxu1 %v3891_v42  ;;  %v4042_v28 = vrot.slane %v4040_v25, 4  ;;  %v3895_v23 = vrot.slane %v3893_v13, 4  ;;  %v3898_v38 = vrot.slane %v3896_v7, 5  ;;  %v3904_v48 = vshll.u32 %v3868_v58, 16  ;;  %v4024_v42 = vld [vmem:[#allocation3 + $0x40] sm:$0xf8] }
 0x2e9   : > { %v3838_v5 = vrot.slane %v3812_v26, 4  ;;  %v3903_v41 = vrot.slane %v3901_v22, 4  ;;  %v4207_v44 = vrot.slane %v8277_v30, 4  ;;  %v4208_v54 = vrot.slane %v4023_v32, 4  ;;  %v4025_v26 = vld [vmem:[#allocation3 + $0x48] sm:$0xf] }
 0x2ea   : > { %v4043_v40 = vor.u32 %v4042_v28, %v4039_v36  ;;  %v3899_v17 = vor.u32 %v3898_v38, %v3895_v23  ;;  %v3906_v31 = vrot.slane %v3904_v48, 5  ;;  %v4262_v56 = vshrl.u32 %v8277_v30, 16  ;;  %v3814_v36 = vld [vmem:[#allocation3 + $0x40] sm:$0xf0] }
 0x2eb   : > { %v3842_v24 = vrot.slane %v8207_v18, 4  ;;  %v3840_v4 = vsel %vm835_vm0, %v3838_v5, %v3839_v0  ;;  %v4054_v55 = vshrl.u32 %v4022_v50, 16  ;;  %v4265_v63 = vshll.u32 %v8277_v30, 16  ;;  %v7105_v23 = vld [vmem:[#allocation9 + $0x220] sm:$0xff]  }
 0x2ec   : > { %5191 = vmatmul.mubr.bf16.vlgmr.msra.gmra.mrb[112].mxu1 %v3837_v2  ;;  %v4052_v29 = vsel %vm624_vm1, %v4043_v40, %v4051_v49  ;;  %v3907_v60 = vor.u32 %v3906_v31, %v3903_v41  ;;  %v4057_v62 = vshll.u32 %v4022_v50, 16  ;;  %v4062_v51 = vshrl.u32 %v4023_v32, 16  ;;  %v3870_v41 = vld [vmem:[#allocation3 + $0x48] sm:$0x1f] }
 0x2ed   : > { %6763 = vmatpush3.bf16.msra.mxu1 %v7101_v47  ;;  %v4209_v47 = vsel %vm835_vm0, %v4207_v44, %v4208_v54  ;;  %v8286_v43 = vrot.slane %v4262_v56, 4  ;;  %v4056_v18 = vrot.slane %v4054_v55, 3  ;;  %v4065_v39 = vshll.u32 %v4023_v32, 16 }
 0x2ee   : > { %6764 = vmatprep.subr.bf16.mxu1 %v7102_v1  ;;  %5288 = vmatmul.mubr.bf16.vlgmr.msra.gmra.mrb[132].mxu0 %v4052_v29  ;;  %v3910_v46 = vshrl.u32 %v3813_v8, 16  ;;  %v3908_v0 = vsel %vm886_vm2, %v3899_v17, %v3907_v60  ;;  %v4059_v2 = vrot.slane %v4057_v62, 4  ;;  %v4064_v59 = vrot.slane %v4062_v51, 3  ;;  %v4027_v60 = vld [vmem:[#allocation3 + $0x58] sm:$0xf] }
 0x2ef   : > { %5295 = vmatprep.mubr.bf16.mxu0 %v4209_v47  ;;  %v3913_v16 = vshll.u32 %v3813_v8, 16  ;;  %5198 = vmatprep.mubr.bf16.mxu1 %v3908_v0  ;;  %v4067_v20 = vrot.slane %v4065_v39, 4  ;;  %v3918_v25 = vshrl.u32 %v3869_v15, 16  ;;  %v3921_v58 = vshll.u32 %v3869_v15, 16  ;;  %v4026_v62 = vld [vmem:[#allocation3 + $0x50] sm:$0xf8] }
 0x2f0   : > { %v3912_v57 = vrot.slane %v3910_v46, 4  ;;  %v3841_v13 = vrot.slane %v3813_v8, 4  ;;  %v4210_v7 = vrot.slane %v8288_v33, 4  ;;  %v4211_v32 = vrot.slane %v4025_v26, 4  ;;  %v7106_v46 = vld [vmem:[#allocation9 + $0x228] sm:$0xff]  }
 0x2f1   : > { %6765 = vmatpush3.bf16.msra.mxu1 %v7102_v1  ;;  %v4060_v1 = vor.u32 %v4059_v2, %v4056_v18  ;;  %v3915_v45 = vrot.slane %v3913_v16, 5  ;;  %v4068_v28 = vor.u32 %v4067_v20, %v4064_v59  ;;  %v3920_v49 = vrot.slane %v3918_v25, 4 }
 0x2f2   : > { %6766 = vmatprep.subr.bf16.mxu1 %v7103_v61  ;;  %v3923_v22 = vrot.slane %v3921_v58, 5  ;;  %v3843_v48 = vsel %vm835_vm0, %v3841_v13, %v3842_v24  ;;  %v4071_v5 = vshrl.u32 %v4024_v42, 16  ;;  %v4074_v40 = vshll.u32 %v4024_v42, 16  ;;  %v3871_v13 = vld [vmem:[#allocation3 + $0x58] sm:$0x1f] }
 0x2f3   : > { %v3916_v38 = vor.u32 %v3915_v45, %v3912_v57  ;;  %v4069_v44 = vsel %vm624_vm1, %v4060_v1, %v4068_v28  ;;  %v4212_v50 = vsel %vm835_vm0, %v4210_v7, %v4211_v32  ;;  %v4079_v17 = vshrl.u32 %v4025_v26, 16 }
 0x2f4   : > { %5199 = vmatmul.mubr.bf16.gmra.mrb[116].mxu1 %v3840_v4  ;;  %v3924_v54 = vor.u32 %v3923_v22, %v3920_v49  ;;  %v4073_v31 = vrot.slane %v4071_v5, 3  ;;  %v4076_v56 = vrot.slane %v4074_v40, 4  ;;  %v4082_v8 = vshll.u32 %v4025_v26, 16  ;;  %v8303_v49 = vld [vmem:[#allocation3 + $0x60] sm:$0xf0]  ;;  %v7107_v22 = vld [vmem:[#allocation9 + $0x230] sm:$0xff]  }
 0x2f5   : > { %6767 = vmatpush3.bf16.msra.mxu1 %v7103_v61  ;;  %v3927_v29 = vshrl.u32 %v3814_v36, 16  ;;  %v8295_v61 = vld [vmem:[#allocation3 + $0x50] sm:$0xf0]  ;;  %v4081_v24 = vrot.slane %v4079_v17, 3  ;;  %v3930_v47 = vshll.u32 %v3814_v36, 16  ;;  %v3935_v55 = vshrl.u32 %v3870_v41, 16 }
 0x2f6   : > { %6768 = vmatprep.subr.bf16.mxu1 %v7104_v19  ;;  %5296 = vmatmul.mubr.bf16.gmra.mrb[136].mxu0 %v4069_v44  ;;  %v3925_v4 = vsel %vm886_vm2, %v3916_v38, %v3924_v54  ;;  %v4077_v51 = vor.u32 %v4076_v56, %v4073_v31  ;;  %v4084_v15 = vrot.slane %v4082_v8, 4  ;;  %v3938_v39 = vshll.u32 %v3870_v41, 16  ;;  %v4028_v56 = vld [vmem:[#allocation3 + $0x60] sm:$0xf8] }
 0x2f7   : > { %5303 = vmatprep.mubr.bf16.mxu0 %v4212_v50  ;;  %5206 = vmatprep.mubr.bf16.mxu1 %v3925_v4  ;;  %v3929_v18 = vrot.slane %v3927_v29, 4  ;;  %v3932_v0 = vrot.slane %v3930_v47, 5  ;;  %v3937_v2 = vrot.slane %v3935_v55, 4  ;;  %v3844_v59 = vrot.slane %v3814_v36, 4  ;;  %v4029_v47 = vld [vmem:[#allocation3 + $0x68] sm:$0xf] }
 0x2f8   : > { %v3845_v16 = vrot.slane %v8218_v53, 4  ;;  %v4085_v26 = vor.u32 %v4084_v15, %v4081_v24  ;;  %v3940_v20 = vrot.slane %v3938_v39, 5  ;;  %v4213_v57 = vrot.slane %v8295_v61, 4  ;;  %v8308_v15 = vld [vmem:[#allocation3 + $0x60] sm:$0xf0] }
 0x2f9   : > { %6769 = vmatpush3.bf16.msra.mxu1 %v7104_v19  ;;  %v4214_v25 = vrot.slane %v4027_v60, 4  ;;  %v3815_v19 = vld [vmem:[#allocation3 + $0x50] sm:$0xf0]  ;;  %v3933_v58 = vor.u32 %v3932_v0, %v3929_v18  ;;  %v4088_v1 = vshrl.u32 %v4026_v62, 16  ;;  %v4091_v45 = vshll.u32 %v4026_v62, 16  ;;  %v7108_v18 = vld [vmem:[#allocation9 + $0x238] sm:$0xff]  }
 0x2fa   : > { %6770 = vmatprep.subr.bf16.mxu1 %v7105_v23  ;;  %v3846_v42 = vsel %vm835_vm0, %v3844_v59, %v3845_v16  ;;  %v4086_v7 = vsel %vm624_vm1, %v4077_v51, %v4085_v26  ;;  %v3941_v28 = vor.u32 %v3940_v20, %v3937_v2  ;;  %v4096_v53 = vshrl.u32 %v4027_v60, 16  ;;  %v3872_v16 = vld [vmem:[#allocation3 + $0x68] sm:$0x1f] }
 0x2fb   : > { %v4215_v36 = vsel %vm835_vm0, %v4213_v57, %v4214_v25  ;;  %v4090_v32 = vrot.slane %v4088_v1, 3  ;;  %v4093_v38 = vrot.slane %v4091_v45, 4  ;;  %v3944_v5 = vshrl.u32 %v3815_v19, 16 }
 0x2fc   : > { %5207 = vmatmul.mubr.bf16.gmra.mrb[120].mxu1 %v3843_v48  ;;  %v4099_v48 = vshll.u32 %v4027_v60, 16  ;;  %v3942_v40 = vsel %vm886_vm2, %v3933_v58, %v3941_v28  ;;  %v4098_v41 = vrot.slane %v4096_v53, 3  ;;  %v3947_v44 = vshll.u32 %v3815_v19, 16  ;;  %v8316_v28 = vld [vmem:[#allocation3 + $0x70] sm:$0xf0] }
 0x2fd   : > { %6771 = vmatpush3.bf16.msra.mxu1 %v7105_v23  ;;  %v3952_v23 = vshrl.u32 %v3871_v13, 16  ;;  %5214 = vmatprep.mubr.bf16.mxu1 %v3942_v40  ;;  %v4094_v54 = vor.u32 %v4093_v38, %v4090_v32  ;;  %v3946_v17 = vrot.slane %v3944_v5, 4  ;;  %v3955_v31 = vshll.u32 %v3871_v13, 16 }
 0x2fe   : > { %6772 = vmatprep.subr.bf16.mxu1 %v7106_v46  ;;  %5304 = vmatmul.mubr.bf16.gmra.mrb[140].mxu0 %v4086_v7  ;;  %v4101_v50 = vrot.slane %v4099_v48, 4  ;;  %v3949_v8 = vrot.slane %v3947_v44, 5  ;;  %v3847_v4 = vrot.slane %v3815_v19, 4  ;;  %v3848_v24 = vrot.slane %v8233_v9, 4  ;;  %v4031_v7 = vld [vmem:[#allocation3 + $0x78] sm:$0xf] }
 0x2ff   : > { %5311 = vmatprep.mubr.bf16.mxu0 %v4215_v36  ;;  %v3954_v29 = vrot.slane %v3952_v23, 4  ;;  %v3957_v60 = vrot.slane %v3955_v31, 5  ;;  %v4216_v62 = vrot.slane %v8303_v49, 4  ;;  %v4217_v51 = vrot.slane %v4029_v47, 4  ;;  %v4030_v48 = vld [vmem:[#allocation3 + $0x70] sm:$0xf8] }
 0x300   : > { %v4102_v55 = vor.u32 %v4101_v50, %v4098_v41  ;;  %v3950_v39 = vor.u32 %v3949_v8, %v3946_v17  ;;  %v3849_v0 = vsel %vm835_vm0, %v3847_v4, %v3848_v24  ;;  %v4105_v2 = vshrl.u32 %v4028_v56, 16  ;;  %v8320_v44 = vld [vmem:[#allocation3 + $0x70] sm:$0xf0]  ;;  %v3873_v31 = vld [vmem:[#allocation3 + $0x78] sm:$0x1f] }
 0x301   : > { %6773 = vmatpush3.bf16.msra.mxu1 %v7106_v46  ;;  %v4108_v59 = vshll.u32 %v4028_v56, 16  ;;  %v3958_v26 = vor.u32 %v3957_v60, %v3954_v29  ;;  %v4218_v46 = vsel %vm835_vm0, %v4216_v62, %v4217_v51  ;;  %v4113_v20 = vshrl.u32 %v4029_v47, 16 }
 0x302   : > { %6774 = vmatprep.subr.bf16.mxu1 %v7107_v22  ;;  %v4103_v9 = vsel %vm624_vm1, %v4094_v54, %v4102_v55  ;;  %v4107_v57 = vrot.slane %v4105_v2, 3  ;;  %v4116_v19 = vshll.u32 %v4029_v47, 16  ;;  %v3961_v58 = vshrl.u32 %v8308_v15, 16 }
 0x303   : > { %v4110_v25 = vrot.slane %v4108_v59, 4  ;;  %v4115_v1 = vrot.slane %v4113_v20, 3  ;;  %v3964_v45 = vshll.u32 %v8308_v15, 16  ;;  %v3969_v13 = vshrl.u32 %v3872_v16, 16  ;;  %v8328_v59 = vld [vmem:[#allocation3 + $0x80] sm:$0xf0] }
 0x304   : > { %5215 = vmatmul.mubr.bf16.gmra.mrb[124].mxu1 %v3846_v42  ;;  %v3959_v42 = vsel %vm886_vm2, %v3950_v39, %v3958_v26  ;;  %v4118_v53 = vrot.slane %v4116_v19, 4  ;;  %v3963_v32 = vrot.slane %v3961_v58, 4  ;;  %v3972_v38 = vshll.u32 %v3872_v16, 16  ;;  %v4033_v58 = vld [vmem:[#allocation3 + $0x88] sm:$0xf] }
 0x305   : > { %6775 = vmatpush3.bf16.msra.mxu1 %v7107_v22  ;;  %5222 = vmatprep.mubr.bf16.mxu1 %v3959_v42  ;;  %v4111_v36 = vor.u32 %v4110_v25, %v4107_v57  ;;  %v3966_v5 = vrot.slane %v3964_v45, 5  ;;  %v3971_v22 = vrot.slane %v3969_v13, 4  ;;  %v3850_v40 = vrot.slane %v8308_v15, 4 }
 0x306   : > { %6776 = vmatprep.subr.bf16.mxu1 %v7108_v18  ;;  %5312 = vmatmul.mubr.bf16.gmra.mrb[144].mxu0 %v4103_v9  ;;  %v3851_v41 = vrot.slane %v8243_v14, 4  ;;  %v4119_v23 = vor.u32 %v4118_v53, %v4115_v1  ;;  %v3974_v54 = vrot.slane %v3972_v38, 5  ;;  %v4219_v50 = vrot.slane %v8316_v28, 4 }
 0x307   : > { %5319 = vmatprep.mubr.bf16.mxu0 %v4218_v46  ;;  %v4220_v17 = vrot.slane %v4031_v7, 4  ;;  %v3967_v56 = vor.u32 %v3966_v5, %v3963_v32  ;;  %v4122_v8 = vshrl.u32 %v4030_v48, 16  ;;  %v4125_v29 = vshll.u32 %v4030_v48, 16  ;;  %v4032_v46 = vld [vmem:[#allocation3 + $0x80] sm:$0xf8] }
 0x308   : > { %v4120_v4 = vsel %vm624_vm1, %v4111_v36, %v4119_v23  ;;  %v3975_v24 = vor.u32 %v3974_v54, %v3971_v22  ;;  %v4130_v55 = vshrl.u32 %v4031_v7, 16  ;;  %v4133_v62 = vshll.u32 %v4031_v7, 16  ;;  %v8337_v7 = vld [vmem:[#allocation3 + $0x80] sm:$0xf0]  ;;  %v3874_v32 = vld [vmem:[#allocation3 + $0x88] sm:$0x1f] }
 0x309   : > { %6777 = vmatpush3.bf16.msra.mxu1 %v7108_v18  ;;  %v4221_v47 = vsel %vm835_vm0, %v4219_v50, %v4220_v17  ;;  %v4124_v14 = vrot.slane %v4122_v8, 3  ;;  %v4127_v60 = vrot.slane %v4125_v29, 4  ;;  %v3978_v51 = vshrl.u32 %v8320_v44, 16 }
 0x30a   : > { %v3976_v15 = vsel %vm886_vm2, %v3967_v56, %v3975_v24  ;;  %v4132_v39 = vrot.slane %v4130_v55, 3  ;;  %v3981_v18 = vshll.u32 %v8320_v44, 16  ;;  %v3986_v2 = vshrl.u32 %v3873_v31, 16 }
 0x30b   : > { %v4135_v16 = vrot.slane %v4133_v62, 4  ;;  %v3980_v9 = vrot.slane %v3978_v51, 4  ;;  %v3989_v26 = vshll.u32 %v3873_v31, 16  ;;  %v8332_v20 = vrot.slane %v4265_v63, 5 }
 0x30c   : > { %5223 = vmatmul.mubr.bf16.gmra.mrb[128].mxu1 %v3849_v0  ;;  %v4128_v0 = vor.u32 %v4127_v60, %v4124_v14  ;;  %v3852_v57 = vsel %vm835_vm0, %v3850_v40, %v3851_v41  ;;  %v3983_v25 = vrot.slane %v3981_v18, 5  ;;  %v3988_v19 = vrot.slane %v3986_v2, 4  ;;  %v4035_v14 = vld [vmem:[#allocation3 + $0x98] sm:$0xf]  ;;  %v8345_v60 = vld [vmem:[#allocation3 + $0x90] sm:$0xf0] }
 0x30d   : > { %5230 = vmatprep.mubr.bf16.mxu1 %v3976_v15  ;;  %v4136_v42 = vor.u32 %v4135_v16, %v4132_v39  ;;  %v3991_v1 = vrot.slane %v3989_v26, 5  ;;  %v3853_v45 = vrot.slane %v8320_v44, 4  ;;  %v4222_v13 = vrot.slane %v8328_v59, 4 }
 0x30e   : > { %5320 = vmatmul.mubr.bf16.gmra.mrb[148].mxu0 %v4120_v4  ;;  %v3984_v36 = vor.u32 %v3983_v25, %v3980_v9  ;;  %v4223_v53 = vrot.slane %v4033_v58, 4  ;;  %v4139_v30 = vshrl.u32 %v4032_v46, 16  ;;  %v4142_v63 = vshll.u32 %v4032_v46, 16  ;;  %v4236_v9 = vld [vmem:[#allocation3 + $0x28] sm:$0x1f] }
 0x30f   : > { %5327 = vmatprep.mubr.bf16.mxu0 %v4221_v47  ;;  %v4137_v38 = vsel %vm624_vm1, %v4128_v0, %v4136_v42  ;;  %v3992_v48 = vor.u32 %v3991_v1, %v3988_v19  ;;  %v3854_v5 = vrot.slane %v8252_v21, 4  ;;  %v4147_v22 = vshrl.u32 %v4033_v58, 16  ;;  %v4034_v21 = vld [vmem:[#allocation3 + $0x90] sm:$0xf8] }
 0x310   : > { %v4141_v40 = vrot.slane %v4139_v30, 3  ;;  %v4144_v41 = vrot.slane %v4142_v63, 4  ;;  %v4150_v23 = vshll.u32 %v4033_v58, 16  ;;  %v3995_v44 = vshrl.u32 %v8337_v7, 16 }
 0x311   : > { %v3993_v54 = vsel %vm886_vm2, %v3984_v36, %v3992_v48  ;;  %v4149_v50 = vrot.slane %v4147_v22, 3  ;;  %v3998_v17 = vshll.u32 %v8337_v7, 16  ;;  %v4003_v31 = vshrl.u32 %v3874_v32, 16 }
 0x312   : > { %v4224_v56 = vsel %vm835_vm0, %v4222_v13, %v4223_v53  ;;  %v4152_v8 = vrot.slane %v4150_v23, 4  ;;  %v3997_v29 = vrot.slane %v3995_v44, 4  ;;  %v4006_v4 = vshll.u32 %v3874_v32, 16 }
 0x313   : > { %v4145_v24 = vor.u32 %v4144_v41, %v4141_v40  ;;  %v4000_v47 = vrot.slane %v3998_v17, 5  ;;  %v4005_v55 = vrot.slane %v4003_v31, 4  ;;  %v3855_v62 = vsel %vm835_vm0, %v3853_v45, %v3854_v5  ;;  %v4237_v45 = vld [vmem:[#allocation3 + $0x38] sm:$0x1f] }
 0x314   : > { %5231 = vmatmul.mubr.bf16.gmra.mrb[132].mxu1 %v3852_v57  ;;  %v4153_v51 = vor.u32 %v4152_v8, %v4149_v50  ;;  %v4008_v15 = vrot.slane %v4006_v4, 5  ;;  %v3856_v39 = vrot.slane %v8337_v7, 4  ;;  %v3857_v2 = vrot.slane %v8260_v34, 4 }
 0x315   : > { %5238 = vmatprep.mubr.bf16.mxu1 %v3993_v54  ;;  %v4001_v18 = vor.u32 %v4000_v47, %v3997_v29  ;;  %v4156_v0 = vshrl.u32 %v4034_v21, 16  ;;  %v4159_v16 = vshll.u32 %v4034_v21, 16  ;;  %v4225_v46 = vrot.slane %v8345_v60, 4  ;;  %v4239_v21 = vld [vmem:[#allocation3 + $0x58] sm:$0x1f] }
 0x316   : > { %5328 = vmatmul.mubr.bf16.gmra.mrb[152].mxu0 %v4137_v38  ;;  %v4009_v26 = vor.u32 %v4008_v15, %v4005_v55  ;;  %v4226_v57 = vrot.slane %v4035_v14, 4  ;;  %v4164_v25 = vshrl.u32 %v4035_v14, 16  ;;  %v4154_v19 = vsel %vm624_vm1, %v4145_v24, %v4153_v51  ;;  %v4238_v38 = vld [vmem:[#allocation3 + $0x48] sm:$0x1f] }
 0x317   : > { %5335 = vmatprep.mubr.bf16.mxu0 %v4224_v56  ;;  %v4158_v58 = vrot.slane %v4156_v0, 3  ;;  %v4167_v42 = vshll.u32 %v4035_v14, 16  ;;  %v4245_v1 = vshrl.u32 %v8270_v35, 16  ;;  %v4161_v7 = vrot.slane %v4159_v16, 4  ;;  %v4240_v15 = vld [vmem:[#allocation3 + $0x68] sm:$0x1f] }
 0x318   : > { %v4010_v13 = vsel %vm886_vm2, %v4001_v18, %v4009_v26  ;;  %v4248_v34 = vshll.u32 %v8270_v35, 16  ;;  %v4253_v36 = vshrl.u32 %v4236_v9, 16  ;;  %v4166_v53 = vrot.slane %v4164_v25, 3 }
 0x319   : > { %v4169_v30 = vrot.slane %v4167_v42, 4  ;;  %v4247_v63 = vrot.slane %v4245_v1, 4  ;;  %v4256_v32 = vshll.u32 %v4236_v9, 16  ;;  %v4227_v48 = vsel %vm835_vm0, %v4225_v46, %v4226_v57 }
 0x31a   : > { %v4250_v5 = vrot.slane %v4248_v34, 5  ;;  %v4255_v22 = vrot.slane %v4253_v36, 4  ;;  %v4270_v40 = vshrl.u32 %v4237_v45, 16  ;;  %v3858_v41 = vsel %vm835_vm0, %v3856_v39, %v3857_v2 }
 0x31b   : > { %v4258_v23 = vrot.slane %v4256_v32, 5  ;;  %v4273_v44 = vshll.u32 %v4237_v45, 16  ;;  %v4279_v54 = vshrl.u32 %v8288_v33, 16  ;;  %v4162_v35 = vor.u32 %v4161_v7, %v4158_v58 }
 0x31c   : > { %5239 = vmatmul.mubr.bf16.gmra.mrb[136].mxu1 %v3855_v62  ;;  %v4251_v50 = vor.u32 %v4250_v5, %v4247_v63  ;;  %v4282_v17 = vshll.u32 %v8288_v33, 16  ;;  %v4287_v31 = vshrl.u32 %v4238_v38, 16  ;;  %v4170_v56 = vor.u32 %v4169_v30, %v4166_v53  ;;  %v4241_v53 = vld [vmem:[#allocation3 + $0x78] sm:$0x1f]  ;;  %v4242_v30 = vld [vmem:[#allocation3 + $0x88] sm:$0x1f] }
 0x31d   : > { %5246 = vmatprep.mubr.bf16.mxu1 %v4010_v13  ;;  %v4259_v8 = vor.u32 %v4258_v23, %v4255_v22  ;;  %v4272_v29 = vrot.slane %v4270_v40, 4  ;;  %v4275_v4 = vrot.slane %v4273_v44, 5  ;;  %v4281_v24 = vrot.slane %v4279_v54, 4 }
 0x31e   : > { %5336 = vmatmul.mubr.bf16.gmra.mrb[156].mxu0 %v4154_v19  ;;  %v4284_v47 = vrot.slane %v4282_v17, 5  ;;  %v4289_v55 = vrot.slane %v4287_v31, 4  ;;  %v4290_v14 = vshll.u32 %v4238_v38, 16  ;;  %v4296_v51 = vshrl.u32 %v8295_v61, 16 }
 0x31f   : > { %5343 = vmatprep.mubr.bf16.mxu0 %v4227_v48  ;;  %v4260_v62 = vsel %vm886_vm2, %v4251_v50, %v4259_v8  ;;  %v4299_v33 = vshll.u32 %v8295_v61, 16  ;;  %v4304_v18 = vshrl.u32 %v4239_v21, 16  ;;  %v4307_v2 = vshll.u32 %v4239_v21, 16 }
 0x320   : > { %v4292_v39 = vrot.slane %v4290_v14, 5  ;;  %v4171_v0 = vsel %vm624_vm1, %v4162_v35, %v4170_v56  ;;  %v4268_v16 = vor.u32 %v8332_v20, %v8286_v43  ;;  %v4276_v9 = vor.u32 %v4275_v4, %v4272_v29 }
 0x321   : > { %v4313_v26 = vshrl.u32 %v8303_v49, 16  ;;  %v4285_v46 = vor.u32 %v4284_v47, %v4281_v24  ;;  %v4316_v25 = vshll.u32 %v8303_v49, 16  ;;  %v4321_v19 = vshrl.u32 %v4240_v15, 16  ;;  %v4243_v24 = vld [vmem:[#allocation3 + $0x98] sm:$0x1f] }
 0x322   : > { %v4293_v57 = vor.u32 %v4292_v39, %v4289_v55  ;;  %v4324_v58 = vshll.u32 %v4240_v15, 16  ;;  %v4298_v42 = vrot.slane %v4296_v51, 4  ;;  %v4301_v61 = vrot.slane %v4299_v33, 5 }
 0x323   : > { %v4306_v1 = vrot.slane %v4304_v18, 4  ;;  %v4309_v45 = vrot.slane %v4307_v2, 5  ;;  %v4277_v13 = vsel %vm886_vm2, %v4268_v16, %v4276_v9  ;;  %v4315_v7 = vrot.slane %v4313_v26, 4 }
 0x324   : > { %5247 = vmatmul.mubr.bf16.gmra.mrb[140].mxu1 %v3858_v41  ;;  %v4318_v34 = vrot.slane %v4316_v25, 5  ;;  %v4294_v43 = vsel %vm886_vm2, %v4285_v46, %v4293_v57  ;;  %v4323_v20 = vrot.slane %v4321_v19, 4  ;;  %v4326_v36 = vrot.slane %v4324_v58, 5 }
 0x325   : > { %6778 = vmatprep.mubr.bf16.mxu1 %v4260_v62  ;;  %v4302_v63 = vor.u32 %v4301_v61, %v4298_v42  ;;  %v4310_v49 = vor.u32 %v4309_v45, %v4306_v1  ;;  %v4330_v32 = vshrl.u32 %v8316_v28, 16  ;;  %v4333_v38 = vshll.u32 %v8316_v28, 16 }
 0x326   : > { %5344 = vmatmul.mubr.bf16.gmra.mrb[160].mxu0 %v4171_v0  ;;  %v4319_v48 = vor.u32 %v4318_v34, %v4315_v7  ;;  %v4338_v5 = vshrl.u32 %v4241_v53, 16  ;;  %v4341_v22 = vshll.u32 %v4241_v53, 16  ;;  %v4347_v40 = vshrl.u32 %v8328_v59, 16 }
 0x327   : > { %v4327_v41 = vor.u32 %v4326_v36, %v4323_v20  ;;  %v4350_v23 = vshll.u32 %v8328_v59, 16  ;;  %v4355_v44 = vshrl.u32 %v4242_v30, 16  ;;  %v4358_v54 = vshll.u32 %v4242_v30, 16 }
 0x328   : > { %v4332_v35 = vrot.slane %v4330_v32, 4  ;;  %v4335_v50 = vrot.slane %v4333_v38, 5  ;;  %v4311_v17 = vsel %vm886_vm2, %v4302_v63, %v4310_v49  ;;  %v4340_v31 = vrot.slane %v4338_v5, 4 }
 0x329   : > { %v4343_v56 = vrot.slane %v4341_v22, 5  ;;  %v4349_v8 = vrot.slane %v4347_v40, 4  ;;  %v4328_v28 = vsel %vm886_vm2, %v4319_v48, %v4327_v41  ;;  %v4352_v29 = vrot.slane %v4350_v23, 5 }
 0x32a   : > { %v4357_v4 = vrot.slane %v4355_v44, 4  ;;  %v4360_v21 = vrot.slane %v4358_v54, 5  ;;  %v4336_v47 = vor.u32 %v4335_v50, %v4332_v35  ;;  %v4364_v55 = vshrl.u32 %v8345_v60, 16 }
 0x32b   : > { %v4344_v59 = vor.u32 %v4343_v56, %v4340_v31  ;;  %v4367_v14 = vshll.u32 %v8345_v60, 16  ;;  %v4372_v62 = vshrl.u32 %v4243_v24, 16  ;;  %v4375_v51 = vshll.u32 %v4243_v24, 16 }
 0x32c   : > { %6779 = vmatmul.mubr.bf16.vlgmr.msra.gmra.mrb[144].mxu1 %v4277_v13  ;;  %v4353_v15 = vor.u32 %v4352_v29, %v4349_v8  ;;  %v4361_v39 = vor.u32 %v4360_v21, %v4357_v4  ;;  %v4366_v33 = vrot.slane %v4364_v55, 4 }
 0x32d   : > { %6782 = vmatprep.mubr.bf16.mxu1 %v4294_v43  ;;  %v4345_v18 = vsel %vm886_vm2, %v4336_v47, %v4344_v59  ;;  %v4369_v2 = vrot.slane %v4367_v14, 5  ;;  %v4374_v0 = vrot.slane %v4372_v62, 4  ;;  %v4377_v16 = vrot.slane %v4375_v51, 5 }
 0x32e   : > { %v4362_v9 = vsel %vm886_vm2, %v4353_v15, %v4361_v39 }
 0x32f   : > { %v4370_v26 = vor.u32 %v4369_v2, %v4366_v33  ;;  %v4378_v46 = vor.u32 %v4377_v16, %v4374_v0 }
 0x331   : > { %v4379_v57 = vsel %vm886_vm2, %v4370_v26, %v4378_v46 }
 0x334   : > { %6783 = vmatmul.mubr.bf16.gmra.mrb[148].mxu1 %v4311_v17 }
 0x335   : > { %6786 = vmatprep.mubr.bf16.mxu1 %v4328_v28 }
 0x33c   : > { %6787 = vmatmul.mubr.bf16.gmra.mrb[152].mxu1 %v4345_v18 }
 0x33d   : > { %6790 = vmatprep.mubr.bf16.mxu1 %v4362_v9 }
 0x344   : > { %6791 = vmatmul.mubr.bf16.gmra.mrb[156].mxu1 %v4379_v57 }
 0x37f   : > { %v6470_v60 = vpop.f32.mrb[80].mxu1 }
 0x380   : > { %v6471_v25 = vpop.f32.mrb[81].mxu1 }
 0x381   : > { %v6472_v19 = vadd.f32 %v6471_v25, %v6470_v60  ;;  %v6473_v58 = vpop.f32.mrb[82].mxu1  ;;  %v6534_v42 = vpop.f32.mrb[100].mxu0 }
 0x382   : > { %v6474_v61 = vpop.f32.mrb[83].mxu1  ;;  %v6535_v1 = vpop.f32.mrb[101].mxu0 }
 0x383   : > { %v6475_v45 = vadd.f32 %v6474_v61, %v6473_v58  ;;  %v6536_v13 = vadd.f32 %v6535_v1, %v6534_v42  ;;  %v6537_v7 = vpop.f32.mrb[102].mxu0 }
 0x384   : > { %v6538_v34 = vpop.f32.mrb[103].mxu0 }
 0x385   : > { %v8380_v43 = vadd.f32 %v6536_v13, %v6472_v19  ;;  %v6539_v20 = vadd.f32 %v6538_v34, %v6537_v7 }
 0x387   : > { %v8382_v36 = vadd.f32 %v6539_v20, %v6475_v45  ;;  %v6476_v53 = vpop.f32.mrb[84].mxu1 }
 0x388   : > { %v6477_v30 = vpop.f32.mrb[85].mxu1 }
 0x389   : > { %v6478_v63 = vadd.f32 %v6477_v30, %v6476_v53  ;;  %v6479_v49 = vpop.f32.mrb[86].mxu1  ;;  %v6540_v32 = vpop.f32.mrb[104].mxu0 }
 0x38a   : > { %v6480_v38 = vpop.f32.mrb[87].mxu1  ;;  %v6541_v48 = vpop.f32.mrb[105].mxu0 }
 0x38b   : > { %v6481_v5 = vadd.f32 %v6480_v38, %v6479_v49  ;;  %v6542_v22 = vadd.f32 %v6541_v48, %v6540_v32  ;;  %v6543_v40 = vpop.f32.mrb[106].mxu0 }
 0x38c   : > { %v6544_v41 = vpop.f32.mrb[107].mxu0 }
 0x38d   : > { %v8384_v23 = vadd.f32 %v6542_v22, %v6478_v63  ;;  %v6545_v44 = vadd.f32 %v6544_v41, %v6543_v40 }
 0x38f   : > { %v8386_v54 = vadd.f32 %v6545_v44, %v6481_v5  ;;  %v6482_v35 = vpop.f32.mrb[88].mxu1 }
 0x390   : > { %v6483_v50 = vpop.f32.mrb[89].mxu1 }
 0x391   : > { %v6484_v17 = vadd.f32 %v6483_v50, %v6482_v35  ;;  %v6485_v31 = vpop.f32.mrb[90].mxu1  ;;  %v6546_v56 = vpop.f32.mrb[108].mxu0 }
 0x392   : > { %v6486_v8 = vpop.f32.mrb[91].mxu1  ;;  %v6547_v28 = vpop.f32.mrb[109].mxu0 }
 0x393   : > { %v6487_v29 = vadd.f32 %v6486_v8, %v6485_v31  ;;  %v6548_v4 = vadd.f32 %v6547_v28, %v6546_v56  ;;  %v6549_v21 = vpop.f32.mrb[110].mxu0 }
 0x394   : > { %v6550_v24 = vpop.f32.mrb[111].mxu0 }
 0x395   : > { %v8388_v47 = vadd.f32 %v6548_v4, %v6484_v17  ;;  %v6551_v55 = vadd.f32 %v6550_v24, %v6549_v21 }
 0x397   : > { %v8390_v59 = vadd.f32 %v6551_v55, %v6487_v29  ;;  %v6488_v14 = vpop.f32.mrb[92].mxu1 }
 0x398   : > { %v6489_v62 = vpop.f32.mrb[93].mxu1 }
 0x399   : > { %v6490_v51 = vadd.f32 %v6489_v62, %v6488_v14  ;;  %v6491_v15 = vpop.f32.mrb[94].mxu1  ;;  %v6552_v39 = vpop.f32.mrb[112].mxu0 }
 0x39a   : > { %v6492_v33 = vpop.f32.mrb[95].mxu1  ;;  %v6553_v18 = vpop.f32.mrb[113].mxu0 }
 0x39b   : > { %v6493_v2 = vadd.f32 %v6492_v33, %v6491_v15  ;;  %v6554_v0 = vadd.f32 %v6553_v18, %v6552_v39  ;;  %v6555_v16 = vpop.f32.mrb[114].mxu0 }
 0x39c   : > { %v6556_v9 = vpop.f32.mrb[115].mxu0 }
 0x39d   : > { %v8392_v26 = vadd.f32 %v6554_v0, %v6490_v51  ;;  %v6557_v46 = vadd.f32 %v6556_v9, %v6555_v16 }
 0x39f   : > { %v8394_v57 = vadd.f32 %v6557_v46, %v6493_v2  ;;  %v6494_v60 = vpop.f32.mrb[96].mxu1 }
 0x3a0   : > { %v6495_v25 = vpop.f32.mrb[97].mxu1 }
 0x3a1   : > { %v6496_v19 = vadd.f32 %v6495_v25, %v6494_v60  ;;  %v6497_v58 = vpop.f32.mrb[98].mxu1  ;;  %v6558_v42 = vpop.f32.mrb[116].mxu0 }
 0x3a2   : > { %v6498_v61 = vpop.f32.mrb[99].mxu1  ;;  %v6559_v1 = vpop.f32.mrb[117].mxu0 }
 0x3a3   : > { %v6499_v45 = vadd.f32 %v6498_v61, %v6497_v58  ;;  %v6560_v13 = vadd.f32 %v6559_v1, %v6558_v42  ;;  %v6561_v7 = vpop.f32.mrb[118].mxu0 }
 0x3a4   : > { %v6562_v34 = vpop.f32.mrb[119].mxu0 }
 0x3a5   : > { %v8396_v20 = vadd.f32 %v6560_v13, %v6496_v19  ;;  %v6563_v53 = vadd.f32 %v6562_v34, %v6561_v7 }
 0x3a7   : > { %v8398_v30 = vadd.f32 %v6563_v53, %v6499_v45  ;;  %v6500_v63 = vpop.f32.mrb[100].mxu1 }
 0x3a8   : > { %v6501_v49 = vpop.f32.mrb[101].mxu1 }
 0x3a9   : > { %v6502_v32 = vadd.f32 %v6501_v49, %v6500_v63  ;;  %v6503_v38 = vpop.f32.mrb[102].mxu1  ;;  %v6564_v48 = vpop.f32.mrb[120].mxu0 }
 0x3aa   : > { %v6504_v5 = vpop.f32.mrb[103].mxu1  ;;  %v6565_v22 = vpop.f32.mrb[121].mxu0 }
 0x3ab   : > { %v6505_v40 = vadd.f32 %v6504_v5, %v6503_v38  ;;  %v6566_v41 = vadd.f32 %v6565_v22, %v6564_v48  ;;  %v6567_v44 = vpop.f32.mrb[122].mxu0 }
 0x3ac   : > { %v6568_v35 = vpop.f32.mrb[123].mxu0 }
 0x3ad   : > { %v8400_v50 = vadd.f32 %v6566_v41, %v6502_v32  ;;  %v6569_v17 = vadd.f32 %v6568_v35, %v6567_v44 }
 0x3af   : > { %v8402_v31 = vadd.f32 %v6569_v17, %v6505_v40  ;;  %v6506_v56 = vpop.f32.mrb[104].mxu1 }
 0x3b0   : > { %v6507_v8 = vpop.f32.mrb[105].mxu1 }
 0x3b1   : > { %v6570_v28 = vpop.f32.mrb[124].mxu0  ;;  %v6508_v29 = vadd.f32 %v6507_v8, %v6506_v56  ;;  %v6509_v4 = vpop.f32.mrb[106].mxu1 }
 0x3b2   : > { %v6571_v21 = vpop.f32.mrb[125].mxu0  ;;  %v6510_v24 = vpop.f32.mrb[107].mxu1 }
 0x3b3   : > { %v6572_v55 = vadd.f32 %v6571_v21, %v6570_v28  ;;  %v6573_v14 = vpop.f32.mrb[126].mxu0  ;;  %v6511_v62 = vadd.f32 %v6510_v24, %v6509_v4 }
 0x3b4   : > { %v6574_v51 = vpop.f32.mrb[127].mxu0 }
 0x3b5   : > { %v8404_v15 = vadd.f32 %v6572_v55, %v6508_v29  ;;  %v6575_v39 = vadd.f32 %v6574_v51, %v6573_v14 }
 0x3b7   : > { %v8406_v33 = vadd.f32 %v6575_v39, %v6511_v62  ;;  %v6512_v18 = vpop.f32.mrb[108].mxu1 }
 0x3b8   : > { %v6513_v2 = vpop.f32.mrb[109].mxu1 }
 0x3b9   : > { %v6514_v0 = vadd.f32 %v6513_v2, %v6512_v18  ;;  %v6515_v16 = vpop.f32.mrb[110].mxu1  ;;  %v6576_v9 = vpop.f32.mrb[128].mxu0 }
 0x3ba   : > { %v6516_v46 = vpop.f32.mrb[111].mxu1  ;;  %v6577_v60 = vpop.f32.mrb[129].mxu0 }
 0x3bb   : > { %v6517_v25 = vadd.f32 %v6516_v46, %v6515_v16  ;;  %v6578_v19 = vadd.f32 %v6577_v60, %v6576_v9  ;;  %v6579_v58 = vpop.f32.mrb[130].mxu0 }
 0x3bc   : > { %v6580_v42 = vpop.f32.mrb[131].mxu0 }
 0x3bd   : > { %v8408_v61 = vadd.f32 %v6578_v19, %v6514_v0  ;;  %v6581_v1 = vadd.f32 %v6580_v42, %v6579_v58 }
 0x3bf   : > { %v8410_v45 = vadd.f32 %v6581_v1, %v6517_v25  ;;  %v6598_v13 = vpop.f32.mrb[112].mxu1 }
 0x3c0   : > { %v6599_v7 = vpop.f32.mrb[113].mxu1 }
 0x3c1   : > { %v6600_v34 = vadd.f32 %v6599_v7, %v6598_v13  ;;  %v6601_v53 = vpop.f32.mrb[114].mxu1  ;;  %v6662_v32 = vpop.f32.mrb[132].mxu0 }
 0x3c2   : > { %v6602_v63 = vpop.f32.mrb[115].mxu1  ;;  %v6663_v48 = vpop.f32.mrb[133].mxu0 }
 0x3c3   : > { %v5193_v49 = vadd.f32 %v6600_v34, %v8380_v43  ;;  %v6603_v38 = vadd.f32 %v6602_v63, %v6601_v53  ;;  %v6664_v22 = vadd.f32 %v6663_v48, %v6662_v32  ;;  %v6665_v40 = vpop.f32.mrb[134].mxu0 }
 0x3c4   : > { %v6666_v41 = vpop.f32.mrb[135].mxu0 }
 0x3c5   : > { %v5196_v5 = vadd.f32 %v6603_v38, %v8382_v36  ;;  %v6667_v44 = vadd.f32 %v6666_v41, %v6665_v40  ;;  %v8414_v17 = vadd.f32 %v6664_v22, %v5193_v49 }
 0x3c7   : > { %v6604_v35 = vpop.f32.mrb[116].mxu1  ;;  %v8416_v29 = vadd.f32 %v6667_v44, %v5196_v5 }
 0x3c8   : > { %v6605_v56 = vpop.f32.mrb[117].mxu1 }
 0x3c9   : > { %v6606_v8 = vadd.f32 %v6605_v56, %v6604_v35  ;;  %v6607_v28 = vpop.f32.mrb[118].mxu1  ;;  %v6668_v21 = vpop.f32.mrb[136].mxu0 }
 0x3ca   : > { %v6608_v4 = vpop.f32.mrb[119].mxu1  ;;  %v6669_v55 = vpop.f32.mrb[137].mxu0 }
 0x3cb   : > { %v5201_v43 = vadd.f32 %v6606_v8, %v8384_v23  ;;  %v6609_v24 = vadd.f32 %v6608_v4, %v6607_v28  ;;  %v6670_v14 = vadd.f32 %v6669_v55, %v6668_v21  ;;  %v6671_v62 = vpop.f32.mrb[138].mxu0 }
 0x3cc   : > { %v6672_v51 = vpop.f32.mrb[139].mxu0 }
 0x3cd   : > { %v5204_v36 = vadd.f32 %v6609_v24, %v8386_v54  ;;  %v6673_v39 = vadd.f32 %v6672_v51, %v6671_v62  ;;  %v8420_v2 = vadd.f32 %v6670_v14, %v5201_v43 }
 0x3cf   : > { %v6610_v18 = vpop.f32.mrb[120].mxu1  ;;  %v8422_v46 = vadd.f32 %v6673_v39, %v5204_v36 }
 0x3d0   : > { %v6611_v0 = vpop.f32.mrb[121].mxu1 }
 0x3d1   : > { %v6612_v16 = vadd.f32 %v6611_v0, %v6610_v18  ;;  %v6613_v9 = vpop.f32.mrb[122].mxu1  ;;  %v6674_v25 = vpop.f32.mrb[140].mxu0 }
 0x3d2   : > { %v6614_v60 = vpop.f32.mrb[123].mxu1  ;;  %v6675_v58 = vpop.f32.mrb[141].mxu0 }
 0x3d3   : > { %v5209_v23 = vadd.f32 %v6612_v16, %v8388_v47  ;;  %v6615_v19 = vadd.f32 %v6614_v60, %v6613_v9  ;;  %v6676_v42 = vadd.f32 %v6675_v58, %v6674_v25  ;;  %v6677_v1 = vpop.f32.mrb[142].mxu0 }
 0x3d4   : > { %v6678_v13 = vpop.f32.mrb[143].mxu0 }
 0x3d5   : > { %v5212_v54 = vadd.f32 %v6615_v19, %v8390_v59  ;;  %v6679_v7 = vadd.f32 %v6678_v13, %v6677_v1  ;;  %v8426_v53 = vadd.f32 %v6676_v42, %v5209_v23 }
 0x3d7   : > { %v6616_v34 = vpop.f32.mrb[124].mxu1  ;;  %v8428_v38 = vadd.f32 %v6679_v7, %v5212_v54 }
 0x3d8   : > { %v6617_v63 = vpop.f32.mrb[125].mxu1 }
 0x3d9   : > { %v6618_v49 = vadd.f32 %v6617_v63, %v6616_v34  ;;  %v6619_v32 = vpop.f32.mrb[126].mxu1  ;;  %v6680_v5 = vpop.f32.mrb[144].mxu0 }
 0x3da   : > { %v6620_v48 = vpop.f32.mrb[127].mxu1  ;;  %v6681_v40 = vpop.f32.mrb[145].mxu0 }
 0x3db   : > { %v5217_v47 = vadd.f32 %v6618_v49, %v8392_v26  ;;  %v6621_v22 = vadd.f32 %v6620_v48, %v6619_v32  ;;  %v6682_v41 = vadd.f32 %v6681_v40, %v6680_v5  ;;  %v6683_v44 = vpop.f32.mrb[146].mxu0 }
 0x3dc   : > { %v6684_v35 = vpop.f32.mrb[147].mxu0 }
 0x3dd   : > { %v5220_v59 = vadd.f32 %v6621_v22, %v8394_v57  ;;  %v6685_v56 = vadd.f32 %v6684_v35, %v6683_v44  ;;  %v8432_v28 = vadd.f32 %v6682_v41, %v5217_v47 }
 0x3df   : > { %v6622_v8 = vpop.f32.mrb[128].mxu1  ;;  %v8434_v24 = vadd.f32 %v6685_v56, %v5220_v59 }
 0x3e0   : > { %v6623_v4 = vpop.f32.mrb[129].mxu1 }
 0x3e1   : > { %v6624_v43 = vadd.f32 %v6623_v4, %v6622_v8  ;;  %v6625_v21 = vpop.f32.mrb[130].mxu1  ;;  %v6686_v36 = vpop.f32.mrb[148].mxu0 }
 0x3e2   : > { %v6626_v55 = vpop.f32.mrb[131].mxu1  ;;  %v6687_v62 = vpop.f32.mrb[149].mxu0 }
 0x3e3   : > { %v5225_v26 = vadd.f32 %v6624_v43, %v8396_v20  ;;  %v6627_v14 = vadd.f32 %v6626_v55, %v6625_v21  ;;  %v6688_v51 = vadd.f32 %v6687_v62, %v6686_v36  ;;  %v6689_v39 = vpop.f32.mrb[150].mxu0 }
 0x3e4   : > { %v6690_v18 = vpop.f32.mrb[151].mxu0 }
 0x3e5   : > { %v5228_v57 = vadd.f32 %v6627_v14, %v8398_v30  ;;  %v6691_v0 = vadd.f32 %v6690_v18, %v6689_v39  ;;  %v8438_v9 = vadd.f32 %v6688_v51, %v5225_v26 }
 0x3e7   : > { %v6628_v16 = vpop.f32.mrb[132].mxu1  ;;  %v8440_v19 = vadd.f32 %v6691_v0, %v5228_v57 }
 0x3e8   : > { %v6629_v60 = vpop.f32.mrb[133].mxu1 }
 0x3e9   : > { %v6630_v23 = vadd.f32 %v6629_v60, %v6628_v16  ;;  %v6631_v25 = vpop.f32.mrb[134].mxu1  ;;  %v6692_v54 = vpop.f32.mrb[152].mxu0 }
 0x3ea   : > { %v6632_v58 = vpop.f32.mrb[135].mxu1  ;;  %v6693_v1 = vpop.f32.mrb[153].mxu0 }
 0x3eb   : > { %v5233_v20 = vadd.f32 %v6630_v23, %v8400_v50  ;;  %v6633_v42 = vadd.f32 %v6632_v58, %v6631_v25  ;;  %v6694_v13 = vadd.f32 %v6693_v1, %v6692_v54  ;;  %v6695_v7 = vpop.f32.mrb[154].mxu0  ;;  %v8459_v25 = vld [vmem:[%s8620_s5] ss:$0 sm:$0xff] }
 0x3ec   : > { %v6696_v34 = vpop.f32.mrb[155].mxu0  ;;  %v8467_v54 = vld [vmem:[%s8663_s17] ss:$0 sm:$0xff]  ;;  %s7199_s17 = sshll.u32 %s7331_s1, 4  ;;  %s7200_s17 = int_to_ptr.vmem [resolvable:$false] %s7199_s17 }
 0x3ed   : > { %v5236_v30 = vadd.f32 %v6633_v42, %v8402_v31  ;;  %v6697_v63 = vadd.f32 %v6696_v34, %v6695_v7  ;;  %v8444_v32 = vadd.f32 %v6694_v13, %v5233_v20  ;;  %v5497_v13 = vunpack.c.l.bf16 %v7833_v37  ;;  %s7201_s24 = scalar_lea.vmem %s7200_s17, 2048  ;;  %p7202_p0 = scmp.lt.s32.totalorder %s8548_s16, %s7200_s17 }
 0x3ee   : > { %p7203_p5 = scmp.lt.s32.totalorder %s7201_s24, %s7195_s7 }
 0x3ef   : > { %v6634_v49 = vpop.f32.mrb[136].mxu1  ;;  %v8446_v22 = vadd.f32 %v6697_v63, %v5236_v30  ;;  %v5495_v63 = vunpack.c.l.bf16 %v7819_v3 }
 0x3f0   : > { %v6635_v48 = vpop.f32.mrb[137].mxu1  ;;  %p7204_p8 = por %p7203_p5, %p7202_p0 }
 0x3f1   : > { %v6636_v47 = vadd.f32 %v6635_v48, %v6634_v49  ;;  %v6637_v5 = vpop.f32.mrb[138].mxu1  ;;  %v6698_v59 = vpop.f32.mrb[156].mxu0 }
 0x3f2   : > { %v6638_v40 = vpop.f32.mrb[139].mxu1  ;;  %v6699_v44 = vpop.f32.mrb[157].mxu0  ;;  %p7205_p12 = pnand %p7204_p8, %p7198_p11 }
 0x3f3   : > { %v5241_v50 = vadd.f32 %v6636_v47, %v8404_v15  ;;  %v6639_v41 = vadd.f32 %v6638_v40, %v6637_v5  ;;  %v6700_v35 = vadd.f32 %v6699_v44, %v6698_v59  ;;  %v6701_v56 = vpop.f32.mrb[158].mxu0  ;;  %v5498_v47 = vunpack.c.h.bf16 %v7833_v37 }
 0x3f4   : > { %v6702_v8 = vpop.f32.mrb[159].mxu0  ;;  %v5501_v37 = vunpack.c.l.bf16 %v7881_v6 }
 0x3f5   : > { %v5244_v31 = vadd.f32 %v6639_v41, %v8406_v33  ;;  %v6703_v4 = vadd.f32 %v6702_v8, %v6701_v56  ;;  %v8450_v21 = vadd.f32 %v6700_v35, %v5241_v50  ;;  %v5496_v50 = vunpack.c.h.bf16 %v7819_v3 }
 0x3f7   : > { %v6640_v43 = vpop.f32.mrb[140].mxu1  ;;  %v8452_v14 = vadd.f32 %v6703_v4, %v5244_v31 }
 0x3f8   : > { %v6641_v55 = vpop.f32.mrb[141].mxu1 }
 0x3f9   : > { %v6642_v26 = vadd.f32 %v6641_v55, %v6640_v43  ;;  %v6643_v36 = vpop.f32.mrb[142].mxu1  ;;  %v6704_v57 = vpop.f32.mrb[160].mxu0  ;;  %v5499_v43 = vunpack.c.l.bf16 %v7852_v12 }
 0x3fa   : > { %v6644_v62 = vpop.f32.mrb[143].mxu1  ;;  %v6705_v39 = vpop.f32.mrb[161].mxu0 }
 0x3fb   : > { %v5249_v15 = vadd.f32 %v6642_v26, %v8408_v61  ;;  %v6645_v51 = vadd.f32 %v6644_v62, %v6643_v36  ;;  %v6706_v18 = vadd.f32 %v6705_v39, %v6704_v57  ;;  %v6707_v0 = vpop.f32.mrb[162].mxu0 }
 0x3fc   : > { %v6708_v16 = vpop.f32.mrb[163].mxu0 }
 0x3fd   : > { %v5252_v33 = vadd.f32 %v6645_v51, %v8410_v45  ;;  %v6709_v60 = vadd.f32 %v6708_v16, %v6707_v0  ;;  %v8461_v58 = vadd.f32 %v6706_v18, %v5249_v15  ;;  %v5502_v0 = vunpack.c.h.bf16 %v7881_v6 }
 0x3ff   : > { %v6780_v23 = vpop.f32.mrb[144].mxu1  ;;  %v8470_v1 = vadd.f32 %v6709_v60, %v5252_v33 }
 0x400   : > { %v5395_v20 = vadd.f32 %v6780_v23, %v8420_v2  ;;  %v5386_v61 = vpop.f32.mrb[145].mxu1  ;;  %v5500_v23 = vunpack.c.h.bf16 %v7852_v12  ;;  %v5503_v12 = vunpack.c.l.bf16 %v7902_v52 }
 0x401   : > { %v5387_v45 = vadd.f32 %v5386_v61, %v8414_v17  ;;  %v6781_v42 = vpop.f32.mrb[146].mxu1 }
 0x402   : > { %v5458_v30 = vmul.f32 %v8459_v25, %v5395_v20  ;;  %v5398_v7 = vadd.f32 %v6781_v42, %v8422_v46  ;;  %v5389_v34 = vpop.f32.mrb[147].mxu1 }
 0x403   : > { %v5456_v2 = vmul.f32 %v8459_v25, %v5387_v45  ;;  %v5390_v49 = vadd.f32 %v5389_v34, %v8416_v29  ;;  %v5505_v34 = vunpack.c.l.bf16 %v7923_v27 }
 0x404   : > { %v5481_v48 = vadd.f32 %v8467_v54, %v5458_v30  ;;  %v5459_v17 = vmul.f32 %v8459_v25, %v5398_v7 }
 0x405   : > { %v5479_v5 = vadd.f32 %v8467_v54, %v5456_v2  ;;  %v5457_v40 = vmul.f32 %v8459_v25, %v5390_v49 }
 0x406   : > { %v5513_v46 = vadd.f32 %v5497_v13, %v5481_v48  ;;  %v5482_v59 = vadd.f32 %v8467_v54, %v5459_v17 }
 0x407   : > { %v5511_v41 = vadd.f32 %v5495_v63, %v5479_v5  ;;  %v5480_v44 = vadd.f32 %v8467_v54, %v5457_v40  ;;  %v6784_v31 = vpop.f32.mrb[148].mxu1 }
 0x408   : > { %v5514_v29 = vadd.f32 %v5498_v47, %v5482_v59  ;;  %v5411_v35 = vadd.f32 %v6784_v31, %v8432_v28  ;;  %v5402_v56 = vpop.f32.mrb[149].mxu1  ;;  %v5529_v3 = vmax.f32 %v5513_v46, 0.0 }
 0x409   : > { %v5512_v8 = vadd.f32 %v5496_v50, %v5480_v44  ;;  %v5403_v4 = vadd.f32 %v5402_v56, %v8426_v53  ;;  %v6785_v55 = vpop.f32.mrb[150].mxu1  ;;  %v5527_v57 = vmax.f32 %v5511_v41, 0.0  ;;  %v5506_v44 = vunpack.c.h.bf16 %v7923_v27 }
 0x40a   : > { %v5530_v26 = vmax.f32 %v5514_v29, 0.0  ;;  %v5462_v36 = vmul.f32 %v8459_v25, %v5411_v35  ;;  %v5414_v62 = vadd.f32 %v6785_v55, %v8434_v24  ;;  %v5405_v15 = vpop.f32.mrb[151].mxu1  ;;  %v5504_v35 = vunpack.c.h.bf16 %v7902_v52 }
 0x40b   : > { %v5528_v28 = vmax.f32 %v5512_v8, 0.0  ;;  %v5460_v51 = vmul.f32 %v8459_v25, %v5403_v4  ;;  %v5406_v39 = vadd.f32 %v5405_v15, %v8428_v38 }
 0x40c   : > { %v6093_v33 = vpack.c.bf16 %v5530_v26, %v5529_v3  ;;  %v5485_v53 = vadd.f32 %v8467_v54, %v5462_v36  ;;  %v5463_v18 = vmul.f32 %v8459_v25, %v5414_v62  ;;  %v5509_v26 = vunpack.c.l.bf16 %v7972_v11 }
 0x40d   : > { %v6088_v16 = vpack.c.bf16 %v5528_v28, %v5527_v57  ;;  %v5483_v60 = vadd.f32 %v8467_v54, %v5460_v51  ;;  %v5461_v24 = vmul.f32 %v8459_v25, %v5406_v39  ;;  %v5507_v36 = vunpack.c.l.bf16 %v7945_v10 }
 0x40e   : > { %6125 = vst [vmem:[%s7614_s18 + $0x8] sm:$0xff] %v6093_v33   ;;  %v5517_v20 = vadd.f32 %v5501_v37, %v5485_v53  ;;  %v5486_v61 = vadd.f32 %v8467_v54, %v5463_v18 }
 0x40f   : > { %6089 = vst [vmem:[%s7614_s18] sm:$0xff] %v6088_v16   ;;  %v5515_v38 = vadd.f32 %v5499_v43, %v5483_v60  ;;  %v5484_v45 = vadd.f32 %v8467_v54, %v5461_v24  ;;  %v6788_v42 = vpop.f32.mrb[152].mxu1  ;;  %v5510_v60 = vunpack.c.h.bf16 %v7972_v11 }
 0x410   : > { %v5518_v30 = vadd.f32 %v5502_v0, %v5486_v61  ;;  %v5427_v13 = vadd.f32 %v6788_v42, %v8444_v32  ;;  %v5418_v6 = vpop.f32.mrb[153].mxu1  ;;  %v5533_v49 = vmax.f32 %v5517_v20, 0.0  ;;  %v5508_v20 = vunpack.c.h.bf16 %v7945_v10 }
 0x411   : > { %v5516_v7 = vadd.f32 %v5500_v23, %v5484_v45  ;;  %v5419_v2 = vadd.f32 %v5418_v6, %v8438_v9  ;;  %v6789_v63 = vpop.f32.mrb[154].mxu1  ;;  %v5531_v40 = vmax.f32 %v5515_v38, 0.0 }
 0x412   : > { %v5534_v48 = vmax.f32 %v5518_v30, 0.0  ;;  %v5466_v17 = vmul.f32 %v8459_v25, %v5427_v13  ;;  %v5430_v47 = vadd.f32 %v6789_v63, %v8446_v22  ;;  %v5421_v5 = vpop.f32.mrb[155].mxu1 }
 0x413   : > { %v5532_v32 = vmax.f32 %v5516_v7, 0.0  ;;  %v5464_v50 = vmul.f32 %v8459_v25, %v5419_v2  ;;  %v5422_v46 = vadd.f32 %v5421_v5, %v8440_v19 }
 0x414   : > { %v6103_v59 = vpack.c.bf16 %v5534_v48, %v5533_v49  ;;  %v5489_v9 = vadd.f32 %v8467_v54, %v5466_v17  ;;  %v5467_v41 = vmul.f32 %v8459_v25, %v5430_v47 }
 0x415   : > { %v6098_v31 = vpack.c.bf16 %v5532_v32, %v5531_v40  ;;  %v5487_v29 = vadd.f32 %v8467_v54, %v5464_v50  ;;  %v5465_v22 = vmul.f32 %v8459_v25, %v5422_v46 }
 0x416   : > { %6127 = vst [vmem:[%s7614_s18 + $0x18] sm:$0xff] %v6103_v59   ;;  %v5521_v56 = vadd.f32 %v5505_v34, %v5489_v9  ;;  %v5490_v8 = vadd.f32 %v8467_v54, %v5467_v41 }
 0x417   : > { %6126 = vst [vmem:[%s7614_s18 + $0x10] sm:$0xff] %v6098_v31   ;;  %v5519_v19 = vadd.f32 %v5503_v12, %v5487_v29  ;;  %v5488_v37 = vadd.f32 %v8467_v54, %v5465_v22  ;;  %v6792_v4 = vpop.f32.mrb[156].mxu1 }
 0x418   : > { %v5522_v43 = vadd.f32 %v5506_v44, %v5490_v8  ;;  %v5443_v55 = vadd.f32 %v6792_v4, %v8461_v58  ;;  %v5434_v27 = vpop.f32.mrb[157].mxu1  ;;  %v5537_v15 = vmax.f32 %v5521_v56, 0.0 }
 0x419   : > { %v5520_v3 = vadd.f32 %v5504_v35, %v5488_v37  ;;  %v5435_v52 = vadd.f32 %v5434_v27, %v8450_v21  ;;  %v6793_v62 = vpop.f32.mrb[158].mxu1  ;;  %v5535_v58 = vmax.f32 %v5519_v19, 0.0 }
 0x41a   : > { %v5538_v57 = vmax.f32 %v5522_v43, 0.0  ;;  %v5470_v28 = vmul.f32 %v8459_v25, %v5443_v55  ;;  %v5446_v51 = vadd.f32 %v6793_v62, %v8470_v1  ;;  %v5437_v39 = vpop.f32.mrb[159].mxu1 }
 0x41b   : > { %v5536_v33 = vmax.f32 %v5520_v3, 0.0  ;;  %v5468_v53 = vmul.f32 %v8459_v25, %v5435_v52  ;;  %v5438_v18 = vadd.f32 %v5437_v39, %v8452_v14 }
 0x41c   : > { %v6113_v21 = vpack.c.bf16 %v5538_v57, %v5537_v15  ;;  %v5493_v0 = vadd.f32 %v8467_v54, %v5470_v28  ;;  %v5471_v16 = vmul.f32 %v8459_v25, %v5446_v51 }
 0x41d   : > { %v6108_v1 = vpack.c.bf16 %v5536_v33, %v5535_v58  ;;  %v5491_v24 = vadd.f32 %v8467_v54, %v5468_v53  ;;  %v5469_v23 = vmul.f32 %v8459_v25, %v5438_v18 }
 0x41e   : > { %6129 = vst [vmem:[%s7614_s18 + $0x28] sm:$0xff] %v6113_v21   ;;  %v5525_v61 = vadd.f32 %v5509_v26, %v5493_v0  ;;  %v5494_v14 = vadd.f32 %v8467_v54, %v5471_v16 }
 0x41f   : > { %6128 = vst [vmem:[%s7614_s18 + $0x20] sm:$0xff] %v6108_v1   ;;  %v5523_v38 = vadd.f32 %v5507_v36, %v5491_v24  ;;  %v5492_v45 = vadd.f32 %v8467_v54, %v5469_v23 }
 0x420   : > { %v5526_v11 = vadd.f32 %v5510_v60, %v5494_v14  ;;  %v5541_v25 = vmax.f32 %v5525_v61, 0.0 }
 0x421   : > { %v5524_v42 = vadd.f32 %v5508_v20, %v5492_v45  ;;  %v5539_v10 = vmax.f32 %v5523_v38, 0.0 }
 0x422   : > { %v5542_v30 = vmax.f32 %v5526_v11, 0.0 }
 0x423   : > { %v5540_v13 = vmax.f32 %v5524_v42, 0.0 }
 0x424   : > { %v6123_v6 = vpack.c.bf16 %v5542_v30, %v5541_v25 }
 0x425   : > { %v6118_v54 = vpack.c.bf16 %v5540_v13, %v5539_v10 }
 0x426   : > { %6131 = vst [vmem:[%s7614_s18 + $0x38] sm:$0xff] %v6123_v6  }
 0x427   : > { %6130 = vst [vmem:[%s7614_s18 + $0x30] sm:$0xff] %v6118_v54  }
 0x428   : > { %7208 = shalt.err (!%p7205_p12)
}
 0x429   : > { %s7209_s9 = scalar_lea.hbm %s8546_s6, 1024  ;;  %s7213_s23 = scalar_lea.hbm %s8667_s21, 4096 }
 0x42a   : > { %p7210_p2 = scmp.ne.s32.totalorder %s8546_s6, %s7209_s9  ;;  %p7214_p1 = scmp.lt.u32.totalorder %s8546_s6, %s8667_s21 }
 0x42b   : > { %p7215_p4 = scmp.lt.u32.totalorder %s7213_s23, %s7209_s9  ;;  %p7217_p7 = scmp.lt.u32.totalorder %s7209_s9, %s8546_s6 }
 0x42c   : > { %p7211_p6 = pnand %p7210_p2, %p8668_p13 }
 0x42d   : > { %p7216_p3 = por %p7215_p4, %p7214_p1 }
 0x42e   : > { %p7212_p10 = pneg %p7211_p6 }
 0x42f   : > { %p7218_p9 = por %p7217_p7, %p7216_p3 }
 0x431   : > { %p7219_p11 = pnand %p7218_p9, %p7212_p10 }
 0x433   : > { %7222 = shalt.err (!%p7219_p11)
}
 0x434   : > { %s7332_s15 = smov 64   ;;  %s7333_s13 = smov 4  }
 0x435   : > { %6804 = dma.vmem_to_hbm [thread:$0]  (%p8668_p13), %s8548_s16, 1024, %s8546_s6, %s8554_s8, %s7332_s15, %s7332_s15, %s7333_s13  }
 0x436 PF: > { %s8669_s27 = sld [smem:[#allocation14_spill]]  ;;  %s8670_s7 = sld [smem:[#allocation18_spill]] }
 0x437   : > { %p6826_p0 = scmp.ge.s32.totalorder %s7321_s11, 2 }
 0x43c   : > { %s5655_s1 = sand.u32 1, %s8669_s27   ;;  %p8671_p5 = scmp.ne.s32.totalorder %s8670_s7, 0 }
 0x43d   : > { %s5656_s17 = scalar_lea.sflag [#allocation6], %s5655_s1 }
 0x43e   : > { %p6818_p8 = pnand %p6826_p0, %p8671_p5 }
 0x440   : > { %7276 = dma.done.wait (!%p6818_p8), %s5656_s17, 1024  }
 0x441   : > { %7278 = vsyncadd (!%p6818_p8), %s5656_s17, 4294966272  ;;  %s24_s11 = sadd.s32 1, %s7321_s11   ;;  %s8672_s30 = sld [smem:[#allocation16_spill]] }
 0x442   : > { %p21_p12 = scmp.ge.s32.totalorder %s24_s11, 6   ;;  %s8673_s9 = sld [smem:[#allocation19_spill]] }
 0x443   : > { %s8674_s24 = smov %s7285_s25  ;;  %s8675_s25 = smov %s7289_s26 }
 0x444   : > { %s8676_s26 = smov %s7555_s4  ;;  %s8677_s27 = smov %s7297_s28 }
 0x445   : > { %s8678_s28 = smov %s7301_s29  ;;  %s8679_s29 = smov %s7550_s12 }
 0x446   : > { %s8680_s8 = smov %s7317_s10  ;;  %s8681_s10 = smov %s8687_s22 }
 0x447   :  { %23 = sbr.rel (!%p21_p12) target bundleno = 15 (0xf), region = 121 }
 0x44e   :  { %5661 = vsyncpa [#allocation5], 1 }
 0x44f   :  { %5663 = vsyncpa [#allocation5 + $0x1], 1 }
 0x450   :  { %5664 = vsyncpa [#allocation8], 1 }
 0x451   :  { %5665 = vsyncpa [#allocation6], 1 }
 0x452   :  { %5667 = vsyncpa [#allocation6 + $0x1], 1 }

</bundles_post_ra>
